<compile_context>
chip_gen: v7x
topology: tpu7x:2x2x1
jax: 0.10.0
libtpu: 0.0.40
codegen_flags: <defaults>
</compile_context>

<pallas_src>
import functools
import math

import jax
import jax.numpy as jnp
import numpy as np
from jax.experimental import pallas as pl
from jax.experimental.pallas import tpu as pltpu

TM = 256            # M tile (256-wide ops fill the v6e/v7x MXU; >=2 grid steps on big layers)
LEAKY_SLOPE = 0.2   # TODO(synk): assumes networks.Encoder uses LeakyReLU(0.2)


def _round_up(x, m):
    return (x + m - 1) // m * m


# --------------------------------------------------------------------------
# Pallas kernel: o = act(x @ w + b) [* scale]   (bf16 operands, f32 accumulate)
# --------------------------------------------------------------------------
def _mm_kernel(*refs, act, has_scale):
    if has_scale:
        x_ref, w_ref, b_ref, s_ref, o_ref = refs
    else:
        x_ref, w_ref, b_ref, o_ref = refs
        s_ref = None
    acc = jnp.dot(x_ref[...], w_ref[...], preferred_element_type=jnp.float32)
    acc = acc + b_ref[...]
    if act == "leaky_relu":
        acc = jnp.where(acc >= 0, acc, LEAKY_SLOPE * acc)
    elif act == "sigmoid":
        acc = jax.nn.sigmoid(acc)
    elif act == "tanh":
        acc = jnp.tanh(acc)
    elif act != "none":
        raise ValueError(act)
    if has_scale:
        acc = acc * s_ref[...]
    o_ref[...] = acc.astype(o_ref.dtype)


def pallas_linear(x, layer):
    """act(x @ W + b) [* scale]; W/b/scale are pre-padded at init time."""
    M, K = x.shape
    w, b = layer["w"], layer["b"]
    s = layer.get("s", None)
    Kp, Np = w.shape

    if M >= TM and M % TM == 0:
        Mp, tm = M, TM
    elif M < TM:
        Mp, tm = _round_up(M, 16), _round_up(M, 16)   # single block == full array
    else:
        Mp, tm = _round_up(M, TM), TM

    xp = x.astype(jnp.bfloat16)
    if (Mp, Kp) != (M, K):
        xp = jnp.pad(xp, ((0, Mp - M), (0, Kp - K)))

    in_specs = [
        pl.BlockSpec((tm, Kp), lambda i: (i, 0)),
        pl.BlockSpec((Kp, Np), lambda i: (0, 0)),
        pl.BlockSpec((1, Np), lambda i: (0, 0)),
    ]
    args = [xp, w, b]
    if s is not None:
        in_specs.append(pl.BlockSpec((1, Np), lambda i: (0, 0)))
        args.append(s)

    out = pl.pallas_call(
        functools.partial(_mm_kernel, act=layer["act"], has_scale=s is not None),
        out_shape=jax.ShapeDtypeStruct((Mp, Np), layer["out_dtype"]),
        grid=(Mp // tm,),
        in_specs=in_specs,
        out_specs=pl.BlockSpec((tm, Np), lambda i: (i, 0)),
        compiler_params=pltpu.CompilerParams(dimension_semantics=("parallel",)),
    )(*args)
    # Padded rows / padded N columns are garbage-but-harmless: they are always
    # sliced off here, before any reshape.
    return out[:M, : layer["n"]]


# --------------------------------------------------------------------------
# NHWC patch extraction (plain-JAX glue feeding the Pallas matmul)
# --------------------------------------------------------------------------
def _patches_strided(x, kh, kw, stride, pad):
    # x: (N,H,W,C) channels-last -> (N*Ho*Wo, kh*kw*C), tap-major / channel-minor
    N, H, W, C = x.shape
    Ho = (H + 2 * pad - kh) // stride + 1
    Wo = (W + 2 * pad - kw) // stride + 1
    xp = jnp.pad(x, ((0, 0), (pad, pad), (pad, pad), (0, 0))) if pad else x
    taps = []
    for i in range(kh):
        for j in range(kw):
            taps.append(xp[:, i: i + stride * (Ho - 1) + 1: stride,
                              j: j + stride * (Wo - 1) + 1: stride, :])
    patches = jnp.concatenate(taps, axis=-1)                # (N,Ho,Wo,kh*kw*C)
    return patches.reshape(N * Ho * Wo, kh * kw * C), Ho, Wo


def _patches_upsample(x, kh, kw, pad, up):
    # Nearest-neighbour upsample by `up` fused into the stride-1 conv patch gather:
    # the upsampled tensor is never materialized (pure index arithmetic).
    N, H, W, C = x.shape
    Hu, Wu = H * up, W * up
    Ho = Hu + 2 * pad - kh + 1
    Wo = Wu + 2 * pad - kw + 1
    taps = []
    for i in range(kh):
        for j in range(kw):
            uy = np.arange(Ho) + i - pad
            ux = np.arange(Wo) + j - pad
            my = (uy >= 0) & (uy < Hu)
            mx = (ux >= 0) & (ux < Wu)
            sy = np.clip(uy, 0, Hu - 1) // up
            sx = np.clip(ux, 0, Wu - 1) // up
            tap = x[:, sy, :, :][:, :, sx, :]               # (N,Ho,Wo,C)
            if not (my.all() and mx.all()):
                mask = jnp.asarray((my[:, None] & mx[None, :]).astype(np.float32),
                                   dtype=x.dtype)
                tap = tap * mask[None, :, :, None]
            taps.append(tap)
    patches = jnp.concatenate(taps, axis=-1)
    return patches.reshape(N * Ho * Wo, kh * kw * C), Ho, Wo


def apply_conv(x, layer):
    # x NHWC -> NHWC
    N = x.shape[0]
    if layer["up"] > 1:
        patches, Ho, Wo = _patches_upsample(x, layer["kh"], layer["kw"],
                                            layer["pad"], layer["up"])
    else:
        patches, Ho, Wo = _patches_strided(x, layer["kh"], layer["kw"],
                                           layer["stride"], layer["pad"])
    y = pallas_linear(patches, layer)
    return y.reshape(N, Ho, Wo, layer["n"])


# --------------------------------------------------------------------------
# Init-time weight preparation (padding / bf16 / layout done ONCE here)
# --------------------------------------------------------------------------
def _make_matmul_layer(w_conv, b, *, act, scale=None, fold_scale=False,
                       out_dtype=jnp.bfloat16, stride=1, pad=0, up=1):
    # w_conv: (Cout, Cin, kh, kw) f32 (PyTorch layout)
    Cout, Cin, kh, kw = w_conv.shape
    if fold_scale and scale is not None:        # act == 'none': fold scale into W, b
        w_conv = w_conv * scale[:, None, None, None]
        b = b * scale
        scale = None
    K = kh * kw * Cin
    N = Cout
    Kp = max(128, _round_up(K, 128))
    Np = max(128, _round_up(N, 128))
    w2d = jnp.transpose(w_conv, (2, 3, 1, 0)).reshape(K, N)      # tap-major K order
    wp = jnp.zeros((Kp, Np), jnp.bfloat16).at[:K, :N].set(w2d.astype(jnp.bfloat16))
    bp = jnp.zeros((1, Np), jnp.float32).at[0, :N].set(b.astype(jnp.float32))
    layer = dict(w=wp, b=bp, act=act, n=N, k=K, kh=kh, kw=kw,
                 stride=stride, pad=pad, up=up, out_dtype=out_dtype)
    if scale is not None:
        layer["s"] = jnp.zeros((1, Np), jnp.float32).at[0, :N].set(
            scale.astype(jnp.float32))
    return layer


def _init_conv(key, cout, cin, k):
    wkey, bkey = jax.random.split(key)
    fan_in = cin * k * k
    w = jax.random.normal(wkey, (cout, cin, k, k), jnp.float32) / np.sqrt(fan_in)
    b = 0.01 * jax.random.normal(bkey, (cout,), jnp.float32)
    return {"w": w, "b": b}


def init_encoder(key, cin, cout, zdim, nf):
    ks = jax.random.split(key, 4)
    return [
        _init_conv(ks[0], nf, cin, 4),        # in->nf,   16->8
        _init_conv(ks[1], nf * 2, nf, 4),     # nf->2nf,  8->4
        _init_conv(ks[2], zdim, nf * 2, 4),   # 2nf->z,   4->1
        _init_conv(ks[3], cout, zdim, 1),     # z->cout,  1->1
    ]


def init_encdec(key, cin, cout, zdim, nf):
    ks = jax.random.split(key, 6)
    return [
        _init_conv(ks[0], nf, cin, 4),
        _init_conv(ks[1], nf * 2, nf, 4),
        _init_conv(ks[2], zdim, nf * 2, 4),
        _init_conv(ks[3], nf * 2, zdim, 3),
        _init_conv(ks[4], nf, nf * 2, 3),
        _init_conv(ks[5], cout, nf, 3),
    ]


def _concat_cout(ws, bs):
    return jnp.concatenate(ws, axis=0), jnp.concatenate(bs)


def _block_diag_conv(ws, bs):
    # Channel-block-diagonal fused conv weight: head h's inputs only feed head h's outputs.
    kh, kw = int(ws[0].shape[2]), int(ws[0].shape[3])
    W = jnp.zeros((sum(int(w.shape[0]) for w in ws),
                   sum(int(w.shape[1]) for w in ws), kh, kw), jnp.float32)
    o = i = 0
    for w in ws:
        W = W.at[o:o + w.shape[0], i:i + w.shape[1]].set(w)
        o += int(w.shape[0])
        i += int(w.shape[1])
    return W, jnp.concatenate(bs)


# --------------------------------------------------------------------------
# FramePredictor
# --------------------------------------------------------------------------
class FramePredictorPallas:
    def __init__(self, cfgs, num_verts_base, seed=0):
        self.in_image_size = cfgs.get("in_image_size", 128)
        self.latent_dimension = cfgs.get("latent_dimension", 256)
        self.num_body_bones = cfgs.get("num_body_bones", 4)
        self.num_legs = cfgs.get("num_legs", 0)
        self.num_leg_bones = cfgs.get("num_leg_bones", 0)
        self.num_verts_base = num_verts_base
        self.num_arti_params = (self.num_body_bones * 3
                                + self.num_legs * self.num_leg_bones * 3)
        self.cam_pos_z_offset = cfgs.get("cam_pos_z_offset", 10.0)
        max_xy = cfgs.get("max_trans_xy_range_ratio", 1.0) * self.cam_pos_z_offset * 0.325
        max_z = cfgs.get("max_trans_z_range_ratio", 1.0) * self.cam_pos_z_offset * 0.325
        self.max_trans_range = jnp.array([max_xy, max_xy, max_z], jnp.float32)
        self.rot_rep = cfgs.get("rot_rep", "euler_angle")
        assert self.rot_rep == "euler_angle"  # TODO(synk): quaternion / lookat paths
        self.max_rot_range = jnp.array(
            [cfgs.get("max_rot_x_range", 180),
             cfgs.get("max_rot_y_range", 180),
             cfgs.get("max_rot_z_range", 180)], jnp.float32)
        self.tex_im_size = cfgs.get("tex_im_size", 128)
        # TODO(synk): spatial schedule hardcoded for 16x16 (cfg defaults advertise 128)
        assert self.in_image_size == 16 and self.tex_im_size == 16

        nf = 32
        zdim = self.latent_dimension
        self.zdim = zdim
        key = jax.random.PRNGKey(seed)
        k_deform, k_pose, k_tex = jax.random.split(key, 3)
        deform_cout = self.num_verts_base * 3 + self.num_arti_params

        # Per-head raw conv params (the reference's three separate networks).
        d = init_encoder(k_deform, 3, deform_cout, zdim, nf)
        p = init_encoder(k_pose, 3, 6, zdim, nf)
        t = init_encdec(k_tex, 3, 3, zdim, nf)

        # Fused trunk: layers 1-3 of deform/pose/texture share conv geometry ->
        # one matmul per layer, channel order [deform | pose | texture].
        heads = [d, p, t]
        w1, b1 = _concat_cout([h[0]["w"] for h in heads], [h[0]["b"] for h in heads])
        w2, b2 = _block_diag_conv([h[1]["w"] for h in heads], [h[1]["b"] for h in heads])
        w3, b3 = _block_diag_conv([h[2]["w"] for h in heads], [h[2]["b"] for h in heads])
        self.trunk = [
            _make_matmul_layer(w1, b1, act="leaky_relu", stride=2, pad=1),  # 16 -> 8
            _make_matmul_layer(w2, b2, act="leaky_relu", stride=2, pad=1),  # 8  -> 4
            _make_matmul_layer(w3, b3, act="leaky_relu", stride=1, pad=0),  # 4  -> 1
        ]

        # pose head: rot = tanh(p[:3])*max_rot_rad, trans = tanh(p[3:])*max_trans
        pose_scale = jnp.concatenate(
            [self.max_rot_range / 180.0 * math.pi, self.max_trans_range])
        self.pose_head = _make_matmul_layer(
            p[3]["w"], p[3]["b"], act="tanh", scale=pose_scale, out_dtype=jnp.float32)

        # deform head (activation None): /100, /10 folded into weights + bias at init
        deform_scale = jnp.concatenate(
            [jnp.full((self.num_verts_base * 3,), 1.0 / 100.0, jnp.float32),
             jnp.full((self.num_arti_params,), 1.0 / 10.0, jnp.float32)])
        self.deform_head = _make_matmul_layer(
            d[3]["w"], d[3]["b"], act="none", scale=deform_scale, fold_scale=True,
            out_dtype=jnp.float32)

        # texture decoder: nearest upsample fused into the following conv patch gather
        self.tex_dec = [
            _make_matmul_layer(t[3]["w"], t[3]["b"], act="leaky_relu", pad=1, up=4),  # 1 -> 4
            _make_matmul_layer(t[4]["w"], t[4]["b"], act="leaky_relu", pad=1, up=2),  # 4 -> 8
            _make_matmul_layer(t[5]["w"], t[5]["b"], act="sigmoid", pad=1, up=2,
                               out_dtype=jnp.float32),                                # 8 -> 16
        ]

    def __call__(self, images):
        # images: (B, F, 3, H, W)
        B, F = images.shape[:2]
        BF = B * F
        # collapseBF + single NCHW -> NHWC conversion + bf16 cast (once)
        x = images.reshape((BF,) + images.shape[2:]).astype(jnp.bfloat16)
        x = x.transpose(0, 2, 3, 1)                       # (BF, H, W, 3)

        h = x
        for layer in self.trunk:
            h = apply_conv(h, layer)                      # fused: all three heads
        z = h.reshape(BF, 3 * self.zdim)
        z_deform = z[:, : self.zdim]
        z_pose = z[:, self.zdim: 2 * self.zdim]
        z_tex = z[:, 2 * self.zdim:]

        pose = pallas_linear(z_pose, self.pose_head)      # (BF, 6), tanh*range fused
        deform = pallas_linear(z_deform, self.deform_head)  # (BF, cout), scales folded
        v3 = self.num_verts_base * 3
        verts_deform = deform[:, :v3]
        arti_params = deform[:, v3: v3 + self.num_arti_params]

        t = z_tex.reshape(BF, 1, 1, self.zdim)
        for layer in self.tex_dec:
            t = apply_conv(t, layer)                      # (BF, 16, 16, 3)
        texture = t.transpose(0, 3, 1, 2)                 # single NHWC -> NCHW

        # expandBF
        pose = pose.reshape(B, F, -1)
        texture = texture.reshape((B, F) + texture.shape[1:])
        verts_deform = verts_deform.reshape(B, F, -1)
        arti_params = arti_params.reshape(B, F, -1)
        return pose, texture, verts_deform, arti_params


if __name__ == "__main__":
    cfgs = {
        "in_image_size": 16,
        "tex_im_size": 16,
        "latent_dimension": 32,
        "num_body_bones": 4,
        "num_legs": 0,
        "num_leg_bones": 0,
        "rot_rep": "euler_angle",
        "cam_pos_z_offset": 10.0,
    }
    model = FramePredictorPallas(cfgs, num_verts_base=8, seed=0)

    key = jax.random.PRNGKey(0)
    B, F, C, H, W = 2, 2, 3, 16, 16
    images = jax.random.normal(key, (B, F, C, H, W), jnp.float32)

    fwd = jax.jit(model.__call__)
    pose, texture, verts_deform, arti_params = fwd(images)
    jax.block_until_ready((pose, texture, verts_deform, arti_params))

    assert pose.shape == (B, F, 6)
    assert texture.shape == (B, F, 3, 16, 16)
    assert verts_deform.shape == (B, F, 8 * 3)
    assert arti_params.shape == (B, F, 12)
    assert bool(jnp.isfinite(pose).all())
    assert bool(jnp.isfinite(texture).all())
    print("KERNEL_OK")
</pallas_src>

<mosaic_0001>
module attributes {stable_mosaic.version = 11 : i64} {
  func.func @_mm_kernel(%arg0: i32, %arg1: memref<256x128xbf16, #tpu.memory_space<vmem>>, %arg2: memref<128x128xbf16, #tpu.memory_space<vmem>>, %arg3: memref<1x128xf32, #tpu.memory_space<vmem>>, %arg4: memref<256x128xbf16, #tpu.memory_space<vmem>>) attributes {dimension_semantics = [#tpu.dimension_semantics<parallel>], iteration_bounds = array<i64: 1>, scalar_prefetch = 0 : i64, scratch_operands = 0 : i64, tpu.core_type = #tpu.core_type<tc>, window_params = [{transform_indices = @transform_0, window_bounds = array<i64: 256, 128>}, {pipeline_mode = #tpu.pipeline_mode<synchronous>, transform_indices = @transform_1, window_bounds = array<i64: 128, 128>}, {pipeline_mode = #tpu.pipeline_mode<synchronous>, transform_indices = @transform_2, window_bounds = array<i64: 1, 128>}, {transform_indices = @transform_3, window_bounds = array<i64: 256, 128>}]} {
    %c0 = arith.constant 0 : index
    %c0_0 = arith.constant 0 : index
    %0 = vector.load %arg1[%c0, %c0_0] : memref<256x128xbf16, #tpu.memory_space<vmem>>, vector<256x128xbf16>
    %c0_1 = arith.constant 0 : index
    %c0_2 = arith.constant 0 : index
    %1 = vector.load %arg2[%c0_1, %c0_2] : memref<128x128xbf16, #tpu.memory_space<vmem>>, vector<128x128xbf16>
    %cst = arith.constant dense<0.000000e+00> : vector<256x128xf32>
    %2 = tpu.matmul %0, %1, %cst {dimension_numbers = #tpu.dot_dimension_numbers<[1], [0], [0], [1], [0, 0, 1, 1], [], []>} : vector<256x128xbf16>, vector<128x128xbf16>, vector<256x128xf32> -> vector<256x128xf32>
    %c0_3 = arith.constant 0 : index
    %c0_4 = arith.constant 0 : index
    %3 = vector.load %arg3[%c0_3, %c0_4] : memref<1x128xf32, #tpu.memory_space<vmem>>, vector<1x128xf32>
    %4 = vector.broadcast %3 : vector<1x128xf32> to vector<256x128xf32>
    %5 = arith.addf %2, %4 : vector<256x128xf32>
    %cst_5 = arith.constant 0.000000e+00 : f32
    %6 = vector.broadcast %cst_5 : f32 to vector<256x128xf32>
    %7 = arith.cmpf oge, %5, %6 : vector<256x128xf32>
    %cst_6 = arith.constant 2.000000e-01 : f32
    %8 = vector.broadcast %cst_6 : f32 to vector<256x128xf32>
    %9 = arith.mulf %8, %5 : vector<256x128xf32>
    %10 = arith.select %7, %5, %9 : vector<256x128xi1>, vector<256x128xf32>
    %11 = arith.truncf %10 : vector<256x128xf32> to vector<256x128xbf16>
    %c0_7 = arith.constant 0 : index
    %c0_8 = arith.constant 0 : index
    %12 = vector.load %arg4[%c0_7, %c0_8] : memref<256x128xbf16, #tpu.memory_space<vmem>>, vector<256x128xbf16>
    tpu.vector_store %arg4[%c0_7, %c0_8], %11 {strides = array<i32>} : memref<256x128xbf16, #tpu.memory_space<vmem>>, vector<256x128xbf16>,
    return
  }
  func.func @transform_0(%arg0: i32) -> (i32, i32) {
    %c0_i32 = arith.constant 0 : i32
    %c0_i32_0 = arith.constant 0 : i32
    return %arg0, %c0_i32 : i32, i32
  }
  func.func @transform_1(%arg0: i32) -> (i32, i32) {
    %c0_i32 = arith.constant 0 : i32
    %c0_i32_0 = arith.constant 0 : i32
    %c0_i32_1 = arith.constant 0 : i32
    return %c0_i32, %c0_i32_0 : i32, i32
  }
  func.func @transform_2(%arg0: i32) -> (i32, i32) {
    %c0_i32 = arith.constant 0 : i32
    %c0_i32_0 = arith.constant 0 : i32
    %c0_i32_1 = arith.constant 0 : i32
    return %c0_i32, %c0_i32_0 : i32, i32
  }
  func.func @transform_3(%arg0: i32) -> (i32, i32) {
    %c0_i32 = arith.constant 0 : i32
    %c0_i32_0 = arith.constant 0 : i32
    return %arg0, %c0_i32 : i32, i32
  }
}

module attributes {stable_mosaic.version = 11 : i64} {
  func.func @_mm_kernel(%arg0: i32, %arg1: memref<64x1536xbf16, #tpu.memory_space<vmem>>, %arg2: memref<1536x256xbf16, #tpu.memory_space<vmem>>, %arg3: memref<1x256xf32, #tpu.memory_space<vmem>>, %arg4: memref<64x256xbf16, #tpu.memory_space<vmem>>) attributes {dimension_semantics = [#tpu.dimension_semantics<parallel>], iteration_bounds = array<i64: 1>, scalar_prefetch = 0 : i64, scratch_operands = 0 : i64, tpu.core_type = #tpu.core_type<tc>, window_params = [{transform_indices = @transform_0, window_bounds = array<i64: 64, 1536>}, {pipeline_mode = #tpu.pipeline_mode<synchronous>, transform_indices = @transform_1, window_bounds = array<i64: 1536, 256>}, {pipeline_mode = #tpu.pipeline_mode<synchronous>, transform_indices = @transform_2, window_bounds = array<i64: 1, 256>}, {transform_indices = @transform_3, window_bounds = array<i64: 64, 256>}]} {
    %c0 = arith.constant 0 : index
    %c0_0 = arith.constant 0 : index
    %0 = vector.load %arg1[%c0, %c0_0] : memref<64x1536xbf16, #tpu.memory_space<vmem>>, vector<64x1536xbf16>
    %c0_1 = arith.constant 0 : index
    %c0_2 = arith.constant 0 : index
    %1 = vector.load %arg2[%c0_1, %c0_2] : memref<1536x256xbf16, #tpu.memory_space<vmem>>, vector<1536x256xbf16>
    %cst = arith.constant dense<0.000000e+00> : vector<64x256xf32>
    %2 = tpu.matmul %0, %1, %cst {dimension_numbers = #tpu.dot_dimension_numbers<[1], [0], [0], [1], [0, 0, 1, 1], [], []>} : vector<64x1536xbf16>, vector<1536x256xbf16>, vector<64x256xf32> -> vector<64x256xf32>
    %c0_3 = arith.constant 0 : index
    %c0_4 = arith.constant 0 : index
    %3 = vector.load %arg3[%c0_3, %c0_4] : memref<1x256xf32, #tpu.memory_space<vmem>>, vector<1x256xf32>
    %4 = vector.broadcast %3 : vector<1x256xf32> to vector<64x256xf32>
    %5 = arith.addf %2, %4 : vector<64x256xf32>
    %cst_5 = arith.constant 0.000000e+00 : f32
    %6 = vector.broadcast %cst_5 : f32 to vector<64x256xf32>
    %7 = arith.cmpf oge, %5, %6 : vector<64x256xf32>
    %cst_6 = arith.constant 2.000000e-01 : f32
    %8 = vector.broadcast %cst_6 : f32 to vector<64x256xf32>
    %9 = arith.mulf %8, %5 : vector<64x256xf32>
    %10 = arith.select %7, %5, %9 : vector<64x256xi1>, vector<64x256xf32>
    %11 = arith.truncf %10 : vector<64x256xf32> to vector<64x256xbf16>
    %c0_7 = arith.constant 0 : index
    %c0_8 = arith.constant 0 : index
    %12 = vector.load %arg4[%c0_7, %c0_8] : memref<64x256xbf16, #tpu.memory_space<vmem>>, vector<64x256xbf16>
    tpu.vector_store %arg4[%c0_7, %c0_8], %11 {strides = array<i32>} : memref<64x256xbf16, #tpu.memory_space<vmem>>, vector<64x256xbf16>,
    return
  }
  func.func @transform_0(%arg0: i32) -> (i32, i32) {
    %c0_i32 = arith.constant 0 : i32
    %c0_i32_0 = arith.constant 0 : i32
    return %arg0, %c0_i32 : i32, i32
  }
  func.func @transform_1(%arg0: i32) -> (i32, i32) {
    %c0_i32 = arith.constant 0 : i32
    %c0_i32_0 = arith.constant 0 : i32
    %c0_i32_1 = arith.constant 0 : i32
    return %c0_i32, %c0_i32_0 : i32, i32
  }
  func.func @transform_2(%arg0: i32) -> (i32, i32) {
    %c0_i32 = arith.constant 0 : i32
    %c0_i32_0 = arith.constant 0 : i32
    %c0_i32_1 = arith.constant 0 : i32
    return %c0_i32, %c0_i32_0 : i32, i32
  }
  func.func @transform_3(%arg0: i32) -> (i32, i32) {
    %c0_i32 = arith.constant 0 : i32
    %c0_i32_0 = arith.constant 0 : i32
    return %arg0, %c0_i32 : i32, i32
  }
}

module attributes {stable_mosaic.version = 11 : i64} {
  func.func @_mm_kernel(%arg0: i32, %arg1: memref<16x3072xbf16, #tpu.memory_space<vmem>>, %arg2: memref<3072x128xbf16, #tpu.memory_space<vmem>>, %arg3: memref<1x128xf32, #tpu.memory_space<vmem>>, %arg4: memref<16x128xbf16, #tpu.memory_space<vmem>>) attributes {dimension_semantics = [#tpu.dimension_semantics<parallel>], iteration_bounds = array<i64: 1>, scalar_prefetch = 0 : i64, scratch_operands = 0 : i64, tpu.core_type = #tpu.core_type<tc>, window_params = [{transform_indices = @transform_0, window_bounds = array<i64: 16, 3072>}, {pipeline_mode = #tpu.pipeline_mode<synchronous>, transform_indices = @transform_1, window_bounds = array<i64: 3072, 128>}, {pipeline_mode = #tpu.pipeline_mode<synchronous>, transform_indices = @transform_2, window_bounds = array<i64: 1, 128>}, {transform_indices = @transform_3, window_bounds = array<i64: 16, 128>}]} {
    %c0 = arith.constant 0 : index
    %c0_0 = arith.constant 0 : index
    %0 = vector.load %arg1[%c0, %c0_0] : memref<16x3072xbf16, #tpu.memory_space<vmem>>, vector<16x3072xbf16>
    %c0_1 = arith.constant 0 : index
    %c0_2 = arith.constant 0 : index
    %1 = vector.load %arg2[%c0_1, %c0_2] : memref<3072x128xbf16, #tpu.memory_space<vmem>>, vector<3072x128xbf16>
    %cst = arith.constant dense<0.000000e+00> : vector<16x128xf32>
    %2 = tpu.matmul %0, %1, %cst {dimension_numbers = #tpu.dot_dimension_numbers<[1], [0], [0], [1], [0, 0, 1, 1], [], []>} : vector<16x3072xbf16>, vector<3072x128xbf16>, vector<16x128xf32> -> vector<16x128xf32>
    %c0_3 = arith.constant 0 : index
    %c0_4 = arith.constant 0 : index
    %3 = vector.load %arg3[%c0_3, %c0_4] : memref<1x128xf32, #tpu.memory_space<vmem>>, vector<1x128xf32>
    %4 = vector.broadcast %3 : vector<1x128xf32> to vector<16x128xf32>
    %5 = arith.addf %2, %4 : vector<16x128xf32>
    %cst_5 = arith.constant 0.000000e+00 : f32
    %6 = vector.broadcast %cst_5 : f32 to vector<16x128xf32>
    %7 = arith.cmpf oge, %5, %6 : vector<16x128xf32>
    %cst_6 = arith.constant 2.000000e-01 : f32
    %8 = vector.broadcast %cst_6 : f32 to vector<16x128xf32>
    %9 = arith.mulf %8, %5 : vector<16x128xf32>
    %10 = arith.select %7, %5, %9 : vector<16x128xi1>, vector<16x128xf32>
    %11 = arith.truncf %10 : vector<16x128xf32> to vector<16x128xbf16>
    %c0_7 = arith.constant 0 : index
    %c0_8 = arith.constant 0 : index
    %12 = vector.load %arg4[%c0_7, %c0_8] : memref<16x128xbf16, #tpu.memory_space<vmem>>, vector<16x128xbf16>
    tpu.vector_store %arg4[%c0_7, %c0_8], %11 {strides = array<i32>} : memref<16x128xbf16, #tpu.memory_space<vmem>>, vector<16x128xbf16>,
    return
  }
  func.func @transform_0(%arg0: i32) -> (i32, i32) {
    %c0_i32 = arith.constant 0 : i32
    %c0_i32_0 = arith.constant 0 : i32
    return %arg0, %c0_i32 : i32, i32
  }
  func.func @transform_1(%arg0: i32) -> (i32, i32) {
    %c0_i32 = arith.constant 0 : i32
    %c0_i32_0 = arith.constant 0 : i32
    %c0_i32_1 = arith.constant 0 : i32
    return %c0_i32, %c0_i32_0 : i32, i32
  }
  func.func @transform_2(%arg0: i32) -> (i32, i32) {
    %c0_i32 = arith.constant 0 : i32
    %c0_i32_0 = arith.constant 0 : i32
    %c0_i32_1 = arith.constant 0 : i32
    return %c0_i32, %c0_i32_0 : i32, i32
  }
  func.func @transform_3(%arg0: i32) -> (i32, i32) {
    %c0_i32 = arith.constant 0 : i32
    %c0_i32_0 = arith.constant 0 : i32
    return %arg0, %c0_i32 : i32, i32
  }
}

module attributes {stable_mosaic.version = 11 : i64} {
  func.func @_mm_kernel(%arg0: i32, %arg1: memref<64x384xbf16, #tpu.memory_space<vmem>>, %arg2: memref<384x128xbf16, #tpu.memory_space<vmem>>, %arg3: memref<1x128xf32, #tpu.memory_space<vmem>>, %arg4: memref<64x128xbf16, #tpu.memory_space<vmem>>) attributes {dimension_semantics = [#tpu.dimension_semantics<parallel>], iteration_bounds = array<i64: 1>, scalar_prefetch = 0 : i64, scratch_operands = 0 : i64, tpu.core_type = #tpu.core_type<tc>, window_params = [{transform_indices = @transform_0, window_bounds = array<i64: 64, 384>}, {pipeline_mode = #tpu.pipeline_mode<synchronous>, transform_indices = @transform_1, window_bounds = array<i64: 384, 128>}, {pipeline_mode = #tpu.pipeline_mode<synchronous>, transform_indices = @transform_2, window_bounds = array<i64: 1, 128>}, {transform_indices = @transform_3, window_bounds = array<i64: 64, 128>}]} {
    %c0 = arith.constant 0 : index
    %c0_0 = arith.constant 0 : index
    %0 = vector.load %arg1[%c0, %c0_0] : memref<64x384xbf16, #tpu.memory_space<vmem>>, vector<64x384xbf16>
    %c0_1 = arith.constant 0 : index
    %c0_2 = arith.constant 0 : index
    %1 = vector.load %arg2[%c0_1, %c0_2] : memref<384x128xbf16, #tpu.memory_space<vmem>>, vector<384x128xbf16>
    %cst = arith.constant dense<0.000000e+00> : vector<64x128xf32>
    %2 = tpu.matmul %0, %1, %cst {dimension_numbers = #tpu.dot_dimension_numbers<[1], [0], [0], [1], [0, 0, 1, 1], [], []>} : vector<64x384xbf16>, vector<384x128xbf16>, vector<64x128xf32> -> vector<64x128xf32>
    %c0_3 = arith.constant 0 : index
    %c0_4 = arith.constant 0 : index
    %3 = vector.load %arg3[%c0_3, %c0_4] : memref<1x128xf32, #tpu.memory_space<vmem>>, vector<1x128xf32>
    %4 = vector.broadcast %3 : vector<1x128xf32> to vector<64x128xf32>
    %5 = arith.addf %2, %4 : vector<64x128xf32>
    %cst_5 = arith.constant 0.000000e+00 : f32
    %6 = vector.broadcast %cst_5 : f32 to vector<64x128xf32>
    %7 = arith.cmpf oge, %5, %6 : vector<64x128xf32>
    %cst_6 = arith.constant 2.000000e-01 : f32
    %8 = vector.broadcast %cst_6 : f32 to vector<64x128xf32>
    %9 = arith.mulf %8, %5 : vector<64x128xf32>
    %10 = arith.select %7, %5, %9 : vector<64x128xi1>, vector<64x128xf32>
    %11 = arith.truncf %10 : vector<64x128xf32> to vector<64x128xbf16>
    %c0_7 = arith.constant 0 : index
    %c0_8 = arith.constant 0 : index
    %12 = vector.load %arg4[%c0_7, %c0_8] : memref<64x128xbf16, #tpu.memory_space<vmem>>, vector<64x128xbf16>
    tpu.vector_store %arg4[%c0_7, %c0_8], %11 {strides = array<i32>} : memref<64x128xbf16, #tpu.memory_space<vmem>>, vector<64x128xbf16>,
    return
  }
  func.func @transform_0(%arg0: i32) -> (i32, i32) {
    %c0_i32 = arith.constant 0 : i32
    %c0_i32_0 = arith.constant 0 : i32
    return %arg0, %c0_i32 : i32, i32
  }
  func.func @transform_1(%arg0: i32) -> (i32, i32) {
    %c0_i32 = arith.constant 0 : i32
    %c0_i32_0 = arith.constant 0 : i32
    %c0_i32_1 = arith.constant 0 : i32
    return %c0_i32, %c0_i32_0 : i32, i32
  }
  func.func @transform_2(%arg0: i32) -> (i32, i32) {
    %c0_i32 = arith.constant 0 : i32
    %c0_i32_0 = arith.constant 0 : i32
    %c0_i32_1 = arith.constant 0 : i32
    return %c0_i32, %c0_i32_0 : i32, i32
  }
  func.func @transform_3(%arg0: i32) -> (i32, i32) {
    %c0_i32 = arith.constant 0 : i32
    %c0_i32_0 = arith.constant 0 : i32
    return %arg0, %c0_i32 : i32, i32
  }
}

module attributes {stable_mosaic.version = 11 : i64} {
  func.func @_mm_kernel(%arg0: i32, %arg1: memref<256x640xbf16, #tpu.memory_space<vmem>>, %arg2: memref<640x128xbf16, #tpu.memory_space<vmem>>, %arg3: memref<1x128xf32, #tpu.memory_space<vmem>>, %arg4: memref<256x128xbf16, #tpu.memory_space<vmem>>) attributes {dimension_semantics = [#tpu.dimension_semantics<parallel>], iteration_bounds = array<i64: 1>, scalar_prefetch = 0 : i64, scratch_operands = 0 : i64, tpu.core_type = #tpu.core_type<tc>, window_params = [{transform_indices = @transform_0, window_bounds = array<i64: 256, 640>}, {pipeline_mode = #tpu.pipeline_mode<synchronous>, transform_indices = @transform_1, window_bounds = array<i64: 640, 128>}, {pipeline_mode = #tpu.pipeline_mode<synchronous>, transform_indices = @transform_2, window_bounds = array<i64: 1, 128>}, {transform_indices = @transform_3, window_bounds = array<i64: 256, 128>}]} {
    %c0 = arith.constant 0 : index
    %c0_0 = arith.constant 0 : index
    %0 = vector.load %arg1[%c0, %c0_0] : memref<256x640xbf16, #tpu.memory_space<vmem>>, vector<256x640xbf16>
    %c0_1 = arith.constant 0 : index
    %c0_2 = arith.constant 0 : index
    %1 = vector.load %arg2[%c0_1, %c0_2] : memref<640x128xbf16, #tpu.memory_space<vmem>>, vector<640x128xbf16>
    %cst = arith.constant dense<0.000000e+00> : vector<256x128xf32>
    %2 = tpu.matmul %0, %1, %cst {dimension_numbers = #tpu.dot_dimension_numbers<[1], [0], [0], [1], [0, 0, 1, 1], [], []>} : vector<256x640xbf16>, vector<640x128xbf16>, vector<256x128xf32> -> vector<256x128xf32>
    %c0_3 = arith.constant 0 : index
    %c0_4 = arith.constant 0 : index
    %3 = vector.load %arg3[%c0_3, %c0_4] : memref<1x128xf32, #tpu.memory_space<vmem>>, vector<1x128xf32>
    %4 = vector.broadcast %3 : vector<1x128xf32> to vector<256x128xf32>
    %5 = arith.addf %2, %4 : vector<256x128xf32>
    %cst_5 = arith.constant 0.000000e+00 : f32
    %6 = vector.broadcast %cst_5 : f32 to vector<256x128xf32>
    %7 = arith.cmpf oge, %5, %6 : vector<256x128xf32>
    %cst_6 = arith.constant 2.000000e-01 : f32
    %8 = vector.broadcast %cst_6 : f32 to vector<256x128xf32>
    %9 = arith.mulf %8, %5 : vector<256x128xf32>
    %10 = arith.select %7, %5, %9 : vector<256x128xi1>, vector<256x128xf32>
    %11 = arith.truncf %10 : vector<256x128xf32> to vector<256x128xbf16>
    %c0_7 = arith.constant 0 : index
    %c0_8 = arith.constant 0 : index
    %12 = vector.load %arg4[%c0_7, %c0_8] : memref<256x128xbf16, #tpu.memory_space<vmem>>, vector<256x128xbf16>
    tpu.vector_store %arg4[%c0_7, %c0_8], %11 {strides = array<i32>} : memref<256x128xbf16, #tpu.memory_space<vmem>>, vector<256x128xbf16>,
    return
  }
  func.func @transform_0(%arg0: i32) -> (i32, i32) {
    %c0_i32 = arith.constant 0 : i32
    %c0_i32_0 = arith.constant 0 : i32
    return %arg0, %c0_i32 : i32, i32
  }
  func.func @transform_1(%arg0: i32) -> (i32, i32) {
    %c0_i32 = arith.constant 0 : i32
    %c0_i32_0 = arith.constant 0 : i32
    %c0_i32_1 = arith.constant 0 : i32
    return %c0_i32, %c0_i32_0 : i32, i32
  }
  func.func @transform_2(%arg0: i32) -> (i32, i32) {
    %c0_i32 = arith.constant 0 : i32
    %c0_i32_0 = arith.constant 0 : i32
    %c0_i32_1 = arith.constant 0 : i32
    return %c0_i32, %c0_i32_0 : i32, i32
  }
  func.func @transform_3(%arg0: i32) -> (i32, i32) {
    %c0_i32 = arith.constant 0 : i32
    %c0_i32_0 = arith.constant 0 : i32
    return %arg0, %c0_i32 : i32, i32
  }
}

module attributes {stable_mosaic.version = 11 : i64} {
  func.func @_mm_kernel(%arg0: i32, %arg1: memref<256x384xbf16, #tpu.memory_space<vmem>>, %arg2: memref<384x128xbf16, #tpu.memory_space<vmem>>, %arg3: memref<1x128xf32, #tpu.memory_space<vmem>>, %arg4: memref<256x128xf32, #tpu.memory_space<vmem>>) attributes {dimension_semantics = [#tpu.dimension_semantics<parallel>], iteration_bounds = array<i64: 4>, scalar_prefetch = 0 : i64, scratch_operands = 0 : i64, tpu.core_type = #tpu.core_type<tc>, window_params = [{transform_indices = @transform_0, window_bounds = array<i64: 256, 384>}, {pipeline_mode = #tpu.pipeline_mode<synchronous>, transform_indices = @transform_1, window_bounds = array<i64: 384, 128>}, {pipeline_mode = #tpu.pipeline_mode<synchronous>, transform_indices = @transform_2, window_bounds = array<i64: 1, 128>}, {transform_indices = @transform_3, window_bounds = array<i64: 256, 128>}]} {
    %c0 = arith.constant 0 : index
    %c0_0 = arith.constant 0 : index
    %0 = vector.load %arg1[%c0, %c0_0] : memref<256x384xbf16, #tpu.memory_space<vmem>>, vector<256x384xbf16>
    %c0_1 = arith.constant 0 : index
    %c0_2 = arith.constant 0 : index
    %1 = vector.load %arg2[%c0_1, %c0_2] : memref<384x128xbf16, #tpu.memory_space<vmem>>, vector<384x128xbf16>
    %cst = arith.constant dense<0.000000e+00> : vector<256x128xf32>
    %2 = tpu.matmul %0, %1, %cst {dimension_numbers = #tpu.dot_dimension_numbers<[1], [0], [0], [1], [0, 0, 1, 1], [], []>} : vector<256x384xbf16>, vector<384x128xbf16>, vector<256x128xf32> -> vector<256x128xf32>
    %c0_3 = arith.constant 0 : index
    %c0_4 = arith.constant 0 : index
    %3 = vector.load %arg3[%c0_3, %c0_4] : memref<1x128xf32, #tpu.memory_space<vmem>>, vector<1x128xf32>
    %4 = vector.broadcast %3 : vector<1x128xf32> to vector<256x128xf32>
    %5 = arith.addf %2, %4 : vector<256x128xf32>
    %6 = arith.negf %5 : vector<256x128xf32>
    %7 = math.exp %6 : vector<256x128xf32>
    %cst_5 = arith.constant 1.000000e+00 : f32
    %8 = vector.broadcast %cst_5 : f32 to vector<256x128xf32>
    %9 = arith.addf %8, %7 : vector<256x128xf32>
    %10 = arith.divf %8, %9 : vector<256x128xf32>
    %c0_6 = arith.constant 0 : index
    %c0_7 = arith.constant 0 : index
    %11 = vector.load %arg4[%c0_6, %c0_7] : memref<256x128xf32, #tpu.memory_space<vmem>>, vector<256x128xf32>
    tpu.vector_store %arg4[%c0_6, %c0_7], %10 {strides = array<i32>} : memref<256x128xf32, #tpu.memory_space<vmem>>, vector<256x128xf32>,
    return
  }
  func.func @transform_0(%arg0: i32) -> (i32, i32) {
    %c0_i32 = arith.constant 0 : i32
    %c0_i32_0 = arith.constant 0 : i32
    return %arg0, %c0_i32 : i32, i32
  }
  func.func @transform_1(%arg0: i32) -> (i32, i32) {
    %c0_i32 = arith.constant 0 : i32
    %c0_i32_0 = arith.constant 0 : i32
    %c0_i32_1 = arith.constant 0 : i32
    return %c0_i32, %c0_i32_0 : i32, i32
  }
  func.func @transform_2(%arg0: i32) -> (i32, i32) {
    %c0_i32 = arith.constant 0 : i32
    %c0_i32_0 = arith.constant 0 : i32
    %c0_i32_1 = arith.constant 0 : i32
    return %c0_i32, %c0_i32_0 : i32, i32
  }
  func.func @transform_3(%arg0: i32) -> (i32, i32) {
    %c0_i32 = arith.constant 0 : i32
    %c0_i32_0 = arith.constant 0 : i32
    return %arg0, %c0_i32 : i32, i32
  }
}

module attributes {stable_mosaic.version = 11 : i64} {
  func.func @_mm_kernel(%arg0: i32, %arg1: memref<16x128xbf16, #tpu.memory_space<vmem>>, %arg2: memref<128x128xbf16, #tpu.memory_space<vmem>>, %arg3: memref<1x128xf32, #tpu.memory_space<vmem>>, %arg4: memref<1x128xf32, #tpu.memory_space<vmem>>, %arg5: memref<16x128xf32, #tpu.memory_space<vmem>>) attributes {dimension_semantics = [#tpu.dimension_semantics<parallel>], iteration_bounds = array<i64: 1>, scalar_prefetch = 0 : i64, scratch_operands = 0 : i64, tpu.core_type = #tpu.core_type<tc>, window_params = [{transform_indices = @transform_0, window_bounds = array<i64: 16, 128>}, {pipeline_mode = #tpu.pipeline_mode<synchronous>, transform_indices = @transform_1, window_bounds = array<i64: 128, 128>}, {pipeline_mode = #tpu.pipeline_mode<synchronous>, transform_indices = @transform_2, window_bounds = array<i64: 1, 128>}, {pipeline_mode = #tpu.pipeline_mode<synchronous>, transform_indices = @transform_3, window_bounds = array<i64: 1, 128>}, {transform_indices = @transform_4, window_bounds = array<i64: 16, 128>}]} {
    %c0 = arith.constant 0 : index
    %c0_0 = arith.constant 0 : index
    %0 = vector.load %arg1[%c0, %c0_0] : memref<16x128xbf16, #tpu.memory_space<vmem>>, vector<16x128xbf16>
    %c0_1 = arith.constant 0 : index
    %c0_2 = arith.constant 0 : index
    %1 = vector.load %arg2[%c0_1, %c0_2] : memref<128x128xbf16, #tpu.memory_space<vmem>>, vector<128x128xbf16>
    %cst = arith.constant dense<0.000000e+00> : vector<16x128xf32>
    %2 = tpu.matmul %0, %1, %cst {dimension_numbers = #tpu.dot_dimension_numbers<[1], [0], [0], [1], [0, 0, 1, 1], [], []>} : vector<16x128xbf16>, vector<128x128xbf16>, vector<16x128xf32> -> vector<16x128xf32>
    %c0_3 = arith.constant 0 : index
    %c0_4 = arith.constant 0 : index
    %3 = vector.load %arg3[%c0_3, %c0_4] : memref<1x128xf32, #tpu.memory_space<vmem>>, vector<1x128xf32>
    %4 = vector.broadcast %3 : vector<1x128xf32> to vector<16x128xf32>
    %5 = arith.addf %2, %4 : vector<16x128xf32>
    %6 = math.tanh %5 : vector<16x128xf32>
    %c0_5 = arith.constant 0 : index
    %c0_6 = arith.constant 0 : index
    %7 = vector.load %arg4[%c0_5, %c0_6] : memref<1x128xf32, #tpu.memory_space<vmem>>, vector<1x128xf32>
    %8 = vector.broadcast %7 : vector<1x128xf32> to vector<16x128xf32>
    %9 = arith.mulf %6, %8 : vector<16x128xf32>
    %c0_7 = arith.constant 0 : index
    %c0_8 = arith.constant 0 : index
    %10 = vector.load %arg5[%c0_7, %c0_8] : memref<16x128xf32, #tpu.memory_space<vmem>>, vector<16x128xf32>
    tpu.vector_store %arg5[%c0_7, %c0_8], %9 {strides = array<i32>} : memref<16x128xf32, #tpu.memory_space<vmem>>, vector<16x128xf32>,
    return
  }
  func.func @transform_0(%arg0: i32) -> (i32, i32) {
    %c0_i32 = arith.constant 0 : i32
    %c0_i32_0 = arith.constant 0 : i32
    return %arg0, %c0_i32 : i32, i32
  }
  func.func @transform_1(%arg0: i32) -> (i32, i32) {
    %c0_i32 = arith.constant 0 : i32
    %c0_i32_0 = arith.constant 0 : i32
    %c0_i32_1 = arith.constant 0 : i32
    return %c0_i32, %c0_i32_0 : i32, i32
  }
  func.func @transform_2(%arg0: i32) -> (i32, i32) {
    %c0_i32 = arith.constant 0 : i32
    %c0_i32_0 = arith.constant 0 : i32
    %c0_i32_1 = arith.constant 0 : i32
    return %c0_i32, %c0_i32_0 : i32, i32
  }
  func.func @transform_3(%arg0: i32) -> (i32, i32) {
    %c0_i32 = arith.constant 0 : i32
    %c0_i32_0 = arith.constant 0 : i32
    %c0_i32_1 = arith.constant 0 : i32
    return %c0_i32, %c0_i32_0 : i32, i32
  }
  func.func @transform_4(%arg0: i32) -> (i32, i32) {
    %c0_i32 = arith.constant 0 : i32
    %c0_i32_0 = arith.constant 0 : i32
    return %arg0, %c0_i32 : i32, i32
  }
}

module attributes {stable_mosaic.version = 11 : i64} {
  func.func @_mm_kernel(%arg0: i32, %arg1: memref<16x128xbf16, #tpu.memory_space<vmem>>, %arg2: memref<128x128xbf16, #tpu.memory_space<vmem>>, %arg3: memref<1x128xf32, #tpu.memory_space<vmem>>, %arg4: memref<16x128xf32, #tpu.memory_space<vmem>>) attributes {dimension_semantics = [#tpu.dimension_semantics<parallel>], iteration_bounds = array<i64: 1>, scalar_prefetch = 0 : i64, scratch_operands = 0 : i64, tpu.core_type = #tpu.core_type<tc>, window_params = [{transform_indices = @transform_0, window_bounds = array<i64: 16, 128>}, {pipeline_mode = #tpu.pipeline_mode<synchronous>, transform_indices = @transform_1, window_bounds = array<i64: 128, 128>}, {pipeline_mode = #tpu.pipeline_mode<synchronous>, transform_indices = @transform_2, window_bounds = array<i64: 1, 128>}, {transform_indices = @transform_3, window_bounds = array<i64: 16, 128>}]} {
    %c0 = arith.constant 0 : index
    %c0_0 = arith.constant 0 : index
    %0 = vector.load %arg1[%c0, %c0_0] : memref<16x128xbf16, #tpu.memory_space<vmem>>, vector<16x128xbf16>
    %c0_1 = arith.constant 0 : index
    %c0_2 = arith.constant 0 : index
    %1 = vector.load %arg2[%c0_1, %c0_2] : memref<128x128xbf16, #tpu.memory_space<vmem>>, vector<128x128xbf16>
    %cst = arith.constant dense<0.000000e+00> : vector<16x128xf32>
    %2 = tpu.matmul %0, %1, %cst {dimension_numbers = #tpu.dot_dimension_numbers<[1], [0], [0], [1], [0, 0, 1, 1], [], []>} : vector<16x128xbf16>, vector<128x128xbf16>, vector<16x128xf32> -> vector<16x128xf32>
    %c0_3 = arith.constant 0 : index
    %c0_4 = arith.constant 0 : index
    %3 = vector.load %arg3[%c0_3, %c0_4] : memref<1x128xf32, #tpu.memory_space<vmem>>, vector<1x128xf32>
    %4 = vector.broadcast %3 : vector<1x128xf32> to vector<16x128xf32>
    %5 = arith.addf %2, %4 : vector<16x128xf32>
    %c0_5 = arith.constant 0 : index
    %c0_6 = arith.constant 0 : index
    %6 = vector.load %arg4[%c0_5, %c0_6] : memref<16x128xf32, #tpu.memory_space<vmem>>, vector<16x128xf32>
    tpu.vector_store %arg4[%c0_5, %c0_6], %5 {strides = array<i32>} : memref<16x128xf32, #tpu.memory_space<vmem>>, vector<16x128xf32>,
    return
  }
  func.func @transform_0(%arg0: i32) -> (i32, i32) {
    %c0_i32 = arith.constant 0 : i32
    %c0_i32_0 = arith.constant 0 : i32
    return %arg0, %c0_i32 : i32, i32
  }
  func.func @transform_1(%arg0: i32) -> (i32, i32) {
    %c0_i32 = arith.constant 0 : i32
    %c0_i32_0 = arith.constant 0 : i32
    %c0_i32_1 = arith.constant 0 : i32
    return %c0_i32, %c0_i32_0 : i32, i32
  }
  func.func @transform_2(%arg0: i32) -> (i32, i32) {
    %c0_i32 = arith.constant 0 : i32
    %c0_i32_0 = arith.constant 0 : i32
    %c0_i32_1 = arith.constant 0 : i32
    return %c0_i32, %c0_i32_0 : i32, i32
  }
  func.func @transform_3(%arg0: i32) -> (i32, i32) {
    %c0_i32 = arith.constant 0 : i32
    %c0_i32_0 = arith.constant 0 : i32
    return %arg0, %c0_i32 : i32, i32
  }
}

</mosaic_0001>

<bundles_post_ra>
// kernel: a_call__.8
= control target key start
LH: loop header
LB: loop body
LE: loop exit
PB: predicated region body
PF: predicated region fallthrough
CT: control target
= control target key end

     0   :  { %s1114_s1 = inlined_call_operand.vmem [shape: bf16[128,128], index: 1, kind: input, shape index: {}]   ;;  %s1115_s0 = inlined_call_operand.vmem [shape: bf16[256,128], index: 0, kind: input, shape index: {}]   ;;  %s1116_s2 = inlined_call_operand.vmem [shape: f32[1,128], index: 2, kind: input, shape index: {}]   ;;  %s1117_s3 = inlined_call_operand.vmem [shape: bf16[256,128], index: 3, kind: output, shape index: {}]  }
   0x1   :  { %v907_v0 = vld [vmem:[%s1114_s1] sm:$0xff]   ;;  %v908_v1 = vld [vmem:[%s1114_s1 + $0x8] sm:$0xff]   ;;  %v909_v2 = vld [vmem:[%s1114_s1 + $0x10] sm:$0xff]  }
   0x2   :  { %843 = vmatprep.subr.bf16.mxu0 %v907_v0  ;;  %891 = vmatprep.subr.bf16.mxu1 %v907_v0  ;;  %v910_v3 = vld [vmem:[%s1114_s1 + $0x18] sm:$0xff]   ;;  %v915_v4 = vld [vmem:[%s1115_s0] sm:$0xff]   ;;  %v912_v7 = vld [vmem:[%s1114_s1 + $0x28] sm:$0xff]  }
   0x3   :  { %844 = vmatpush3.bf16.msra.mxu0 %v907_v0  ;;  %899 = vmatpush3.bf16.msra.mxu1 %v907_v0  ;;  %v916_v5 = vld [vmem:[%s1115_s0 + $0x40] sm:$0xff]   ;;  %v913_v8 = vld [vmem:[%s1114_s1 + $0x30] sm:$0xff]   ;;  %v914_v9 = vld [vmem:[%s1114_s1 + $0x38] sm:$0xff]  }
   0x4   :  { %845 = vmatprep.subr.bf16.mxu0 %v908_v1  ;;  %892 = vmatprep.subr.bf16.mxu1 %v908_v1  ;;  %v911_v6 = vld [vmem:[%s1114_s1 + $0x20] sm:$0xff]   ;;  %v917_v10 = vld [vmem:[%s1115_s0 + $0x8] sm:$0xff]   ;;  %v919_v12 = vld [vmem:[%s1115_s0 + $0x10] sm:$0xff]  }
   0x5   :  { %859 = vmatprep.mubr.bf16.mxu0 %v915_v4  ;;  %875 = vmatprep.mubr.bf16.mxu1 %v916_v5  ;;  %v918_v11 = vld [vmem:[%s1115_s0 + $0x48] sm:$0xff]   ;;  %v920_v13 = vld [vmem:[%s1115_s0 + $0x50] sm:$0xff]   ;;  %v921_v14 = vld [vmem:[%s1115_s0 + $0x18] sm:$0xff]  }
   0x6   :  { %v922_v15 = vld [vmem:[%s1115_s0 + $0x58] sm:$0xff]   ;;  %v923_v16 = vld [vmem:[%s1115_s0 + $0x20] sm:$0xff]   ;;  %v925_v18 = vld [vmem:[%s1115_s0 + $0x28] sm:$0xff]  }
   0x7   :  { %846 = vmatpush3.bf16.msra.mxu0 %v908_v1  ;;  %900 = vmatpush3.bf16.msra.mxu1 %v908_v1  ;;  %v924_v17 = vld [vmem:[%s1115_s0 + $0x60] sm:$0xff]   ;;  %v926_v19 = vld [vmem:[%s1115_s0 + $0x68] sm:$0xff]   ;;  %v927_v20 = vld [vmem:[%s1115_s0 + $0x30] sm:$0xff]  }
   0x8   :  { %847 = vmatprep.subr.bf16.mxu0 %v909_v2  ;;  %893 = vmatprep.subr.bf16.mxu1 %v909_v2  ;;  %v928_v21 = vld [vmem:[%s1115_s0 + $0x70] sm:$0xff]   ;;  %v929_v22 = vld [vmem:[%s1115_s0 + $0x38] sm:$0xff]   ;;  %v1026_v24 = vld [vmem:[%s1116_s2] ss:$0 sm:$0xff] }
   0x9   :  { %v930_v23 = vld [vmem:[%s1115_s0 + $0x78] sm:$0xff]  }
   0xb   :  { %848 = vmatpush3.bf16.msra.mxu0 %v909_v2  ;;  %901 = vmatpush3.bf16.msra.mxu1 %v909_v2 }
   0xc   :  { %849 = vmatprep.subr.bf16.mxu0 %v910_v3  ;;  %894 = vmatprep.subr.bf16.mxu1 %v910_v3 }
   0xf   :  { %850 = vmatpush3.bf16.msra.mxu0 %v910_v3  ;;  %902 = vmatpush3.bf16.msra.mxu1 %v910_v3 }
  0x10   :  { %851 = vmatprep.subr.bf16.mxu0 %v911_v6  ;;  %895 = vmatprep.subr.bf16.mxu1 %v911_v6 }
  0x13   :  { %852 = vmatpush3.bf16.msra.mxu0 %v911_v6  ;;  %903 = vmatpush3.bf16.msra.mxu1 %v911_v6 }
  0x14   :  { %853 = vmatprep.subr.bf16.mxu0 %v912_v7  ;;  %896 = vmatprep.subr.bf16.mxu1 %v912_v7 }
  0x17   :  { %854 = vmatpush3.bf16.msra.mxu0 %v912_v7  ;;  %904 = vmatpush3.bf16.msra.mxu1 %v912_v7 }
  0x18   :  { %855 = vmatprep.subr.bf16.mxu0 %v913_v8  ;;  %897 = vmatprep.subr.bf16.mxu1 %v913_v8 }
  0x1b   :  { %856 = vmatpush3.bf16.msra.mxu0 %v913_v8  ;;  %905 = vmatpush3.bf16.msra.mxu1 %v913_v8 }
  0x1c   :  { %857 = vmatprep.subr.bf16.mxu0 %v914_v9  ;;  %898 = vmatprep.subr.bf16.mxu1 %v914_v9 }
  0x1f   :  { %858 = vmatpush3.bf16.msra.mxu0 %v914_v9  ;;  %906 = vmatpush3.bf16.msra.mxu1 %v914_v9 }
  0x22   :  { %860 = vmatmul.mubr.bf16.vlgmr.msra.gmra.mrb[0].mxu0 %v917_v10  ;;  %876 = vmatmul.mubr.bf16.vlgmr.msra.gmra.mrb[0].mxu1 %v918_v11 }
  0x23   :  { %863 = vmatprep.mubr.bf16.mxu0 %v919_v12  ;;  %879 = vmatprep.mubr.bf16.mxu1 %v920_v13 }
  0x2a   :  { %864 = vmatmul.mubr.bf16.gmra.mrb[4].mxu0 %v921_v14  ;;  %880 = vmatmul.mubr.bf16.gmra.mrb[4].mxu1 %v922_v15 }
  0x2b   :  { %867 = vmatprep.mubr.bf16.mxu0 %v923_v16  ;;  %883 = vmatprep.mubr.bf16.mxu1 %v924_v17 }
  0x32   :  { %868 = vmatmul.mubr.bf16.gmra.mrb[8].mxu0 %v925_v18  ;;  %884 = vmatmul.mubr.bf16.gmra.mrb[8].mxu1 %v926_v19 }
  0x33   :  { %871 = vmatprep.mubr.bf16.mxu0 %v927_v20  ;;  %887 = vmatprep.mubr.bf16.mxu1 %v928_v21 }
  0x3a   :  { %872 = vmatmul.mubr.bf16.gmra.mrb[12].mxu0 %v929_v22  ;;  %888 = vmatmul.mubr.bf16.gmra.mrb[12].mxu1 %v930_v23 }
  0xf5   :  { %v861_v25 = vpop.f32.mrb[0].mxu0  ;;  %v877_v26 = vpop.f32.mrb[0].mxu1 }
  0xf6   :  { %v257_v27 = vadd.f32 %v861_v25, %v1026_v24  ;;  %v321_v28 = vadd.f32 %v877_v26, %v1026_v24  ;;  %v248_v29 = vpop.f32.mrb[1].mxu0  ;;  %v312_v30 = vpop.f32.mrb[1].mxu1 }
  0xf7   :  { %v249_v31 = vadd.f32 %v1026_v24, %v248_v29  ;;  %v313_v32 = vadd.f32 %v1026_v24, %v312_v30  ;;  %v862_v33 = vpop.f32.mrb[2].mxu0  ;;  %v878_v34 = vpop.f32.mrb[2].mxu1 }
  0xf8   :  { %vm377_vm0 = vcmp.ge.f32.partialorder %v257_v27, 0.0  ;;  %v409_v35 = vmul.f32 0.2, %v257_v27  ;;  %vm393_vm1 = vcmp.ge.f32.partialorder %v321_v28, 0.0  ;;  %v425_v36 = vmul.f32 0.2, %v321_v28 }
  0xf9   :  { %vm375_vm2 = vcmp.ge.f32.partialorder %v249_v31, 0.0  ;;  %v407_v37 = vmul.f32 0.2, %v249_v31  ;;  %vm391_vm3 = vcmp.ge.f32.partialorder %v313_v32, 0.0  ;;  %v423_v38 = vmul.f32 0.2, %v313_v32 }
  0xfa   :  { %v260_v39 = vadd.f32 %v862_v33, %v1026_v24  ;;  %v324_v40 = vadd.f32 %v878_v34, %v1026_v24  ;;  %v251_v41 = vpop.f32.mrb[3].mxu0  ;;  %v315_v42 = vpop.f32.mrb[3].mxu1  ;;  %v441_v43 = vsel %vm377_vm0, %v257_v27, %v409_v35  ;;  %v457_v44 = vsel %vm393_vm1, %v321_v28, %v425_v36 }
  0xfb   :  { %v252_v45 = vadd.f32 %v1026_v24, %v251_v41  ;;  %v316_v46 = vadd.f32 %v1026_v24, %v315_v42  ;;  %v439_v51 = vsel %vm375_vm2, %v249_v31, %v407_v37  ;;  %v455_v52 = vsel %vm391_vm3, %v313_v32, %v423_v38 }
  0xfc   :  { %vm378_vm4 = vcmp.ge.f32.partialorder %v260_v39, 0.0  ;;  %v410_v47 = vmul.f32 0.2, %v260_v39  ;;  %vm394_vm5 = vcmp.ge.f32.partialorder %v324_v40, 0.0  ;;  %v426_v48 = vmul.f32 0.2, %v324_v40 }
  0xfd   :  { %vm376_vm6 = vcmp.ge.f32.partialorder %v252_v45, 0.0  ;;  %v408_v49 = vmul.f32 0.2, %v252_v45  ;;  %vm392_vm7 = vcmp.ge.f32.partialorder %v316_v46, 0.0  ;;  %v424_v50 = vmul.f32 0.2, %v316_v46 }
  0xfe   :  { %v442_v53 = vsel %vm378_vm4, %v260_v39, %v410_v47  ;;  %v458_v54 = vsel %vm394_vm5, %v324_v40, %v426_v48  ;;  %v865_v55 = vpop.f32.mrb[4].mxu0  ;;  %v881_v56 = vpop.f32.mrb[4].mxu1 }
  0xff   :  { %v732_v57 = vpack.c.bf16 %v442_v53, %v441_v43  ;;  %v772_v58 = vpack.c.bf16 %v458_v54, %v457_v44  ;;  %v440_v59 = vsel %vm376_vm6, %v252_v45, %v408_v49  ;;  %v456_v60 = vsel %vm392_vm7, %v316_v46, %v424_v50  ;;  %v264_v61 = vpop.f32.mrb[5].mxu0  ;;  %v328_v62 = vpop.f32.mrb[5].mxu1 }
 0x100   :  { %v727_v63 = vpack.c.bf16 %v440_v59, %v439_v51  ;;  %v767_v0 = vpack.c.bf16 %v456_v60, %v455_v52  ;;  %v273_v1 = vadd.f32 %v865_v55, %v1026_v24  ;;  %v337_v2 = vadd.f32 %v881_v56, %v1026_v24  ;;  %v866_v3 = vpop.f32.mrb[6].mxu0  ;;  %v882_v4 = vpop.f32.mrb[6].mxu1 }
 0x101   :  { %804 = vst [vmem:[%s1117_s3 + $0x8] sm:$0xff] %v732_v57   ;;  %812 = vst [vmem:[%s1117_s3 + $0x48] sm:$0xff] %v772_v58   ;;  %v265_v5 = vadd.f32 %v1026_v24, %v264_v61  ;;  %v329_v6 = vadd.f32 %v1026_v24, %v328_v62  ;;  %v276_v7 = vadd.f32 %v866_v3, %v1026_v24  ;;  %v267_v9 = vpop.f32.mrb[7].mxu0  ;;  %v331_v10 = vpop.f32.mrb[7].mxu1 }
 0x102   :  { %v340_v8 = vadd.f32 %v882_v4, %v1026_v24  ;;  %728 = vst [vmem:[%s1117_s3] sm:$0xff] %v727_v63   ;;  %811 = vst [vmem:[%s1117_s3 + $0x40] sm:$0xff] %v767_v0   ;;  %vm381_vm8 = vcmp.ge.f32.partialorder %v273_v1, 0.0  ;;  %v413_v11 = vmul.f32 0.2, %v273_v1  ;;  %vm397_vm9 = vcmp.ge.f32.partialorder %v337_v2, 0.0 }
 0x103   :  { %v429_v12 = vmul.f32 0.2, %v337_v2  ;;  %vm379_vm10 = vcmp.ge.f32.partialorder %v265_v5, 0.0  ;;  %v411_v13 = vmul.f32 0.2, %v265_v5  ;;  %vm395_vm11 = vcmp.ge.f32.partialorder %v329_v6, 0.0 }
 0x104   :  { %v445_v14 = vsel %vm381_vm8, %v273_v1, %v413_v11  ;;  %v427_v15 = vmul.f32 0.2, %v329_v6  ;;  %vm382_vm12 = vcmp.ge.f32.partialorder %v276_v7, 0.0  ;;  %v414_v16 = vmul.f32 0.2, %v276_v7 }
 0x105   :  { %v461_v17 = vsel %vm397_vm9, %v337_v2, %v429_v12  ;;  %v443_v18 = vsel %vm379_vm10, %v265_v5, %v411_v13  ;;  %vm398_vm13 = vcmp.ge.f32.partialorder %v340_v8, 0.0  ;;  %v430_v19 = vmul.f32 0.2, %v340_v8  ;;  %v869_v20 = vpop.f32.mrb[8].mxu0  ;;  %v885_v21 = vpop.f32.mrb[8].mxu1 }
 0x106   :  { %v446_v22 = vsel %vm382_vm12, %v276_v7, %v414_v16  ;;  %v268_v23 = vadd.f32 %v1026_v24, %v267_v9  ;;  %v332_v25 = vadd.f32 %v1026_v24, %v331_v10  ;;  %v289_v26 = vadd.f32 %v869_v20, %v1026_v24  ;;  %v280_v27 = vpop.f32.mrb[9].mxu0  ;;  %v344_v28 = vpop.f32.mrb[9].mxu1 }
 0x107   :  { %v742_v29 = vpack.c.bf16 %v446_v22, %v445_v14  ;;  %v462_v30 = vsel %vm398_vm13, %v340_v8, %v430_v19  ;;  %v353_v31 = vadd.f32 %v885_v21, %v1026_v24  ;;  %v281_v32 = vadd.f32 %v1026_v24, %v280_v27  ;;  %v870_v33 = vpop.f32.mrb[10].mxu0  ;;  %v886_v34 = vpop.f32.mrb[10].mxu1 }
 0x108   :  { %v782_v35 = vpack.c.bf16 %v462_v30, %v461_v17  ;;  %vm380_vm14 = vcmp.ge.f32.partialorder %v268_v23, 0.0  ;;  %v412_v36 = vmul.f32 0.2, %v268_v23  ;;  %vm396_vm15 = vcmp.ge.f32.partialorder %v332_v25, 0.0  ;;  %v283_v37 = vpop.f32.mrb[11].mxu0  ;;  %v347_v38 = vpop.f32.mrb[11].mxu1 }
 0x109   :  { %806 = vst [vmem:[%s1117_s3 + $0x18] sm:$0xff] %v742_v29   ;;  %v428_v39 = vmul.f32 0.2, %v332_v25  ;;  %vm385_vm0 = vcmp.ge.f32.partialorder %v289_v26, 0.0  ;;  %v417_v40 = vmul.f32 0.2, %v289_v26  ;;  %v459_v41 = vsel %vm395_vm11, %v329_v6, %v427_v15 }
 0x10a   :  { %vm401_vm1 = vcmp.ge.f32.partialorder %v353_v31, 0.0  ;;  %814 = vst [vmem:[%s1117_s3 + $0x58] sm:$0xff] %v782_v35   ;;  %v444_v42 = vsel %vm380_vm14, %v268_v23, %v412_v36  ;;  %v433_v43 = vmul.f32 0.2, %v353_v31  ;;  %vm383_vm2 = vcmp.ge.f32.partialorder %v281_v32, 0.0 }
 0x10b   :  { %v737_v44 = vpack.c.bf16 %v444_v42, %v443_v18  ;;  %v460_v45 = vsel %vm396_vm15, %v332_v25, %v428_v39  ;;  %v415_v46 = vmul.f32 0.2, %v281_v32  ;;  %v345_v47 = vadd.f32 %v1026_v24, %v344_v28 }
 0x10c   :  { %v777_v48 = vpack.c.bf16 %v460_v45, %v459_v41  ;;  %v449_v49 = vsel %vm385_vm0, %v289_v26, %v417_v40  ;;  %v465_v50 = vsel %vm401_vm1, %v353_v31, %v433_v43  ;;  %v292_v51 = vadd.f32 %v870_v33, %v1026_v24 }
 0x10d   :  { %805 = vst [vmem:[%s1117_s3 + $0x10] sm:$0xff] %v737_v44   ;;  %vm399_vm3 = vcmp.ge.f32.partialorder %v345_v47, 0.0  ;;  %v431_v52 = vmul.f32 0.2, %v345_v47  ;;  %v356_v53 = vadd.f32 %v886_v34, %v1026_v24  ;;  %v284_v54 = vadd.f32 %v1026_v24, %v283_v37  ;;  %v873_v55 = vpop.f32.mrb[12].mxu0  ;;  %v889_v56 = vpop.f32.mrb[12].mxu1 }
 0x10e   :  { %813 = vst [vmem:[%s1117_s3 + $0x50] sm:$0xff] %v777_v48   ;;  %vm386_vm4 = vcmp.ge.f32.partialorder %v292_v51, 0.0  ;;  %v418_v57 = vmul.f32 0.2, %v292_v51  ;;  %v348_v58 = vadd.f32 %v1026_v24, %v347_v38  ;;  %v305_v59 = vadd.f32 %v873_v55, %v1026_v24  ;;  %v296_v60 = vpop.f32.mrb[13].mxu0  ;;  %v360_v61 = vpop.f32.mrb[13].mxu1 }
 0x10f   :  { %v447_v62 = vsel %vm383_vm2, %v281_v32, %v415_v46  ;;  %vm402_vm5 = vcmp.ge.f32.partialorder %v356_v53, 0.0  ;;  %v434_v63 = vmul.f32 0.2, %v356_v53  ;;  %vm384_vm6 = vcmp.ge.f32.partialorder %v284_v54, 0.0  ;;  %v874_v0 = vpop.f32.mrb[14].mxu0  ;;  %v890_v1 = vpop.f32.mrb[14].mxu1 }
 0x110   :  { %v450_v2 = vsel %vm386_vm4, %v292_v51, %v418_v57  ;;  %v416_v3 = vmul.f32 0.2, %v284_v54  ;;  %vm400_vm7 = vcmp.ge.f32.partialorder %v348_v58, 0.0  ;;  %v432_v4 = vmul.f32 0.2, %v348_v58  ;;  %v299_v5 = vpop.f32.mrb[15].mxu0 }
 0x111   :  { %v463_v6 = vsel %vm399_vm3, %v345_v47, %v431_v52  ;;  %v752_v7 = vpack.c.bf16 %v450_v2, %v449_v49  ;;  %v466_v8 = vsel %vm402_vm5, %v356_v53, %v434_v63  ;;  %v421_v9 = vmul.f32 0.2, %v305_v59  ;;  %v363_v10 = vpop.f32.mrb[15].mxu1 }
 0x112   :  { %v792_v11 = vpack.c.bf16 %v466_v8, %v465_v50  ;;  %v448_v12 = vsel %vm384_vm6, %v284_v54, %v416_v3  ;;  %v464_v13 = vsel %vm400_vm7, %v348_v58, %v432_v4  ;;  %v369_v14 = vadd.f32 %v889_v56, %v1026_v24 }
 0x113   :  { %808 = vst [vmem:[%s1117_s3 + $0x28] sm:$0xff] %v752_v7   ;;  %v747_v15 = vpack.c.bf16 %v448_v12, %v447_v62  ;;  %v787_v16 = vpack.c.bf16 %v464_v13, %v463_v6  ;;  %vm389_vm8 = vcmp.ge.f32.partialorder %v305_v59, 0.0  ;;  %v297_v17 = vadd.f32 %v1026_v24, %v296_v60 }
 0x114   :  { %816 = vst [vmem:[%s1117_s3 + $0x68] sm:$0xff] %v792_v11   ;;  %vm405_vm9 = vcmp.ge.f32.partialorder %v369_v14, 0.0  ;;  %v437_v18 = vmul.f32 0.2, %v369_v14  ;;  %v361_v19 = vadd.f32 %v1026_v24, %v360_v61  ;;  %v308_v20 = vadd.f32 %v874_v0, %v1026_v24 }
 0x115   :  { %807 = vst [vmem:[%s1117_s3 + $0x20] sm:$0xff] %v747_v15   ;;  %815 = vst [vmem:[%s1117_s3 + $0x60] sm:$0xff] %v787_v16   ;;  %v419_v21 = vmul.f32 0.2, %v297_v17  ;;  %v372_v22 = vadd.f32 %v890_v1, %v1026_v24  ;;  %v300_v23 = vadd.f32 %v1026_v24, %v299_v5  ;;  %v453_v25 = vsel %vm389_vm8, %v305_v59, %v421_v9 }
 0x116   :  { %vm387_vm10 = vcmp.ge.f32.partialorder %v297_v17, 0.0  ;;  %vm390_vm11 = vcmp.ge.f32.partialorder %v308_v20, 0.0  ;;  %v469_v26 = vsel %vm405_vm9, %v369_v14, %v437_v18  ;;  %v422_v27 = vmul.f32 0.2, %v308_v20 }
 0x117   :  { %vm406_vm12 = vcmp.ge.f32.partialorder %v372_v22, 0.0  ;;  %v438_v28 = vmul.f32 0.2, %v372_v22  ;;  %vm403_vm13 = vcmp.ge.f32.partialorder %v361_v19, 0.0  ;;  %vm388_vm14 = vcmp.ge.f32.partialorder %v300_v23, 0.0 }
 0x118   :  { %v420_v29 = vmul.f32 0.2, %v300_v23  ;;  %v364_v30 = vadd.f32 %v1026_v24, %v363_v10  ;;  %v451_v31 = vsel %vm387_vm10, %v297_v17, %v419_v21  ;;  %v435_v32 = vmul.f32 0.2, %v361_v19 }
 0x119   :  { %v454_v33 = vsel %vm390_vm11, %v308_v20, %v422_v27  ;;  %v470_v34 = vsel %vm406_vm12, %v372_v22, %v438_v28 }
 0x11a   :  { %v762_v35 = vpack.c.bf16 %v454_v33, %v453_v25  ;;  %v802_v36 = vpack.c.bf16 %v470_v34, %v469_v26  ;;  %v452_v37 = vsel %vm388_vm14, %v300_v23, %v420_v29  ;;  %vm404_vm15 = vcmp.ge.f32.partialorder %v364_v30, 0.0 }
 0x11b   :  { %v757_v38 = vpack.c.bf16 %v452_v37, %v451_v31  ;;  %v436_v39 = vmul.f32 0.2, %v364_v30  ;;  %v467_v24 = vsel %vm403_vm13, %v361_v19, %v435_v32 }
 0x11c   :  { %810 = vst [vmem:[%s1117_s3 + $0x38] sm:$0xff] %v762_v35   ;;  %818 = vst [vmem:[%s1117_s3 + $0x78] sm:$0xff] %v802_v36  }
 0x11d   :  { %809 = vst [vmem:[%s1117_s3 + $0x30] sm:$0xff] %v757_v38   ;;  %v468_v40 = vsel %vm404_vm15, %v364_v30, %v436_v39 }
 0x11e   :  { %v797_v41 = vpack.c.bf16 %v468_v40, %v467_v24 }
 0x120   :  { %817 = vst [vmem:[%s1117_s3 + $0x70] sm:$0xff] %v797_v41  }

// kernel: a_call__.9
= control target key start
LH: loop header
LB: loop body
LE: loop exit
PB: predicated region body
PF: predicated region fallthrough
CT: control target
= control target key end

     0   :  { %s3511_s1 = inlined_call_operand.vmem [shape: bf16[1536,256], index: 1, kind: input, shape index: {}]   ;;  %s3512_s0 = inlined_call_operand.vmem [shape: bf16[64,1536], index: 0, kind: input, shape index: {}]   ;;  %s3513_s2 = inlined_call_operand.vmem [shape: f32[1,256], index: 2, kind: input, shape index: {}]   ;;  %s3514_s3 = inlined_call_operand.vmem [shape: bf16[64,256], index: 3, kind: output, shape index: {}]  }
   0x1   :  { %v2364_v0 = vld [vmem:[%s3511_s1 + $0x4] ss:$8 sps:$4 sm:$0xff]   ;;  %v2368_v2 = vld [vmem:[%s3511_s1] ss:$8 sps:$4 sm:$0xff]   ;;  %v2370_v4 = vld [vmem:[%s3511_s1 + $0x14] ss:$8 sps:$4 sm:$0xff]  }
   0x2   :  { %v2366_v1 = vld [vmem:[%s3511_s1 + $0x304] ss:$8 sps:$4 sm:$0xff]   ;;  %1466 = vmatprep.subr.bf16.mxu1 %v2364_v0  ;;  %v2369_v3 = vld [vmem:[%s3511_s1 + $0x300] ss:$8 sps:$4 sm:$0xff]   ;;  %v2372_v5 = vld [vmem:[%s3511_s1 + $0x314] ss:$8 sps:$4 sm:$0xff]  }
   0x3   :  { %1685 = vmatprep.subr.bf16.mxu0 %v2366_v1  ;;  %1467 = vmatpush1.bf16.msra.mxu1 %v2368_v2  ;;  %v2374_v6 = vld [vmem:[%s3511_s1 + $0x10] ss:$8 sps:$4 sm:$0xff]   ;;  %v2376_v8 = vld [vmem:[%s3511_s1 + $0x24] ss:$8 sps:$4 sm:$0xff]   ;;  %v2380_v10 = vld [vmem:[%s3511_s1 + $0x20] ss:$8 sps:$4 sm:$0xff]  }
   0x4   :  { %1686 = vmatpush1.bf16.msra.mxu0 %v2369_v3  ;;  %1468 = vmatprep.subr.bf16.mxu1 %v2370_v4  ;;  %v2375_v7 = vld [vmem:[%s3511_s1 + $0x310] ss:$8 sps:$4 sm:$0xff]   ;;  %v2378_v9 = vld [vmem:[%s3511_s1 + $0x324] ss:$8 sps:$4 sm:$0xff]   ;;  %v2381_v11 = vld [vmem:[%s3511_s1 + $0x320] ss:$8 sps:$4 sm:$0xff]  }
   0x5   :  { %1687 = vmatprep.subr.bf16.mxu0 %v2372_v5  ;;  %v2382_v12 = vld [vmem:[%s3511_s1 + $0x34] ss:$8 sps:$4 sm:$0xff]   ;;  %v2386_v14 = vld [vmem:[%s3511_s1 + $0x30] ss:$8 sps:$4 sm:$0xff]   ;;  %v2388_v16 = vld [vmem:[%s3511_s1 + $0x44] ss:$8 sps:$4 sm:$0xff]  }
   0x6   :  { %v2384_v13 = vld [vmem:[%s3511_s1 + $0x334] ss:$8 sps:$4 sm:$0xff]   ;;  %v2387_v15 = vld [vmem:[%s3511_s1 + $0x330] ss:$8 sps:$4 sm:$0xff]   ;;  %v2390_v17 = vld [vmem:[%s3511_s1 + $0x344] ss:$8 sps:$4 sm:$0xff]  }
   0x7   :  { %1469 = vmatpush1.bf16.msra.mxu1 %v2374_v6  ;;  %v2392_v18 = vld [vmem:[%s3511_s1 + $0x40] ss:$8 sps:$4 sm:$0xff]   ;;  %v2394_v20 = vld [vmem:[%s3511_s1 + $0x54] ss:$8 sps:$4 sm:$0xff]   ;;  %v2398_v22 = vld [vmem:[%s3511_s1 + $0x50] ss:$8 sps:$4 sm:$0xff]  }
   0x8   :  { %1688 = vmatpush1.bf16.msra.mxu0 %v2375_v7  ;;  %1470 = vmatprep.subr.bf16.mxu1 %v2376_v8  ;;  %v2393_v19 = vld [vmem:[%s3511_s1 + $0x340] ss:$8 sps:$4 sm:$0xff]   ;;  %v2396_v21 = vld [vmem:[%s3511_s1 + $0x354] ss:$8 sps:$4 sm:$0xff]   ;;  %v2399_v23 = vld [vmem:[%s3511_s1 + $0x350] ss:$8 sps:$4 sm:$0xff]  }
   0x9   :  { %1689 = vmatprep.subr.bf16.mxu0 %v2378_v9  ;;  %v2400_v24 = vld [vmem:[%s3511_s1 + $0x64] ss:$8 sps:$4 sm:$0xff]   ;;  %v2404_v26 = vld [vmem:[%s3511_s1 + $0x60] ss:$8 sps:$4 sm:$0xff]   ;;  %v2406_v28 = vld [vmem:[%s3511_s1 + $0x74] ss:$8 sps:$4 sm:$0xff]  }
   0xa   :  { %v2402_v25 = vld [vmem:[%s3511_s1 + $0x364] ss:$8 sps:$4 sm:$0xff]   ;;  %v2405_v27 = vld [vmem:[%s3511_s1 + $0x360] ss:$8 sps:$4 sm:$0xff]   ;;  %v2408_v29 = vld [vmem:[%s3511_s1 + $0x374] ss:$8 sps:$4 sm:$0xff]  }
   0xb   :  { %1471 = vmatpush1.bf16.msra.mxu1 %v2380_v10  ;;  %v2410_v30 = vld [vmem:[%s3511_s1 + $0x70] ss:$8 sps:$4 sm:$0xff]   ;;  %v2412_v32 = vld [vmem:[%s3511_s1 + $0x84] ss:$8 sps:$4 sm:$0xff]   ;;  %v2416_v34 = vld [vmem:[%s3511_s1 + $0x80] ss:$8 sps:$4 sm:$0xff]  }
   0xc   :  { %1690 = vmatpush1.bf16.msra.mxu0 %v2381_v11  ;;  %1472 = vmatprep.subr.bf16.mxu1 %v2382_v12  ;;  %v2411_v31 = vld [vmem:[%s3511_s1 + $0x370] ss:$8 sps:$4 sm:$0xff]   ;;  %v2414_v33 = vld [vmem:[%s3511_s1 + $0x384] ss:$8 sps:$4 sm:$0xff]   ;;  %v2417_v35 = vld [vmem:[%s3511_s1 + $0x380] ss:$8 sps:$4 sm:$0xff]  }
   0xd   :  { %1691 = vmatprep.subr.bf16.mxu0 %v2384_v13  ;;  %v2418_v36 = vld [vmem:[%s3511_s1 + $0x94] ss:$8 sps:$4 sm:$0xff]   ;;  %v2422_v38 = vld [vmem:[%s3511_s1 + $0x90] ss:$8 sps:$4 sm:$0xff]   ;;  %v2424_v40 = vld [vmem:[%s3511_s1 + $0xa4] ss:$8 sps:$4 sm:$0xff]  }
   0xe   :  { %v2420_v37 = vld [vmem:[%s3511_s1 + $0x394] ss:$8 sps:$4 sm:$0xff]   ;;  %v2423_v39 = vld [vmem:[%s3511_s1 + $0x390] ss:$8 sps:$4 sm:$0xff]   ;;  %v2426_v41 = vld [vmem:[%s3511_s1 + $0x3a4] ss:$8 sps:$4 sm:$0xff]  }
   0xf   :  { %1473 = vmatpush1.bf16.msra.mxu1 %v2386_v14  ;;  %v2428_v42 = vld [vmem:[%s3511_s1 + $0xa0] ss:$8 sps:$4 sm:$0xff]   ;;  %v2430_v44 = vld [vmem:[%s3511_s1 + $0xb4] ss:$8 sps:$4 sm:$0xff]   ;;  %v2434_v46 = vld [vmem:[%s3511_s1 + $0xb0] ss:$8 sps:$4 sm:$0xff]  }
  0x10   :  { %1692 = vmatpush1.bf16.msra.mxu0 %v2387_v15  ;;  %1474 = vmatprep.subr.bf16.mxu1 %v2388_v16  ;;  %v2429_v43 = vld [vmem:[%s3511_s1 + $0x3a0] ss:$8 sps:$4 sm:$0xff]   ;;  %v2432_v45 = vld [vmem:[%s3511_s1 + $0x3b4] ss:$8 sps:$4 sm:$0xff]   ;;  %v2435_v47 = vld [vmem:[%s3511_s1 + $0x3b0] ss:$8 sps:$4 sm:$0xff]  }
  0x11   :  { %1693 = vmatprep.subr.bf16.mxu0 %v2390_v17  ;;  %v2462_v48 = vld [vmem:[%s3512_s0 + $0x4] ss:$48 sps:$4 sm:$0xff]   ;;  %v2468_v51 = vld [vmem:[%s3512_s0 + $0x1c] ss:$48 sps:$4 sm:$0xff]   ;;  %v2440_v52 = vld [vmem:[%s3511_s1 + $0xc0] ss:$8 sps:$4 sm:$0xff]  }
  0x12   :  { %v2436_v49 = vld [vmem:[%s3511_s1 + $0xc4] ss:$8 sps:$4 sm:$0xff]   ;;  %1498 = vmatprep.mubr.bf16.mxu1 %v2462_v48  ;;  %v2441_v53 = vld [vmem:[%s3511_s1 + $0x3c0] ss:$8 sps:$4 sm:$0xff]   ;;  %v2442_v54 = vld [vmem:[%s3511_s1 + $0xd4] ss:$8 sps:$4 sm:$0xff]   ;;  %1717 = vmatprep.mubr.bf16.mxu0 %v2468_v51 }
  0x13   :  { %1475 = vmatpush1.bf16.msra.mxu1 %v2392_v18  ;;  %v2438_v50 = vld [vmem:[%s3511_s1 + $0x3c4] ss:$8 sps:$4 sm:$0xff]   ;;  %v2444_v55 = vld [vmem:[%s3511_s1 + $0x3d4] ss:$8 sps:$4 sm:$0xff]   ;;  %v2446_v56 = vld [vmem:[%s3511_s1 + $0xd0] ss:$8 sps:$4 sm:$0xff]  }
  0x14   :  { %1694 = vmatpush1.bf16.msra.mxu0 %v2393_v19  ;;  %1476 = vmatprep.subr.bf16.mxu1 %v2394_v20  ;;  %v2447_v57 = vld [vmem:[%s3511_s1 + $0x3d0] ss:$8 sps:$4 sm:$0xff]   ;;  %v2448_v58 = vld [vmem:[%s3511_s1 + $0xe4] ss:$8 sps:$4 sm:$0xff]   ;;  %v2452_v60 = vld [vmem:[%s3511_s1 + $0xe0] ss:$8 sps:$4 sm:$0xff]  }
  0x15   :  { %1695 = vmatprep.subr.bf16.mxu0 %v2396_v21  ;;  %v2450_v59 = vld [vmem:[%s3511_s1 + $0x3e4] ss:$8 sps:$4 sm:$0xff]   ;;  %v2453_v61 = vld [vmem:[%s3511_s1 + $0x3e0] ss:$8 sps:$4 sm:$0xff]   ;;  %v2454_v62 = vld [vmem:[%s3511_s1 + $0xf4] ss:$8 sps:$4 sm:$0xff]  }
  0x16   :  { %v2456_v63 = vld [vmem:[%s3511_s1 + $0x3f4] ss:$8 sps:$4 sm:$0xff]   ;;  %v2458_v0 = vld [vmem:[%s3511_s1 + $0xf0] ss:$8 sps:$4 sm:$0xff]   ;;  %v2465_v2 = vld [vmem:[%s3511_s1 + $0x104] ss:$8 sps:$4 sm:$0xff]  }
  0x17   :  { %1477 = vmatpush1.bf16.msra.mxu1 %v2398_v22  ;;  %v2459_v1 = vld [vmem:[%s3511_s1 + $0x3f0] ss:$8 sps:$4 sm:$0xff]   ;;  %v2471_v3 = vld [vmem:[%s3511_s1 + $0x404] ss:$8 sps:$4 sm:$0xff]   ;;  %v2463_v5 = vld [vmem:[%s3511_s1 + $0x100] ss:$8 sps:$4 sm:$0xff]  }
  0x18   :  { %1696 = vmatpush1.bf16.msra.mxu0 %v2399_v23  ;;  %1478 = vmatprep.subr.bf16.mxu1 %v2400_v24  ;;  %v2460_v4 = vld [vmem:[%s3512_s0] ss:$48 sps:$4 sm:$0xff]   ;;  %v2466_v6 = vld [vmem:[%s3512_s0 + $0x18] ss:$48 sps:$4 sm:$0xff]   ;;  %v2474_v8 = vld [vmem:[%s3511_s1 + $0x114] ss:$8 sps:$4 sm:$0xff]  }
  0x19   :  { %1697 = vmatprep.subr.bf16.mxu0 %v2402_v25  ;;  %v2469_v7 = vld [vmem:[%s3511_s1 + $0x400] ss:$8 sps:$4 sm:$0xff]   ;;  %v2477_v9 = vld [vmem:[%s3511_s1 + $0x414] ss:$8 sps:$4 sm:$0xff]   ;;  %v2472_v10 = vld [vmem:[%s3511_s1 + $0x110] ss:$8 sps:$4 sm:$0xff]  }
  0x1a   :  { %v2475_v11 = vld [vmem:[%s3511_s1 + $0x410] ss:$8 sps:$4 sm:$0xff]   ;;  %v2480_v12 = vld [vmem:[%s3511_s1 + $0x124] ss:$8 sps:$4 sm:$0xff]   ;;  %v2478_v14 = vld [vmem:[%s3511_s1 + $0x120] ss:$8 sps:$4 sm:$0xff]  }
  0x1b   :  { %1479 = vmatpush1.bf16.msra.mxu1 %v2404_v26  ;;  %v2483_v13 = vld [vmem:[%s3511_s1 + $0x424] ss:$8 sps:$4 sm:$0xff]   ;;  %v2481_v15 = vld [vmem:[%s3511_s1 + $0x420] ss:$8 sps:$4 sm:$0xff]   ;;  %v2486_v16 = vld [vmem:[%s3511_s1 + $0x134] ss:$8 sps:$4 sm:$0xff]  }
  0x1c   :  { %1698 = vmatpush1.bf16.msra.mxu0 %v2405_v27  ;;  %1480 = vmatprep.subr.bf16.mxu1 %v2406_v28  ;;  %v2526_v17 = vld [vmem:[%s3512_s0 + $0x64] ss:$48 sps:$4 sm:$0xff]   ;;  %v2484_v19 = vld [vmem:[%s3511_s1 + $0x130] ss:$8 sps:$4 sm:$0xff]   ;;  %v2531_v21 = vld [vmem:[%s3512_s0 + $0x7c] ss:$48 sps:$4 sm:$0xff]  }
  0x1d   :  { %1699 = vmatprep.subr.bf16.mxu0 %v2408_v29  ;;  %v2489_v18 = vld [vmem:[%s3511_s1 + $0x434] ss:$8 sps:$4 sm:$0xff]   ;;  %v2487_v20 = vld [vmem:[%s3511_s1 + $0x430] ss:$8 sps:$4 sm:$0xff]   ;;  %v2492_v22 = vld [vmem:[%s3511_s1 + $0x144] ss:$8 sps:$4 sm:$0xff]  }
  0x1e   :  { %v2495_v23 = vld [vmem:[%s3511_s1 + $0x444] ss:$8 sps:$4 sm:$0xff]   ;;  %v2536_v24 = vld [vmem:[%s3512_s0 + $0x60] ss:$48 sps:$4 sm:$0xff]   ;;  %v2537_v25 = vld [vmem:[%s3512_s0 + $0x78] ss:$48 sps:$4 sm:$0xff]  }
  0x1f   :  { %1481 = vmatpush1.bf16.msra.mxu1 %v2410_v30  ;;  %v2490_v26 = vld [vmem:[%s3511_s1 + $0x140] ss:$8 sps:$4 sm:$0xff]   ;;  %v2498_v28 = vld [vmem:[%s3511_s1 + $0x154] ss:$8 sps:$4 sm:$0xff]  }
  0x20   :  { %1700 = vmatpush1.bf16.msra.mxu0 %v2411_v31  ;;  %1482 = vmatprep.subr.bf16.mxu1 %v2412_v32  ;;  %v2493_v27 = vld [vmem:[%s3511_s1 + $0x440] ss:$8 sps:$4 sm:$0xff]   ;;  %v2544_v29 = vld [vmem:[%s3512_s0 + $0xc4] ss:$48 sps:$4 sm:$0xff]   ;;  %v2496_v31 = vld [vmem:[%s3511_s1 + $0x150] ss:$8 sps:$4 sm:$0xff]  }
  0x21   :  { %1701 = vmatprep.subr.bf16.mxu0 %v2414_v33  ;;  %v2501_v30 = vld [vmem:[%s3511_s1 + $0x454] ss:$8 sps:$4 sm:$0xff]   ;;  %v2499_v32 = vld [vmem:[%s3511_s1 + $0x450] ss:$8 sps:$4 sm:$0xff]   ;;  %v2517_v51 = vld [vmem:[%s3511_s1 + $0x480] ss:$8 sps:$4 sm:$0xff]  }
  0x22   :  { %v2549_v33 = vld [vmem:[%s3512_s0 + $0xdc] ss:$48 sps:$4 sm:$0xff]   ;;  %v2572_v48 = vld [vmem:[%s3512_s0 + $0x120] ss:$48 sps:$4 sm:$0xff]  }
  0x23   :  { %1483 = vmatpush1.bf16.msra.mxu1 %v2416_v34  ;;  %v2504_v34 = vld [vmem:[%s3511_s1 + $0x164] ss:$8 sps:$4 sm:$0xff]  }
  0x24   :  { %1702 = vmatpush1.bf16.msra.mxu0 %v2417_v35  ;;  %1484 = vmatprep.subr.bf16.mxu1 %v2418_v36  ;;  %v2507_v35 = vld [vmem:[%s3511_s1 + $0x464] ss:$8 sps:$4 sm:$0xff]   ;;  %v2554_v36 = vld [vmem:[%s3512_s0 + $0xc0] ss:$48 sps:$4 sm:$0xff]  }
  0x25   :  { %1703 = vmatprep.subr.bf16.mxu0 %v2420_v37  ;;  %v2555_v37 = vld [vmem:[%s3512_s0 + $0xd8] ss:$48 sps:$4 sm:$0xff]  }
  0x27   :  { %1485 = vmatpush1.bf16.msra.mxu1 %v2422_v38  ;;  %v2502_v38 = vld [vmem:[%s3511_s1 + $0x160] ss:$8 sps:$4 sm:$0xff]  }
  0x28   :  { %1704 = vmatpush1.bf16.msra.mxu0 %v2423_v39  ;;  %1486 = vmatprep.subr.bf16.mxu1 %v2424_v40  ;;  %v2505_v39 = vld [vmem:[%s3511_s1 + $0x460] ss:$8 sps:$4 sm:$0xff]   ;;  %v2510_v40 = vld [vmem:[%s3511_s1 + $0x174] ss:$8 sps:$4 sm:$0xff]  }
  0x29   :  { %1705 = vmatprep.subr.bf16.mxu0 %v2426_v41  ;;  %v2562_v41 = vld [vmem:[%s3512_s0 + $0x124] ss:$48 sps:$4 sm:$0xff]  }
  0x2b   :  { %1487 = vmatpush1.bf16.msra.mxu1 %v2428_v42  ;;  %v2513_v42 = vld [vmem:[%s3511_s1 + $0x474] ss:$8 sps:$4 sm:$0xff]  }
  0x2c   :  { %1706 = vmatpush1.bf16.msra.mxu0 %v2429_v43  ;;  %1488 = vmatprep.subr.bf16.mxu1 %v2430_v44  ;;  %v2508_v43 = vld [vmem:[%s3511_s1 + $0x170] ss:$8 sps:$4 sm:$0xff]  }
  0x2d   :  { %1707 = vmatprep.subr.bf16.mxu0 %v2432_v45  ;;  %v2511_v44 = vld [vmem:[%s3511_s1 + $0x470] ss:$8 sps:$4 sm:$0xff]   ;;  %v2567_v45 = vld [vmem:[%s3512_s0 + $0x13c] ss:$48 sps:$4 sm:$0xff]  }
  0x2f   :  { %1489 = vmatpush1.bf16.msra.mxu1 %v2434_v46  ;;  %v2516_v46 = vld [vmem:[%s3511_s1 + $0x184] ss:$8 sps:$4 sm:$0xff]  }
  0x30   :  { %1708 = vmatpush1.bf16.msra.mxu0 %v2435_v47  ;;  %1490 = vmatprep.subr.bf16.mxu1 %v2436_v49  ;;  %v2519_v47 = vld [vmem:[%s3511_s1 + $0x484] ss:$8 sps:$4 sm:$0xff]   ;;  %v2573_v49 = vld [vmem:[%s3512_s0 + $0x138] ss:$48 sps:$4 sm:$0xff]  }
  0x31   :  { %1709 = vmatprep.subr.bf16.mxu0 %v2438_v50  ;;  %v2514_v50 = vld [vmem:[%s3511_s1 + $0x180] ss:$8 sps:$4 sm:$0xff]  }
  0x33   :  { %1491 = vmatpush1.bf16.msra.mxu1 %v2440_v52  ;;  %v2522_v52 = vld [vmem:[%s3511_s1 + $0x194] ss:$8 sps:$4 sm:$0xff]  }
  0x34   :  { %1710 = vmatpush1.bf16.msra.mxu0 %v2441_v53  ;;  %1492 = vmatprep.subr.bf16.mxu1 %v2442_v54  ;;  %v2525_v53 = vld [vmem:[%s3511_s1 + $0x494] ss:$8 sps:$4 sm:$0xff]  }
  0x35   :  { %1711 = vmatprep.subr.bf16.mxu0 %v2444_v55  ;;  %v2582_v54 = vld [vmem:[%s3512_s0 + $0xc] ss:$48 sps:$4 sm:$0xff]   ;;  %v2520_v55 = vld [vmem:[%s3511_s1 + $0x190] ss:$8 sps:$4 sm:$0xff]  }
  0x37   :  { %1493 = vmatpush1.bf16.msra.mxu1 %v2446_v56  ;;  %v2523_v56 = vld [vmem:[%s3511_s1 + $0x490] ss:$8 sps:$4 sm:$0xff]  }
  0x38   :  { %1712 = vmatpush1.bf16.msra.mxu0 %v2447_v57  ;;  %1494 = vmatprep.subr.bf16.mxu1 %v2448_v58  ;;  %v2588_v57 = vld [vmem:[%s3512_s0 + $0x24] ss:$48 sps:$4 sm:$0xff]  }
  0x39   :  { %1713 = vmatprep.subr.bf16.mxu0 %v2450_v59  ;;  %v2530_v58 = vld [vmem:[%s3511_s1 + $0x1a4] ss:$8 sps:$4 sm:$0xff]  }
  0x3a   :  { %v2535_v59 = vld [vmem:[%s3511_s1 + $0x4a4] ss:$8 sps:$4 sm:$0xff]  }
  0x3b   :  { %1495 = vmatpush1.bf16.msra.mxu1 %v2452_v60  ;;  %v2528_v60 = vld [vmem:[%s3511_s1 + $0x1a0] ss:$8 sps:$4 sm:$0xff]  }
  0x3c   :  { %1714 = vmatpush1.bf16.msra.mxu0 %v2453_v61  ;;  %1496 = vmatprep.subr.bf16.mxu1 %v2454_v62  ;;  %v2533_v61 = vld [vmem:[%s3511_s1 + $0x4a0] ss:$8 sps:$4 sm:$0xff]   ;;  %v2540_v62 = vld [vmem:[%s3511_s1 + $0x1b4] ss:$8 sps:$4 sm:$0xff]  }
  0x3d   :  { %1715 = vmatprep.subr.bf16.mxu0 %v2456_v63  ;;  %v2543_v63 = vld [vmem:[%s3511_s1 + $0x4b4] ss:$8 sps:$4 sm:$0xff]  }
  0x3f   :  { %1497 = vmatpush1.bf16.msra.mxu1 %v2458_v0  ;;  %v2538_v0 = vld [vmem:[%s3511_s1 + $0x1b0] ss:$8 sps:$4 sm:$0xff]  }
  0x40   :  { %1716 = vmatpush1.bf16.msra.mxu0 %v2459_v1  ;;  %1539 = vmatprep.subr.bf16.mxu1 %v2465_v2  ;;  %v2541_v1 = vld [vmem:[%s3511_s1 + $0x4b0] ss:$8 sps:$4 sm:$0xff]   ;;  %v2548_v2 = vld [vmem:[%s3511_s1 + $0x1c4] ss:$8 sps:$4 sm:$0xff]  }
  0x41   :  { %1758 = vmatprep.subr.bf16.mxu0 %v2471_v3  ;;  %v2553_v3 = vld [vmem:[%s3511_s1 + $0x4c4] ss:$8 sps:$4 sm:$0xff]  }
  0x42   :  { %1499 = vmatmul.mubr.bf16.vlgmr.msra.gmra.mrb[0].mxu1 %v2460_v4  ;;  %v2546_v4 = vld [vmem:[%s3511_s1 + $0x1c0] ss:$8 sps:$4 sm:$0xff]  }
  0x43   :  { %1718 = vmatmul.mubr.bf16.vlgmr.msra.gmra.mrb[0].mxu0 %v2466_v6  ;;  %1540 = vmatpush1.bf16.msra.mxu1 %v2463_v5  ;;  %v2551_v5 = vld [vmem:[%s3511_s1 + $0x4c0] ss:$8 sps:$4 sm:$0xff]   ;;  %v2558_v6 = vld [vmem:[%s3511_s1 + $0x1d4] ss:$8 sps:$4 sm:$0xff]  }
  0x44   :  { %1759 = vmatpush1.bf16.msra.mxu0 %v2469_v7  ;;  %1541 = vmatprep.subr.bf16.mxu1 %v2474_v8  ;;  %v2561_v7 = vld [vmem:[%s3511_s1 + $0x4d4] ss:$8 sps:$4 sm:$0xff]   ;;  %v2556_v8 = vld [vmem:[%s3511_s1 + $0x1d0] ss:$8 sps:$4 sm:$0xff]  }
  0x45   :  { %1760 = vmatprep.subr.bf16.mxu0 %v2477_v9  ;;  %1508 = vmatprep.mubr.bf16.mxu1 %v2526_v17  ;;  %v2559_v9 = vld [vmem:[%s3511_s1 + $0x4d0] ss:$8 sps:$4 sm:$0xff]  }
  0x46   :  { %1727 = vmatprep.mubr.bf16.mxu0 %v2531_v21  ;;  %v2577_v17 = vld [vmem:[%s3511_s1 + $0x4f0] ss:$8 sps:$4 sm:$0xff]   ;;  %v2583_v21 = vld [vmem:[%s3511_s1 + $0x200] ss:$8 sps:$4 sm:$0xff]  }
  0x47   :  { %1542 = vmatpush1.bf16.msra.mxu1 %v2472_v10  ;;  %v2566_v10 = vld [vmem:[%s3511_s1 + $0x1e4] ss:$8 sps:$4 sm:$0xff]  }
  0x48   :  { %1761 = vmatpush1.bf16.msra.mxu0 %v2475_v11  ;;  %1543 = vmatprep.subr.bf16.mxu1 %v2480_v12  ;;  %v2571_v11 = vld [vmem:[%s3511_s1 + $0x4e4] ss:$8 sps:$4 sm:$0xff]   ;;  %v2564_v12 = vld [vmem:[%s3511_s1 + $0x1e0] ss:$8 sps:$4 sm:$0xff]  }
  0x49   :  { %1762 = vmatprep.subr.bf16.mxu0 %v2483_v13  ;;  %v2569_v13 = vld [vmem:[%s3511_s1 + $0x4e0] ss:$8 sps:$4 sm:$0xff]  }
  0x4a   :  { %1509 = vmatmul.mubr.bf16.gmra.mrb[4].mxu1 %v2536_v24  ;;  %v2594_v24 = vld [vmem:[%s3511_s1 + $0x214] ss:$8 sps:$4 sm:$0xff]  }
  0x4b   :  { %1544 = vmatpush1.bf16.msra.mxu1 %v2478_v14  ;;  %1728 = vmatmul.mubr.bf16.gmra.mrb[4].mxu0 %v2537_v25  ;;  %v2576_v14 = vld [vmem:[%s3511_s1 + $0x1f4] ss:$8 sps:$4 sm:$0xff]  }
  0x4c   :  { %1763 = vmatpush1.bf16.msra.mxu0 %v2481_v15  ;;  %1545 = vmatprep.subr.bf16.mxu1 %v2486_v16  ;;  %v2579_v15 = vld [vmem:[%s3511_s1 + $0x4f4] ss:$8 sps:$4 sm:$0xff]   ;;  %v2574_v16 = vld [vmem:[%s3511_s1 + $0x1f0] ss:$8 sps:$4 sm:$0xff]  }
  0x4d   :  { %1764 = vmatprep.subr.bf16.mxu0 %v2489_v18  ;;  %1518 = vmatprep.mubr.bf16.mxu1 %v2544_v29  ;;  %v2585_v18 = vld [vmem:[%s3511_s1 + $0x204] ss:$8 sps:$4 sm:$0xff]   ;;  %v2597_v25 = vld [vmem:[%s3511_s1 + $0x514] ss:$8 sps:$4 sm:$0xff]   ;;  %v2595_v29 = vld [vmem:[%s3511_s1 + $0x510] ss:$8 sps:$4 sm:$0xff]  }
  0x4e   :  { %1737 = vmatprep.mubr.bf16.mxu0 %v2549_v33  ;;  %v2650_v33 = vld [vmem:[%s3512_s0 + $0x68] ss:$48 sps:$4 sm:$0xff]  }
  0x4f   :  { %1546 = vmatpush1.bf16.msra.mxu1 %v2484_v19  ;;  %v2591_v19 = vld [vmem:[%s3511_s1 + $0x504] ss:$8 sps:$4 sm:$0xff]  }
  0x50   :  { %1765 = vmatpush1.bf16.msra.mxu0 %v2487_v20  ;;  %1547 = vmatprep.subr.bf16.mxu1 %v2492_v22  ;;  %v2580_v20 = vld [vmem:[%s3512_s0 + $0x8] ss:$48 sps:$4 sm:$0xff]   ;;  %v2586_v22 = vld [vmem:[%s3512_s0 + $0x20] ss:$48 sps:$4 sm:$0xff]  }
  0x51   :  { %1766 = vmatprep.subr.bf16.mxu0 %v2495_v23  ;;  %v2589_v23 = vld [vmem:[%s3511_s1 + $0x500] ss:$8 sps:$4 sm:$0xff]  }
  0x52   :  { %1519 = vmatmul.mubr.bf16.gmra.mrb[8].mxu1 %v2554_v36  ;;  %v2606_v36 = vld [vmem:[%s3511_s1 + $0x234] ss:$8 sps:$4 sm:$0xff]  }
  0x53   :  { %1548 = vmatpush1.bf16.msra.mxu1 %v2490_v26  ;;  %1738 = vmatmul.mubr.bf16.gmra.mrb[8].mxu0 %v2555_v37  ;;  %v2646_v26 = vld [vmem:[%s3512_s0 + $0x6c] ss:$48 sps:$4 sm:$0xff]  }
  0x54   :  { %1767 = vmatpush1.bf16.msra.mxu0 %v2493_v27  ;;  %1549 = vmatprep.subr.bf16.mxu1 %v2498_v28  ;;  %v2648_v27 = vld [vmem:[%s3512_s0 + $0x84] ss:$48 sps:$4 sm:$0xff]   ;;  %v2592_v28 = vld [vmem:[%s3511_s1 + $0x210] ss:$8 sps:$4 sm:$0xff]  }
  0x55   :  { %1768 = vmatprep.subr.bf16.mxu0 %v2501_v30  ;;  %1528 = vmatprep.mubr.bf16.mxu1 %v2562_v41  ;;  %v2600_v30 = vld [vmem:[%s3511_s1 + $0x224] ss:$8 sps:$4 sm:$0xff]   ;;  %v2609_v37 = vld [vmem:[%s3511_s1 + $0x534] ss:$8 sps:$4 sm:$0xff]   ;;  %v2607_v41 = vld [vmem:[%s3511_s1 + $0x530] ss:$8 sps:$4 sm:$0xff]  }
  0x56   :  { %1747 = vmatprep.mubr.bf16.mxu0 %v2567_v45  ;;  %v2668_v45 = vld [vmem:[%s3512_s0 + $0xc8] ss:$48 sps:$4 sm:$0xff]  }
  0x57   :  { %1550 = vmatpush1.bf16.msra.mxu1 %v2496_v31  ;;  %v2603_v31 = vld [vmem:[%s3511_s1 + $0x524] ss:$8 sps:$4 sm:$0xff]  }
  0x58   :  { %1769 = vmatpush1.bf16.msra.mxu0 %v2499_v32  ;;  %1551 = vmatprep.subr.bf16.mxu1 %v2504_v34  ;;  %v2598_v32 = vld [vmem:[%s3511_s1 + $0x220] ss:$8 sps:$4 sm:$0xff]  }
  0x59   :  { %1770 = vmatprep.subr.bf16.mxu0 %v2507_v35  ;;  %v2654_v34 = vld [vmem:[%s3512_s0 + $0x80] ss:$48 sps:$4 sm:$0xff]  }
  0x5a   :  { %1529 = vmatmul.mubr.bf16.gmra.mrb[12].mxu1 %v2572_v48  ;;  %v2601_v35 = vld [vmem:[%s3511_s1 + $0x520] ss:$8 sps:$4 sm:$0xff]   ;;  %v2618_v48 = vld [vmem:[%s3511_s1 + $0x254] ss:$8 sps:$4 sm:$0xff]  }
  0x5b   :  { %1552 = vmatpush1.bf16.msra.mxu1 %v2502_v38  ;;  %1748 = vmatmul.mubr.bf16.gmra.mrb[12].mxu0 %v2573_v49  ;;  %v2664_v38 = vld [vmem:[%s3512_s0 + $0xcc] ss:$48 sps:$4 sm:$0xff]  }
  0x5c   :  { %1771 = vmatpush1.bf16.msra.mxu0 %v2505_v39  ;;  %1553 = vmatprep.subr.bf16.mxu1 %v2510_v40  ;;  %v2666_v39 = vld [vmem:[%s3512_s0 + $0xe4] ss:$48 sps:$4 sm:$0xff]   ;;  %v2604_v40 = vld [vmem:[%s3511_s1 + $0x230] ss:$8 sps:$4 sm:$0xff]  }
  0x5d   :  { %1772 = vmatprep.subr.bf16.mxu0 %v2513_v42  ;;  %1571 = vmatprep.mubr.bf16.mxu1 %v2582_v54  ;;  %v2612_v42 = vld [vmem:[%s3511_s1 + $0x244] ss:$8 sps:$4 sm:$0xff]   ;;  %v2621_v49 = vld [vmem:[%s3511_s1 + $0x554] ss:$8 sps:$4 sm:$0xff]  }
  0x5e   :  { %1790 = vmatprep.mubr.bf16.mxu0 %v2588_v57  ;;  %v2624_v54 = vld [vmem:[%s3511_s1 + $0x264] ss:$8 sps:$4 sm:$0xff]   ;;  %v2625_v57 = vld [vmem:[%s3511_s1 + $0x560] ss:$8 sps:$4 sm:$0xff]  }
  0x5f   :  { %1554 = vmatpush1.bf16.msra.mxu1 %v2508_v43  ;;  %v2615_v43 = vld [vmem:[%s3511_s1 + $0x544] ss:$8 sps:$4 sm:$0xff]  }
  0x60   :  { %1773 = vmatpush1.bf16.msra.mxu0 %v2511_v44  ;;  %1555 = vmatprep.subr.bf16.mxu1 %v2516_v46  ;;  %v2610_v44 = vld [vmem:[%s3511_s1 + $0x240] ss:$8 sps:$4 sm:$0xff]  }
  0x61   :  { %1774 = vmatprep.subr.bf16.mxu0 %v2519_v47  ;;  %v2672_v46 = vld [vmem:[%s3512_s0 + $0xe0] ss:$48 sps:$4 sm:$0xff]  }
  0x62   :  { %v2613_v47 = vld [vmem:[%s3511_s1 + $0x540] ss:$8 sps:$4 sm:$0xff]  }
  0x63   :  { %1556 = vmatpush1.bf16.msra.mxu1 %v2514_v50  ;;  %v2682_v50 = vld [vmem:[%s3512_s0 + $0x12c] ss:$48 sps:$4 sm:$0xff]  }
  0x64   :  { %1775 = vmatpush1.bf16.msra.mxu0 %v2517_v51  ;;  %1557 = vmatprep.subr.bf16.mxu1 %v2522_v52  ;;  %v2684_v51 = vld [vmem:[%s3512_s0 + $0x144] ss:$48 sps:$4 sm:$0xff]   ;;  %v2616_v52 = vld [vmem:[%s3511_s1 + $0x250] ss:$8 sps:$4 sm:$0xff]  }
  0x65   :  { %1776 = vmatprep.subr.bf16.mxu0 %v2525_v53  ;;  %v2619_v53 = vld [vmem:[%s3511_s1 + $0x550] ss:$8 sps:$4 sm:$0xff]  }
  0x67   :  { %1558 = vmatpush1.bf16.msra.mxu1 %v2520_v55  ;;  %v2627_v55 = vld [vmem:[%s3511_s1 + $0x564] ss:$8 sps:$4 sm:$0xff]  }
  0x68   :  { %1777 = vmatpush1.bf16.msra.mxu0 %v2523_v56  ;;  %1559 = vmatprep.subr.bf16.mxu1 %v2530_v58  ;;  %v2622_v56 = vld [vmem:[%s3511_s1 + $0x260] ss:$8 sps:$4 sm:$0xff]  }
  0x69   :  { %1778 = vmatprep.subr.bf16.mxu0 %v2535_v59  ;;  %v2686_v58 = vld [vmem:[%s3512_s0 + $0x128] ss:$48 sps:$4 sm:$0xff]   ;;  %v2690_v59 = vld [vmem:[%s3512_s0 + $0x140] ss:$48 sps:$4 sm:$0xff]  }
  0x6b   :  { %1560 = vmatpush1.bf16.msra.mxu1 %v2528_v60  ;;  %v2630_v60 = vld [vmem:[%s3511_s1 + $0x274] ss:$8 sps:$4 sm:$0xff]  }
  0x6c   :  { %1779 = vmatpush1.bf16.msra.mxu0 %v2533_v61  ;;  %1561 = vmatprep.subr.bf16.mxu1 %v2540_v62  ;;  %v2633_v61 = vld [vmem:[%s3511_s1 + $0x574] ss:$8 sps:$4 sm:$0xff]  }
  0x6d   :  { %1780 = vmatprep.subr.bf16.mxu0 %v2543_v63  ;;  %v2702_v62 = vld [vmem:[%s3512_s0 + $0x14] ss:$48 sps:$4 sm:$0xff]   ;;  %v2705_v63 = vld [vmem:[%s3512_s0 + $0x2c] ss:$48 sps:$4 sm:$0xff]  }
  0x6f   :  { %1562 = vmatpush1.bf16.msra.mxu1 %v2538_v0  ;;  %v2628_v0 = vld [vmem:[%s3511_s1 + $0x270] ss:$8 sps:$4 sm:$0xff]  }
  0x70   :  { %1781 = vmatpush1.bf16.msra.mxu0 %v2541_v1  ;;  %1563 = vmatprep.subr.bf16.mxu1 %v2548_v2  ;;  %v2631_v1 = vld [vmem:[%s3511_s1 + $0x570] ss:$8 sps:$4 sm:$0xff]   ;;  %v2636_v2 = vld [vmem:[%s3511_s1 + $0x284] ss:$8 sps:$4 sm:$0xff]  }
  0x71   :  { %1782 = vmatprep.subr.bf16.mxu0 %v2553_v3  ;;  %v2639_v3 = vld [vmem:[%s3511_s1 + $0x584] ss:$8 sps:$4 sm:$0xff]  }
  0x73   :  { %1564 = vmatpush1.bf16.msra.mxu1 %v2546_v4  ;;  %v2634_v4 = vld [vmem:[%s3511_s1 + $0x280] ss:$8 sps:$4 sm:$0xff]  }
  0x74   :  { %1783 = vmatpush1.bf16.msra.mxu0 %v2551_v5  ;;  %1565 = vmatprep.subr.bf16.mxu1 %v2558_v6  ;;  %v2637_v5 = vld [vmem:[%s3511_s1 + $0x580] ss:$8 sps:$4 sm:$0xff]   ;;  %v2642_v6 = vld [vmem:[%s3511_s1 + $0x294] ss:$8 sps:$4 sm:$0xff]  }
  0x75   :  { %1784 = vmatprep.subr.bf16.mxu0 %v2561_v7  ;;  %v2645_v7 = vld [vmem:[%s3511_s1 + $0x594] ss:$8 sps:$4 sm:$0xff]  }
  0x77   :  { %1566 = vmatpush1.bf16.msra.mxu1 %v2556_v8  ;;  %v2640_v8 = vld [vmem:[%s3511_s1 + $0x290] ss:$8 sps:$4 sm:$0xff]  }
  0x78   :  { %1785 = vmatpush1.bf16.msra.mxu0 %v2559_v9  ;;  %1567 = vmatprep.subr.bf16.mxu1 %v2566_v10  ;;  %v2643_v9 = vld [vmem:[%s3511_s1 + $0x590] ss:$8 sps:$4 sm:$0xff]   ;;  %v2653_v10 = vld [vmem:[%s3511_s1 + $0x2a4] ss:$8 sps:$4 sm:$0xff]  }
  0x79   :  { %1786 = vmatprep.subr.bf16.mxu0 %v2571_v11  ;;  %v2657_v11 = vld [vmem:[%s3511_s1 + $0x5a4] ss:$8 sps:$4 sm:$0xff]  }
  0x7b   :  { %1568 = vmatpush1.bf16.msra.mxu1 %v2564_v12  ;;  %v2651_v12 = vld [vmem:[%s3511_s1 + $0x2a0] ss:$8 sps:$4 sm:$0xff]  }
  0x7c   :  { %1787 = vmatpush1.bf16.msra.mxu0 %v2569_v13  ;;  %1569 = vmatprep.subr.bf16.mxu1 %v2576_v14  ;;  %v2655_v13 = vld [vmem:[%s3511_s1 + $0x5a0] ss:$8 sps:$4 sm:$0xff]   ;;  %v2660_v14 = vld [vmem:[%s3511_s1 + $0x2b4] ss:$8 sps:$4 sm:$0xff]  }
  0x7d   :  { %1788 = vmatprep.subr.bf16.mxu0 %v2579_v15  ;;  %v2663_v15 = vld [vmem:[%s3511_s1 + $0x5b4] ss:$8 sps:$4 sm:$0xff]  }
  0x7f   :  { %1570 = vmatpush1.bf16.msra.mxu1 %v2574_v16  ;;  %v2658_v16 = vld [vmem:[%s3511_s1 + $0x2b0] ss:$8 sps:$4 sm:$0xff]  }
  0x80   :  { %1789 = vmatpush1.bf16.msra.mxu0 %v2577_v17  ;;  %1612 = vmatprep.subr.bf16.mxu1 %v2585_v18  ;;  %v2661_v17 = vld [vmem:[%s3511_s1 + $0x5b0] ss:$8 sps:$4 sm:$0xff]   ;;  %v2671_v18 = vld [vmem:[%s3511_s1 + $0x2c4] ss:$8 sps:$4 sm:$0xff]  }
  0x81   :  { %1831 = vmatprep.subr.bf16.mxu0 %v2591_v19  ;;  %v2675_v19 = vld [vmem:[%s3511_s1 + $0x5c4] ss:$8 sps:$4 sm:$0xff]  }
  0x82   :  { %1572 = vmatmul.mubr.bf16.vlgmr.msra.gmra.mrb[0].mxu1 %v2580_v20  ;;  %v2669_v20 = vld [vmem:[%s3511_s1 + $0x2c0] ss:$8 sps:$4 sm:$0xff]  }
  0x83   :  { %1791 = vmatmul.mubr.bf16.vlgmr.msra.gmra.mrb[0].mxu0 %v2586_v22  ;;  %1613 = vmatpush1.bf16.msra.mxu1 %v2583_v21  ;;  %v2673_v21 = vld [vmem:[%s3511_s1 + $0x5c0] ss:$8 sps:$4 sm:$0xff]   ;;  %v2678_v22 = vld [vmem:[%s3511_s1 + $0x2d4] ss:$8 sps:$4 sm:$0xff]  }
  0x84   :  { %1832 = vmatpush1.bf16.msra.mxu0 %v2589_v23  ;;  %1614 = vmatprep.subr.bf16.mxu1 %v2594_v24  ;;  %v2681_v23 = vld [vmem:[%s3511_s1 + $0x5d4] ss:$8 sps:$4 sm:$0xff]   ;;  %v2676_v24 = vld [vmem:[%s3511_s1 + $0x2d0] ss:$8 sps:$4 sm:$0xff]  }
  0x85   :  { %1833 = vmatprep.subr.bf16.mxu0 %v2597_v25  ;;  %1581 = vmatprep.mubr.bf16.mxu1 %v2646_v26  ;;  %v2679_v25 = vld [vmem:[%s3511_s1 + $0x5d0] ss:$8 sps:$4 sm:$0xff]   ;;  %v2689_v26 = vld [vmem:[%s3511_s1 + $0x2e4] ss:$8 sps:$4 sm:$0xff]  }
  0x86   :  { %1800 = vmatprep.mubr.bf16.mxu0 %v2648_v27  ;;  %v2693_v27 = vld [vmem:[%s3511_s1 + $0x5e4] ss:$8 sps:$4 sm:$0xff]  }
  0x87   :  { %1615 = vmatpush1.bf16.msra.mxu1 %v2592_v28  ;;  %v2687_v28 = vld [vmem:[%s3511_s1 + $0x2e0] ss:$8 sps:$4 sm:$0xff]  }
  0x88   :  { %1834 = vmatpush1.bf16.msra.mxu0 %v2595_v29  ;;  %1616 = vmatprep.subr.bf16.mxu1 %v2600_v30  ;;  %v2691_v29 = vld [vmem:[%s3511_s1 + $0x5e0] ss:$8 sps:$4 sm:$0xff]   ;;  %v2696_v30 = vld [vmem:[%s3511_s1 + $0x2f4] ss:$8 sps:$4 sm:$0xff]  }
  0x89   :  { %1835 = vmatprep.subr.bf16.mxu0 %v2603_v31  ;;  %v2699_v31 = vld [vmem:[%s3511_s1 + $0x5f4] ss:$8 sps:$4 sm:$0xff]  }
  0x8a   :  { %1582 = vmatmul.mubr.bf16.gmra.mrb[4].mxu1 %v2650_v33  ;;  %v2697_v33 = vld [vmem:[%s3511_s1 + $0x5f0] ss:$8 sps:$4 sm:$0xff]  }
  0x8b   :  { %1801 = vmatmul.mubr.bf16.gmra.mrb[4].mxu0 %v2654_v34  ;;  %1617 = vmatpush1.bf16.msra.mxu1 %v2598_v32  ;;  %v2694_v32 = vld [vmem:[%s3511_s1 + $0x2f0] ss:$8 sps:$4 sm:$0xff]  }
  0x8c   :  { %1836 = vmatpush1.bf16.msra.mxu0 %v2601_v35  ;;  %1618 = vmatprep.subr.bf16.mxu1 %v2606_v36  ;;  %v2700_v34 = vld [vmem:[%s3512_s0 + $0x10] ss:$48 sps:$4 sm:$0xff]   ;;  %v2703_v35 = vld [vmem:[%s3512_s0 + $0x28] ss:$48 sps:$4 sm:$0xff]   ;;  %v2706_v36 = vld [vmem:[%s3512_s0 + $0x74] ss:$48 sps:$4 sm:$0xff]  }
  0x8d   :  { %1837 = vmatprep.subr.bf16.mxu0 %v2609_v37  ;;  %1591 = vmatprep.mubr.bf16.mxu1 %v2664_v38  ;;  %v2708_v37 = vld [vmem:[%s3512_s0 + $0x8c] ss:$48 sps:$4 sm:$0xff]   ;;  %v2710_v38 = vld [vmem:[%s3512_s0 + $0x70] ss:$48 sps:$4 sm:$0xff]  }
  0x8e   :  { %1810 = vmatprep.mubr.bf16.mxu0 %v2666_v39  ;;  %v2711_v39 = vld [vmem:[%s3512_s0 + $0x88] ss:$48 sps:$4 sm:$0xff]  }
  0x8f   :  { %1619 = vmatpush1.bf16.msra.mxu1 %v2604_v40  ;;  %v2712_v40 = vld [vmem:[%s3512_s0 + $0xd4] ss:$48 sps:$4 sm:$0xff]  }
  0x90   :  { %1838 = vmatpush1.bf16.msra.mxu0 %v2607_v41  ;;  %1620 = vmatprep.subr.bf16.mxu1 %v2612_v42  ;;  %v2714_v41 = vld [vmem:[%s3512_s0 + $0xec] ss:$48 sps:$4 sm:$0xff]   ;;  %v2716_v42 = vld [vmem:[%s3512_s0 + $0xd0] ss:$48 sps:$4 sm:$0xff]  }
  0x91   :  { %1839 = vmatprep.subr.bf16.mxu0 %v2615_v43  ;;  %v2717_v43 = vld [vmem:[%s3512_s0 + $0xe8] ss:$48 sps:$4 sm:$0xff]  }
  0x92   :  { %1592 = vmatmul.mubr.bf16.gmra.mrb[8].mxu1 %v2668_v45  ;;  %v2720_v45 = vld [vmem:[%s3512_s0 + $0x14c] ss:$48 sps:$4 sm:$0xff]  }
  0x93   :  { %1811 = vmatmul.mubr.bf16.gmra.mrb[8].mxu0 %v2672_v46  ;;  %1621 = vmatpush1.bf16.msra.mxu1 %v2610_v44  ;;  %v2718_v44 = vld [vmem:[%s3512_s0 + $0x134] ss:$48 sps:$4 sm:$0xff]   ;;  %v2722_v46 = vld [vmem:[%s3512_s0 + $0x130] ss:$48 sps:$4 sm:$0xff]  }
  0x94   :  { %1840 = vmatpush1.bf16.msra.mxu0 %v2613_v47  ;;  %1622 = vmatprep.subr.bf16.mxu1 %v2618_v48  ;;  %v2723_v47 = vld [vmem:[%s3512_s0 + $0x148] ss:$48 sps:$4 sm:$0xff]   ;;  %v256_v48 = vlaneseq }
  0x95   :  { %1841 = vmatprep.subr.bf16.mxu0 %v2621_v49  ;;  %1601 = vmatprep.mubr.bf16.mxu1 %v2682_v50 }
  0x96   :  { %1820 = vmatprep.mubr.bf16.mxu0 %v2684_v51  ;;  %v257_v49 = vshrl.u32 %v256_v48, 7  ;;  %v254_v51 = vld [vmem:[%s3513_s2] sm:$0x3] }
  0x97   :  { %1623 = vmatpush1.bf16.msra.mxu1 %v2616_v52 }
  0x98   :  { %1842 = vmatpush1.bf16.msra.mxu0 %v2619_v53  ;;  %1624 = vmatprep.subr.bf16.mxu1 %v2624_v54  ;;  %v258_v50 = vsub.s32 0, %v257_v49  ;;  %v262_v52 = vsub.s32 1, %v257_v49 }
  0x99   :  { %1843 = vmatprep.subr.bf16.mxu0 %v2627_v55 }
  0x9a   :  { %1602 = vmatmul.mubr.bf16.gmra.mrb[12].mxu1 %v2686_v58  ;;  %v3467_v53 = vrot.slane %v254_v51, %v258_v50  ;;  %v3469_v54 = vrot.slane %v254_v51, %v262_v52 }
  0x9b   :  { %1821 = vmatmul.mubr.bf16.gmra.mrb[12].mxu0 %v2690_v59  ;;  %1625 = vmatpush1.bf16.msra.mxu1 %v2622_v56 }
  0x9c   :  { %1844 = vmatpush1.bf16.msra.mxu0 %v2625_v57  ;;  %1626 = vmatprep.subr.bf16.mxu1 %v2630_v60 }
  0x9d   :  { %1845 = vmatprep.subr.bf16.mxu0 %v2633_v61  ;;  %1644 = vmatprep.mubr.bf16.mxu1 %v2702_v62 }
  0x9e   :  { %1863 = vmatprep.mubr.bf16.mxu0 %v2705_v63 }
  0x9f   :  { %1627 = vmatpush1.bf16.msra.mxu1 %v2628_v0 }
  0xa0   :  { %1846 = vmatpush1.bf16.msra.mxu0 %v2631_v1  ;;  %1628 = vmatprep.subr.bf16.mxu1 %v2636_v2 }
  0xa1   :  { %1847 = vmatprep.subr.bf16.mxu0 %v2639_v3 }
  0xa3   :  { %1629 = vmatpush1.bf16.msra.mxu1 %v2634_v4 }
  0xa4   :  { %1848 = vmatpush1.bf16.msra.mxu0 %v2637_v5  ;;  %1630 = vmatprep.subr.bf16.mxu1 %v2642_v6 }
  0xa5   :  { %1849 = vmatprep.subr.bf16.mxu0 %v2645_v7 }
  0xa7   :  { %1631 = vmatpush1.bf16.msra.mxu1 %v2640_v8 }
  0xa8   :  { %1850 = vmatpush1.bf16.msra.mxu0 %v2643_v9  ;;  %1632 = vmatprep.subr.bf16.mxu1 %v2653_v10 }
  0xa9   :  { %1851 = vmatprep.subr.bf16.mxu0 %v2657_v11 }
  0xab   :  { %1633 = vmatpush1.bf16.msra.mxu1 %v2651_v12 }
  0xac   :  { %1852 = vmatpush1.bf16.msra.mxu0 %v2655_v13  ;;  %1634 = vmatprep.subr.bf16.mxu1 %v2660_v14 }
  0xad   :  { %1853 = vmatprep.subr.bf16.mxu0 %v2663_v15 }
  0xaf   :  { %1635 = vmatpush1.bf16.msra.mxu1 %v2658_v16 }
  0xb0   :  { %1854 = vmatpush1.bf16.msra.mxu0 %v2661_v17  ;;  %1636 = vmatprep.subr.bf16.mxu1 %v2671_v18 }
  0xb1   :  { %1855 = vmatprep.subr.bf16.mxu0 %v2675_v19 }
  0xb3   :  { %1637 = vmatpush1.bf16.msra.mxu1 %v2669_v20 }
  0xb4   :  { %1856 = vmatpush1.bf16.msra.mxu0 %v2673_v21  ;;  %1638 = vmatprep.subr.bf16.mxu1 %v2678_v22 }
  0xb5   :  { %1857 = vmatprep.subr.bf16.mxu0 %v2681_v23 }
  0xb7   :  { %1639 = vmatpush1.bf16.msra.mxu1 %v2676_v24 }
  0xb8   :  { %1858 = vmatpush1.bf16.msra.mxu0 %v2679_v25  ;;  %1640 = vmatprep.subr.bf16.mxu1 %v2689_v26 }
  0xb9   :  { %1859 = vmatprep.subr.bf16.mxu0 %v2693_v27 }
  0xbb   :  { %1641 = vmatpush1.bf16.msra.mxu1 %v2687_v28 }
  0xbc   :  { %1860 = vmatpush1.bf16.msra.mxu0 %v2691_v29  ;;  %1642 = vmatprep.subr.bf16.mxu1 %v2696_v30 }
  0xbd   :  { %1861 = vmatprep.subr.bf16.mxu0 %v2699_v31 }
  0xbf   :  { %1643 = vmatpush1.bf16.msra.mxu1 %v2694_v32 }
  0xc0   :  { %1862 = vmatpush1.bf16.msra.mxu0 %v2697_v33 }
  0xc2   :  { %1645 = vmatmul.mubr.bf16.vlgmr.msra.gmra.mrb[0].mxu1 %v2700_v34 }
  0xc3   :  { %1864 = vmatmul.mubr.bf16.vlgmr.msra.gmra.mrb[0].mxu0 %v2703_v35  ;;  %1654 = vmatprep.mubr.bf16.mxu1 %v2706_v36 }
  0xc4   :  { %1873 = vmatprep.mubr.bf16.mxu0 %v2708_v37 }
  0xca   :  { %1655 = vmatmul.mubr.bf16.gmra.mrb[4].mxu1 %v2710_v38 }
  0xcb   :  { %1874 = vmatmul.mubr.bf16.gmra.mrb[4].mxu0 %v2711_v39  ;;  %1664 = vmatprep.mubr.bf16.mxu1 %v2712_v40 }
  0xcc   :  { %1883 = vmatprep.mubr.bf16.mxu0 %v2714_v41 }
  0xd2   :  { %1665 = vmatmul.mubr.bf16.gmra.mrb[8].mxu1 %v2716_v42 }
  0xd3   :  { %1884 = vmatmul.mubr.bf16.gmra.mrb[8].mxu0 %v2717_v43  ;;  %1674 = vmatprep.mubr.bf16.mxu1 %v2718_v44 }
  0xd4   :  { %1893 = vmatprep.mubr.bf16.mxu0 %v2720_v45 }
  0xda   :  { %1675 = vmatmul.mubr.bf16.gmra.mrb[12].mxu1 %v2722_v46 }
  0xdb   :  { %1894 = vmatmul.mubr.bf16.gmra.mrb[12].mxu0 %v2723_v47 }
 0x195   :  { %v1646_v55 = vpop.f32.mrb[0].mxu1 }
 0x196   :  { %v1865_v56 = vpop.f32.mrb[0].mxu0  ;;  %v2268_v57 = vadd.f32 %v1646_v55, %v3467_v53  ;;  %v1648_v58 = vpop.f32.mrb[1].mxu1 }
 0x197   :  { %v1867_v59 = vpop.f32.mrb[1].mxu0  ;;  %v2270_v60 = vadd.f32 %v1648_v58, %v3469_v54  ;;  %v1650_v61 = vpop.f32.mrb[2].mxu1 }
 0x198   :  { %v1869_v62 = vpop.f32.mrb[2].mxu0  ;;  %v2269_v63 = vadd.f32 %v2268_v57, %v1865_v56  ;;  %v2272_v0 = vadd.f32 %v1650_v61, %v3467_v53  ;;  %v1652_v1 = vpop.f32.mrb[3].mxu1 }
 0x199   :  { %v1871_v2 = vpop.f32.mrb[3].mxu0  ;;  %v2271_v3 = vadd.f32 %v2270_v60, %v1867_v59  ;;  %v2274_v4 = vadd.f32 %v1652_v1, %v3469_v54 }
 0x19a   :  { %vm1904_vm0 = vcmp.ge.f32.partialorder %v2269_v63, 0.0  ;;  %v1920_v5 = vmul.f32 0.2, %v2269_v63  ;;  %v2273_v6 = vadd.f32 %v2272_v0, %v1869_v62 }
 0x19b   :  { %vm1905_vm1 = vcmp.ge.f32.partialorder %v2271_v3, 0.0  ;;  %v1921_v7 = vmul.f32 0.2, %v2271_v3  ;;  %v2275_v8 = vadd.f32 %v2274_v4, %v1871_v2 }
 0x19c   :  { %v1936_v9 = vsel %vm1904_vm0, %v2269_v63, %v1920_v5  ;;  %vm1906_vm2 = vcmp.ge.f32.partialorder %v2273_v6, 0.0  ;;  %v1922_v10 = vmul.f32 0.2, %v2273_v6 }
 0x19d   :  { %v1937_v11 = vsel %vm1905_vm1, %v2271_v3, %v1921_v7  ;;  %vm1907_vm3 = vcmp.ge.f32.partialorder %v2275_v8, 0.0  ;;  %v1923_v12 = vmul.f32 0.2, %v2275_v8  ;;  %v1656_v13 = vpop.f32.mrb[4].mxu1 }
 0x19e   :  { %v1875_v14 = vpop.f32.mrb[4].mxu0  ;;  %v2260_v15 = vpack.c.bf16 %v1937_v11, %v1936_v9  ;;  %v1938_v16 = vsel %vm1906_vm2, %v2273_v6, %v1922_v10  ;;  %v2276_v17 = vadd.f32 %v1656_v13, %v3467_v53  ;;  %v1658_v18 = vpop.f32.mrb[5].mxu1 }
 0x19f   :  { %v1877_v19 = vpop.f32.mrb[5].mxu0  ;;  %v1939_v20 = vsel %vm1907_vm3, %v2275_v8, %v1923_v12  ;;  %v2278_v21 = vadd.f32 %v1658_v18, %v3469_v54  ;;  %v1660_v22 = vpop.f32.mrb[6].mxu1 }
 0x1a0   :  { %v1879_v23 = vpop.f32.mrb[6].mxu0  ;;  %2000 = vst [vmem:[%s3514_s3] sm:$0xff] %v2260_v15  ;;  %v2261_v24 = vpack.c.bf16 %v1939_v20, %v1938_v16  ;;  %v2277_v25 = vadd.f32 %v2276_v17, %v1875_v14  ;;  %v2280_v26 = vadd.f32 %v1660_v22, %v3467_v53  ;;  %v1662_v27 = vpop.f32.mrb[7].mxu1 }
 0x1a1   :  { %v1881_v28 = vpop.f32.mrb[7].mxu0  ;;  %v2279_v29 = vadd.f32 %v2278_v21, %v1877_v19  ;;  %v2282_v30 = vadd.f32 %v1662_v27, %v3469_v54 }
 0x1a2   :  { %2001 = vst [vmem:[%s3514_s3 + $0x8] sm:$0xff] %v2261_v24  ;;  %vm1908_vm4 = vcmp.ge.f32.partialorder %v2277_v25, 0.0  ;;  %v1924_v31 = vmul.f32 0.2, %v2277_v25  ;;  %v2281_v32 = vadd.f32 %v2280_v26, %v1879_v23 }
 0x1a3   :  { %vm1909_vm5 = vcmp.ge.f32.partialorder %v2279_v29, 0.0  ;;  %v1925_v33 = vmul.f32 0.2, %v2279_v29  ;;  %v2283_v34 = vadd.f32 %v2282_v30, %v1881_v28 }
 0x1a4   :  { %v1940_v35 = vsel %vm1908_vm4, %v2277_v25, %v1924_v31  ;;  %vm1910_vm6 = vcmp.ge.f32.partialorder %v2281_v32, 0.0  ;;  %v1926_v36 = vmul.f32 0.2, %v2281_v32 }
 0x1a5   :  { %v1941_v37 = vsel %vm1909_vm5, %v2279_v29, %v1925_v33  ;;  %vm1911_vm7 = vcmp.ge.f32.partialorder %v2283_v34, 0.0  ;;  %v1927_v38 = vmul.f32 0.2, %v2283_v34  ;;  %v1666_v39 = vpop.f32.mrb[8].mxu1 }
 0x1a6   :  { %v1885_v40 = vpop.f32.mrb[8].mxu0  ;;  %v2262_v41 = vpack.c.bf16 %v1941_v37, %v1940_v35  ;;  %v1942_v42 = vsel %vm1910_vm6, %v2281_v32, %v1926_v36  ;;  %v2284_v43 = vadd.f32 %v1666_v39, %v3467_v53  ;;  %v1668_v44 = vpop.f32.mrb[9].mxu1 }
 0x1a7   :  { %v1887_v45 = vpop.f32.mrb[9].mxu0  ;;  %v1943_v46 = vsel %vm1911_vm7, %v2283_v34, %v1927_v38  ;;  %v2286_v47 = vadd.f32 %v1668_v44, %v3469_v54  ;;  %v1670_v48 = vpop.f32.mrb[10].mxu1 }
 0x1a8   :  { %v1889_v49 = vpop.f32.mrb[10].mxu0  ;;  %2002 = vst [vmem:[%s3514_s3 + $0x10] sm:$0xff] %v2262_v41  ;;  %v2263_v50 = vpack.c.bf16 %v1943_v46, %v1942_v42  ;;  %v2285_v51 = vadd.f32 %v2284_v43, %v1885_v40  ;;  %v2288_v52 = vadd.f32 %v1670_v48, %v3467_v53  ;;  %v1672_v55 = vpop.f32.mrb[11].mxu1 }
 0x1a9   :  { %v1891_v56 = vpop.f32.mrb[11].mxu0  ;;  %v2287_v57 = vadd.f32 %v2286_v47, %v1887_v45  ;;  %v2290_v58 = vadd.f32 %v1672_v55, %v3469_v54 }
 0x1aa   :  { %2003 = vst [vmem:[%s3514_s3 + $0x18] sm:$0xff] %v2263_v50  ;;  %vm1912_vm8 = vcmp.ge.f32.partialorder %v2285_v51, 0.0  ;;  %v1928_v59 = vmul.f32 0.2, %v2285_v51  ;;  %v2289_v60 = vadd.f32 %v2288_v52, %v1889_v49 }
 0x1ab   :  { %vm1913_vm9 = vcmp.ge.f32.partialorder %v2287_v57, 0.0  ;;  %v1929_v61 = vmul.f32 0.2, %v2287_v57  ;;  %v2291_v62 = vadd.f32 %v2290_v58, %v1891_v56 }
 0x1ac   :  { %v1944_v63 = vsel %vm1912_vm8, %v2285_v51, %v1928_v59  ;;  %vm1914_vm10 = vcmp.ge.f32.partialorder %v2289_v60, 0.0  ;;  %v1930_v0 = vmul.f32 0.2, %v2289_v60 }
 0x1ad   :  { %v1945_v1 = vsel %vm1913_vm9, %v2287_v57, %v1929_v61  ;;  %vm1915_vm11 = vcmp.ge.f32.partialorder %v2291_v62, 0.0  ;;  %v1931_v2 = vmul.f32 0.2, %v2291_v62  ;;  %v1676_v3 = vpop.f32.mrb[12].mxu1 }
 0x1ae   :  { %v1895_v4 = vpop.f32.mrb[12].mxu0  ;;  %v2264_v5 = vpack.c.bf16 %v1945_v1, %v1944_v63  ;;  %v1946_v6 = vsel %vm1914_vm10, %v2289_v60, %v1930_v0  ;;  %v2292_v7 = vadd.f32 %v1676_v3, %v3467_v53  ;;  %v1678_v8 = vpop.f32.mrb[13].mxu1 }
 0x1af   :  { %v1897_v9 = vpop.f32.mrb[13].mxu0  ;;  %v1947_v10 = vsel %vm1915_vm11, %v2291_v62, %v1931_v2  ;;  %v2294_v11 = vadd.f32 %v1678_v8, %v3469_v54  ;;  %v1680_v12 = vpop.f32.mrb[14].mxu1 }
 0x1b0   :  { %v1899_v13 = vpop.f32.mrb[14].mxu0  ;;  %2004 = vst [vmem:[%s3514_s3 + $0x20] sm:$0xff] %v2264_v5  ;;  %v2265_v14 = vpack.c.bf16 %v1947_v10, %v1946_v6  ;;  %v2293_v15 = vadd.f32 %v2292_v7, %v1895_v4  ;;  %v2296_v16 = vadd.f32 %v1680_v12, %v3467_v53  ;;  %v1682_v17 = vpop.f32.mrb[15].mxu1 }
 0x1b1   :  { %v1901_v18 = vpop.f32.mrb[15].mxu0  ;;  %v2295_v19 = vadd.f32 %v2294_v11, %v1897_v9  ;;  %v2298_v20 = vadd.f32 %v1682_v17, %v3469_v54 }
 0x1b2   :  { %2005 = vst [vmem:[%s3514_s3 + $0x28] sm:$0xff] %v2265_v14  ;;  %vm1916_vm12 = vcmp.ge.f32.partialorder %v2293_v15, 0.0  ;;  %v1932_v21 = vmul.f32 0.2, %v2293_v15  ;;  %v2297_v22 = vadd.f32 %v2296_v16, %v1899_v13 }
 0x1b3   :  { %vm1917_vm13 = vcmp.ge.f32.partialorder %v2295_v19, 0.0  ;;  %v1933_v23 = vmul.f32 0.2, %v2295_v19  ;;  %v2299_v24 = vadd.f32 %v2298_v20, %v1901_v18 }
 0x1b4   :  { %v1948_v25 = vsel %vm1916_vm12, %v2293_v15, %v1932_v21  ;;  %vm1918_vm14 = vcmp.ge.f32.partialorder %v2297_v22, 0.0  ;;  %v1934_v26 = vmul.f32 0.2, %v2297_v22 }
 0x1b5   :  { %v1949_v27 = vsel %vm1917_vm13, %v2295_v19, %v1933_v23  ;;  %vm1919_vm15 = vcmp.ge.f32.partialorder %v2299_v24, 0.0  ;;  %v1935_v53 = vmul.f32 0.2, %v2299_v24 }
 0x1b6   :  { %v2266_v28 = vpack.c.bf16 %v1949_v27, %v1948_v25  ;;  %v1950_v29 = vsel %vm1918_vm14, %v2297_v22, %v1934_v26 }
 0x1b7   :  { %v1951_v30 = vsel %vm1919_vm15, %v2299_v24, %v1935_v53 }
 0x1b8   :  { %2006 = vst [vmem:[%s3514_s3 + $0x30] sm:$0xff] %v2266_v28  ;;  %v2267_v54 = vpack.c.bf16 %v1951_v30, %v1950_v29 }
 0x1ba   :  { %2007 = vst [vmem:[%s3514_s3 + $0x38] sm:$0xff] %v2267_v54 }

// kernel: a_call__.13
= control target key start
LH: loop header
LB: loop body
LE: loop exit
PB: predicated region body
PF: predicated region fallthrough
CT: control target
= control target key end

     0   :  { %s837_s1 = inlined_call_operand.vmem [shape: bf16[384,128], index: 1, kind: input, shape index: {}]   ;;  %s838_s0 = inlined_call_operand.vmem [shape: bf16[64,384], index: 0, kind: input, shape index: {}]   ;;  %s839_s2 = inlined_call_operand.vmem [shape: f32[1,128], index: 2, kind: input, shape index: {}]   ;;  %s840_s3 = inlined_call_operand.vmem [shape: bf16[64,128], index: 3, kind: output, shape index: {}]  }
   0x1   :  { %v644_v0 = vld [vmem:[%s837_s1 + $0x40] sm:$0xff]   ;;  %v646_v2 = vld [vmem:[%s837_s1 + $0x48] sm:$0xff]   ;;  %v649_v5 = vld [vmem:[%s837_s1 + $0x50] sm:$0xff]  }
   0x2   :  { %v645_v1 = vld [vmem:[%s837_s1] sm:$0xff]   ;;  %568 = vmatprep.subr.bf16.mxu0 %v644_v0  ;;  %v648_v4 = vld [vmem:[%s837_s1 + $0x8] sm:$0xff]   ;;  %v651_v7 = vld [vmem:[%s837_s1 + $0x10] sm:$0xff]  }
   0x3   :  { %569 = vmatpush3.bf16.msra.mxu0 %v645_v1  ;;  %v647_v3 = vld [vmem:[%s837_s1 + $0x80] sm:$0xff]   ;;  %v650_v6 = vld [vmem:[%s837_s1 + $0x88] sm:$0xff]   ;;  %v652_v8 = vld [vmem:[%s837_s1 + $0x58] sm:$0xff]  }
   0x4   :  { %570 = vmatprep.subr.bf16.mxu0 %v646_v2  ;;  %620 = vmatprep.subr.bf16.mxu1 %v647_v3  ;;  %v653_v9 = vld [vmem:[%s837_s1 + $0x90] sm:$0xff]   ;;  %v654_v10 = vld [vmem:[%s837_s1 + $0x18] sm:$0xff]   ;;  %v655_v11 = vld [vmem:[%s837_s1 + $0x60] sm:$0xff]  }
   0x5   :  { %621 = vmatpush3.bf16.msra.mxu1 %v647_v3  ;;  %v656_v12 = vld [vmem:[%s837_s1 + $0x98] sm:$0xff]   ;;  %v657_v13 = vld [vmem:[%s837_s1 + $0x20] sm:$0xff]   ;;  %v658_v15 = vld [vmem:[%s837_s1 + $0x68] sm:$0xff]  }
   0x6   :  { %622 = vmatprep.subr.bf16.mxu1 %v650_v6  ;;  %v659_v14 = vld [vmem:[%s837_s1 + $0xa0] sm:$0xff]   ;;  %v660_v16 = vld [vmem:[%s837_s1 + $0x28] sm:$0xff]   ;;  %v661_v18 = vld [vmem:[%s837_s1 + $0x70] sm:$0xff]  }
   0x7   :  { %571 = vmatpush3.bf16.msra.mxu0 %v648_v4  ;;  %v662_v17 = vld [vmem:[%s837_s1 + $0xa8] sm:$0xff]   ;;  %v663_v19 = vld [vmem:[%s837_s1 + $0x30] sm:$0xff]   ;;  %v664_v20 = vld [vmem:[%s837_s1 + $0x78] sm:$0xff]  }
   0x8   :  { %572 = vmatprep.subr.bf16.mxu0 %v649_v5  ;;  %v665_v21 = vld [vmem:[%s837_s1 + $0xb0] sm:$0xff]   ;;  %v666_v23 = vld [vmem:[%s837_s1 + $0x38] sm:$0xff]   ;;  %v667_v26 = vld [vmem:[%s838_s0] ss:$12 sps:$4 sm:$0xff]  }
   0x9   :  { %623 = vmatpush3.bf16.msra.mxu1 %v650_v6  ;;  %v669_v22 = vld [vmem:[%s838_s0 + $0x4] ss:$12 sps:$4 sm:$0xff]   ;;  %v671_v24 = vld [vmem:[%s838_s0 + $0x8] ss:$12 sps:$4 sm:$0xff]   ;;  %v670_v25 = vld [vmem:[%s837_s1 + $0xb8] sm:$0xff]  }
   0xa   :  { %624 = vmatprep.subr.bf16.mxu1 %v653_v9  ;;  %326 = vmatprep.mubr.bf16.mxu0 %v669_v22  ;;  %v673_v27 = vld [vmem:[%s838_s0 + $0x1c] ss:$12 sps:$4 sm:$0xff]   ;;  %v672_v28 = vld [vmem:[%s838_s0 + $0x20] ss:$12 sps:$4 sm:$0xff]   ;;  %v679_v29 = vld [vmem:[%s838_s0 + $0x38] ss:$12 sps:$4 sm:$0xff]  }
   0xb   :  { %573 = vmatpush3.bf16.msra.mxu0 %v651_v7  ;;  %636 = vmatprep.mubr.bf16.mxu1 %v671_v24  ;;  %v675_v30 = vld [vmem:[%s838_s0 + $0x18] ss:$12 sps:$4 sm:$0xff]   ;;  %v676_v31 = vld [vmem:[%s838_s0 + $0x34] ss:$12 sps:$4 sm:$0xff]   ;;  %v680_v32 = vld [vmem:[%s838_s0 + $0x50] ss:$12 sps:$4 sm:$0xff]  }
   0xc   :  { %574 = vmatprep.subr.bf16.mxu0 %v652_v8  ;;  %v678_v33 = vld [vmem:[%s838_s0 + $0x30] ss:$12 sps:$4 sm:$0xff]   ;;  %v681_v34 = vld [vmem:[%s838_s0 + $0x4c] ss:$12 sps:$4 sm:$0xff]   ;;  %v683_v35 = vld [vmem:[%s838_s0 + $0x48] ss:$12 sps:$4 sm:$0xff]  }
   0xd   :  { %625 = vmatpush3.bf16.msra.mxu1 %v653_v9  ;;  %v815_v38 = vld [vmem:[%s839_s2] ss:$0 sm:$0xff] }
   0xe   :  { %626 = vmatprep.subr.bf16.mxu1 %v656_v12 }
   0xf   :  { %575 = vmatpush3.bf16.msra.mxu0 %v654_v10 }
  0x10   :  { %576 = vmatprep.subr.bf16.mxu0 %v655_v11 }
  0x11   :  { %627 = vmatpush3.bf16.msra.mxu1 %v656_v12 }
  0x12   :  { %628 = vmatprep.subr.bf16.mxu1 %v659_v14 }
  0x13   :  { %577 = vmatpush3.bf16.msra.mxu0 %v657_v13 }
  0x14   :  { %578 = vmatprep.subr.bf16.mxu0 %v658_v15 }
  0x15   :  { %629 = vmatpush3.bf16.msra.mxu1 %v659_v14 }
  0x16   :  { %630 = vmatprep.subr.bf16.mxu1 %v662_v17 }
  0x17   :  { %579 = vmatpush3.bf16.msra.mxu0 %v660_v16 }
  0x18   :  { %580 = vmatprep.subr.bf16.mxu0 %v661_v18 }
  0x19   :  { %631 = vmatpush3.bf16.msra.mxu1 %v662_v17 }
  0x1a   :  { %632 = vmatprep.subr.bf16.mxu1 %v665_v21 }
  0x1b   :  { %581 = vmatpush3.bf16.msra.mxu0 %v663_v19 }
  0x1c   :  { %582 = vmatprep.subr.bf16.mxu0 %v664_v20 }
  0x1d   :  { %633 = vmatpush3.bf16.msra.mxu1 %v665_v21 }
  0x1e   :  { %634 = vmatprep.subr.bf16.mxu1 %v670_v25 }
  0x1f   :  { %583 = vmatpush3.bf16.msra.mxu0 %v666_v23 }
  0x21   :  { %635 = vmatpush3.bf16.msra.mxu1 %v670_v25 }
  0x22   :  { %327 = vmatmul.mubr.bf16.vlgmr.msra.gmra.mrb[0].mxu0 %v667_v26 }
  0x23   :  { %334 = vmatprep.mubr.bf16.mxu0 %v673_v27 }
  0x24   :  { %637 = vmatmul.mubr.bf16.vlgmr.msra.gmra.mrb[0].mxu1 %v672_v28 }
  0x25   :  { %640 = vmatprep.mubr.bf16.mxu1 %v679_v29 }
  0x2a   :  { %335 = vmatmul.mubr.bf16.gmra.mrb[4].mxu0 %v675_v30 }
  0x2b   :  { %342 = vmatprep.mubr.bf16.mxu0 %v676_v31 }
  0x2c   :  { %641 = vmatmul.mubr.bf16.gmra.mrb[4].mxu1 %v680_v32 }
  0x32   :  { %343 = vmatmul.mubr.bf16.gmra.mrb[8].mxu0 %v678_v33 }
  0x33   :  { %350 = vmatprep.mubr.bf16.mxu0 %v681_v34 }
  0x3a   :  { %351 = vmatmul.mubr.bf16.gmra.mrb[12].mxu0 %v683_v35 }
  0xf5   :  { %v584_v36 = vpop.f32.mrb[0].mxu0 }
  0xf6   :  { %v585_v37 = vpop.f32.mrb[1].mxu0 }
  0xf7   :  { %v586_v39 = vadd.f32 %v585_v37, %v584_v36  ;;  %v587_v40 = vpop.f32.mrb[2].mxu0  ;;  %v638_v42 = vpop.f32.mrb[0].mxu1 }
  0xf8   :  { %v588_v41 = vpop.f32.mrb[3].mxu0  ;;  %v393_v45 = vpop.f32.mrb[1].mxu1 }
  0xf9   :  { %v589_v43 = vadd.f32 %v588_v41, %v587_v40  ;;  %v329_v44 = vadd.f32 %v586_v39, %v815_v38  ;;  %v639_v46 = vpop.f32.mrb[2].mxu1 }
  0xfa   :  { %v396_v49 = vpop.f32.mrb[3].mxu1 }
  0xfb   :  { %v394_v47 = vadd.f32 %v393_v45, %v329_v44  ;;  %v332_v48 = vadd.f32 %v589_v43, %v815_v38 }
  0xfd   :  { %v432_v50 = vmul.f32 0.2, %v394_v47  ;;  %v397_v51 = vadd.f32 %v396_v49, %v332_v48  ;;  %v590_v52 = vpop.f32.mrb[4].mxu0  ;;  %vm424_vm0 = vcmp.ge.f32.partialorder %v394_v47, 0.0 }
  0xfe   :  { %v591_v53 = vpop.f32.mrb[5].mxu0 }
  0xff   :  { %vm425_vm1 = vcmp.ge.f32.partialorder %v397_v51, 0.0  ;;  %v433_v54 = vmul.f32 0.2, %v397_v51  ;;  %v592_v55 = vadd.f32 %v591_v53, %v590_v52  ;;  %v593_v56 = vpop.f32.mrb[6].mxu0  ;;  %v642_v58 = vpop.f32.mrb[4].mxu1  ;;  %v440_v59 = vsel %vm424_vm0, %v394_v47, %v432_v50 }
 0x100   :  { %v594_v57 = vpop.f32.mrb[7].mxu0  ;;  %v409_v63 = vpop.f32.mrb[5].mxu1 }
 0x101   :  { %v441_v60 = vsel %vm425_vm1, %v397_v51, %v433_v54  ;;  %v337_v61 = vadd.f32 %v592_v55, %v815_v38  ;;  %v595_v62 = vadd.f32 %v594_v57, %v593_v56  ;;  %v643_v1 = vpop.f32.mrb[6].mxu1 }
 0x102   :  { %v548_v0 = vpack.c.bf16 %v441_v60, %v440_v59  ;;  %v412_v4 = vpop.f32.mrb[7].mxu1 }
 0x103   :  { %v402_v2 = vadd.f32 %v638_v42, %v337_v61  ;;  %v340_v3 = vadd.f32 %v595_v62, %v815_v38 }
 0x104   :  { %549 = vst [vmem:[%s840_s3] sm:$0xff] %v548_v0  }
 0x105   :  { %v434_v5 = vmul.f32 0.2, %v402_v2  ;;  %v405_v6 = vadd.f32 %v639_v46, %v340_v3  ;;  %v596_v7 = vpop.f32.mrb[8].mxu0  ;;  %vm426_vm2 = vcmp.ge.f32.partialorder %v402_v2, 0.0 }
 0x106   :  { %v597_v8 = vpop.f32.mrb[9].mxu0 }
 0x107   :  { %vm427_vm3 = vcmp.ge.f32.partialorder %v405_v6, 0.0  ;;  %v435_v9 = vmul.f32 0.2, %v405_v6  ;;  %v598_v10 = vadd.f32 %v597_v8, %v596_v7  ;;  %v599_v11 = vpop.f32.mrb[10].mxu0  ;;  %v442_v13 = vsel %vm426_vm2, %v402_v2, %v434_v5 }
 0x108   :  { %v600_v12 = vpop.f32.mrb[11].mxu0 }
 0x109   :  { %v443_v14 = vsel %vm427_vm3, %v405_v6, %v435_v9  ;;  %v601_v15 = vadd.f32 %v600_v12, %v599_v11  ;;  %v345_v16 = vadd.f32 %v598_v10, %v815_v38 }
 0x10a   :  { %v553_v17 = vpack.c.bf16 %v443_v14, %v442_v13 }
 0x10b   :  { %v410_v18 = vadd.f32 %v409_v63, %v345_v16  ;;  %v348_v19 = vadd.f32 %v601_v15, %v815_v38 }
 0x10c   :  { %565 = vst [vmem:[%s840_s3 + $0x8] sm:$0xff] %v553_v17  }
 0x10d   :  { %v436_v20 = vmul.f32 0.2, %v410_v18  ;;  %v413_v21 = vadd.f32 %v412_v4, %v348_v19  ;;  %v602_v22 = vpop.f32.mrb[12].mxu0  ;;  %vm428_vm4 = vcmp.ge.f32.partialorder %v410_v18, 0.0 }
 0x10e   :  { %v603_v23 = vpop.f32.mrb[13].mxu0 }
 0x10f   :  { %vm429_vm5 = vcmp.ge.f32.partialorder %v413_v21, 0.0  ;;  %v437_v24 = vmul.f32 0.2, %v413_v21  ;;  %v604_v25 = vadd.f32 %v603_v23, %v602_v22  ;;  %v605_v26 = vpop.f32.mrb[14].mxu0  ;;  %v444_v28 = vsel %vm428_vm4, %v410_v18, %v436_v20 }
 0x110   :  { %v606_v27 = vpop.f32.mrb[15].mxu0 }
 0x111   :  { %v445_v29 = vsel %vm429_vm5, %v413_v21, %v437_v24  ;;  %v353_v30 = vadd.f32 %v604_v25, %v815_v38  ;;  %v607_v31 = vadd.f32 %v606_v27, %v605_v26 }
 0x112   :  { %v558_v32 = vpack.c.bf16 %v445_v29, %v444_v28 }
 0x113   :  { %v418_v33 = vadd.f32 %v642_v58, %v353_v30  ;;  %v356_v34 = vadd.f32 %v607_v31, %v815_v38 }
 0x114   :  { %566 = vst [vmem:[%s840_s3 + $0x10] sm:$0xff] %v558_v32  }
 0x115   :  { %v438_v35 = vmul.f32 0.2, %v418_v33  ;;  %v421_v36 = vadd.f32 %v643_v1, %v356_v34  ;;  %vm430_vm6 = vcmp.ge.f32.partialorder %v418_v33, 0.0 }
 0x117   :  { %vm431_vm7 = vcmp.ge.f32.partialorder %v421_v36, 0.0  ;;  %v439_v37 = vmul.f32 0.2, %v421_v36  ;;  %v446_v39 = vsel %vm430_vm6, %v418_v33, %v438_v35 }
 0x119   :  { %v447_v40 = vsel %vm431_vm7, %v421_v36, %v439_v37 }
 0x11a   :  { %v563_v41 = vpack.c.bf16 %v447_v40, %v446_v39 }
 0x11c   :  { %567 = vst [vmem:[%s840_s3 + $0x18] sm:$0xff] %v563_v41  }

// kernel: a_call__.10
= control target key start
LH: loop header
LB: loop body
LE: loop exit
PB: predicated region body
PF: predicated region fallthrough
CT: control target
= control target key end

     0   :  { %s3570_s1 = inlined_call_operand.vmem [shape: bf16[3072,128], index: 1, kind: input, shape index: {}]   ;;  %s3571_s0 = inlined_call_operand.vmem [shape: bf16[16,3072], index: 0, kind: input, shape index: {}]   ;;  %s3572_s2 = inlined_call_operand.vmem [shape: f32[1,128], index: 2, kind: input, shape index: {}]   ;;  %s3573_s3 = inlined_call_operand.vmem [shape: bf16[16,128], index: 3, kind: output, shape index: {}]  }
   0x1   :  { %v2704_v0 = vld [vmem:[%s3570_s1 + $0x40] sm:$0xff]   ;;  %v2708_v4 = vld [vmem:[%s3570_s1 + $0x48] sm:$0xff]   ;;  %v2712_v8 = vld [vmem:[%s3570_s1 + $0x50] sm:$0xff]  }
   0x2   :  { %v2705_v1 = vld [vmem:[%s3570_s1 + $0xc0] sm:$0xff]   ;;  %2440 = vmatprep.subr.bf16.mxu0 %v2704_v0  ;;  %v2709_v5 = vld [vmem:[%s3570_s1 + $0xc8] sm:$0xff]   ;;  %v2713_v9 = vld [vmem:[%s3570_s1 + $0xd0] sm:$0xff]  }
   0x3   :  { %v2706_v2 = vld [vmem:[%s3570_s1] sm:$0xff]   ;;  %2462 = vmatprep.subr.bf16.mxu1 %v2705_v1  ;;  %v2710_v6 = vld [vmem:[%s3570_s1 + $0x8] sm:$0xff]   ;;  %v2714_v10 = vld [vmem:[%s3570_s1 + $0x10] sm:$0xff]  }
   0x4   :  { %v2707_v3 = vld [vmem:[%s3570_s1 + $0x80] sm:$0xff]   ;;  %2441 = vmatpush3.bf16.msra.mxu0 %v2706_v2  ;;  %v2711_v7 = vld [vmem:[%s3570_s1 + $0x88] sm:$0xff]   ;;  %v2715_v11 = vld [vmem:[%s3570_s1 + $0x90] sm:$0xff]  }
   0x5   :  { %2463 = vmatpush3.bf16.msra.mxu1 %v2707_v3  ;;  %2442 = vmatprep.subr.bf16.mxu0 %v2708_v4  ;;  %v2716_v12 = vld [vmem:[%s3570_s1 + $0x58] sm:$0xff]   ;;  %v2720_v16 = vld [vmem:[%s3570_s1 + $0x60] sm:$0xff]   ;;  %v2724_v20 = vld [vmem:[%s3570_s1 + $0x68] sm:$0xff]  }
   0x6   :  { %2464 = vmatprep.subr.bf16.mxu1 %v2709_v5  ;;  %v2717_v13 = vld [vmem:[%s3570_s1 + $0xd8] sm:$0xff]   ;;  %v2721_v17 = vld [vmem:[%s3570_s1 + $0xe0] sm:$0xff]   ;;  %v2725_v21 = vld [vmem:[%s3570_s1 + $0xe8] sm:$0xff]  }
   0x7   :  { %v2718_v14 = vld [vmem:[%s3570_s1 + $0x18] sm:$0xff]   ;;  %v2722_v18 = vld [vmem:[%s3570_s1 + $0x20] sm:$0xff]   ;;  %v2726_v22 = vld [vmem:[%s3570_s1 + $0x28] sm:$0xff]  }
   0x8   :  { %2443 = vmatpush3.bf16.msra.mxu0 %v2710_v6  ;;  %v2719_v15 = vld [vmem:[%s3570_s1 + $0x98] sm:$0xff]   ;;  %v2723_v19 = vld [vmem:[%s3570_s1 + $0xa0] sm:$0xff]   ;;  %v2727_v23 = vld [vmem:[%s3570_s1 + $0xa8] sm:$0xff]  }
   0x9   :  { %2465 = vmatpush3.bf16.msra.mxu1 %v2711_v7  ;;  %2444 = vmatprep.subr.bf16.mxu0 %v2712_v8  ;;  %v2728_v24 = vld [vmem:[%s3570_s1 + $0x70] sm:$0xff]   ;;  %v2732_v28 = vld [vmem:[%s3570_s1 + $0x78] sm:$0xff]   ;;  %v15_v32 = vld [vmem:[%s3571_s0] sm:$0xff] }
   0xa   :  { %2466 = vmatprep.subr.bf16.mxu1 %v2713_v9  ;;  %v2729_v25 = vld [vmem:[%s3570_s1 + $0xf0] sm:$0xff]   ;;  %v2733_v29 = vld [vmem:[%s3570_s1 + $0xf8] sm:$0xff]   ;;  %v27_v33 = vld [vmem:[%s3571_s0 + $0x60] sm:$0xff] }
   0xb   :  { %v2730_v26 = vld [vmem:[%s3570_s1 + $0x30] sm:$0xff]   ;;  %v2734_v30 = vld [vmem:[%s3570_s1 + $0x38] sm:$0xff]   ;;  %v16_v34 = vld [vmem:[%s3571_s0 + $0x8] sm:$0xff]  ;;  %v2215_v35 = vcombine.low %v15_v32, %v27_v33  ;;  %v2216_v36 = vcombine.high %v15_v32, %v27_v33 }
   0xc   :  { %2445 = vmatpush3.bf16.msra.mxu0 %v2714_v10  ;;  %v2731_v27 = vld [vmem:[%s3570_s1 + $0xb0] sm:$0xff]   ;;  %v2735_v31 = vld [vmem:[%s3570_s1 + $0xb8] sm:$0xff]   ;;  %v28_v37 = vld [vmem:[%s3571_s0 + $0x68] sm:$0xff] }
   0xd   :  { %2467 = vmatpush3.bf16.msra.mxu1 %v2715_v11  ;;  %2446 = vmatprep.subr.bf16.mxu0 %v2716_v12  ;;  %v2217_v38 = vcombine.low %v16_v34, %v28_v37  ;;  %v2218_v39 = vcombine.high %v16_v34, %v28_v37  ;;  %v2736_v40 = vld [vmem:[%s3570_s1 + $0x140] sm:$0xff]   ;;  %v2740_v44 = vld [vmem:[%s3570_s1 + $0x148] sm:$0xff]   ;;  %v2744_v48 = vld [vmem:[%s3570_s1 + $0x150] sm:$0xff]  }
   0xe   :  { %2468 = vmatprep.subr.bf16.mxu1 %v2717_v13  ;;  %1734 = vmatprep.mubr.bf16.mxu0 %v2216_v36  ;;  %v2737_v41 = vld [vmem:[%s3570_s1 + $0x1c0] sm:$0xff]   ;;  %v2741_v45 = vld [vmem:[%s3570_s1 + $0x1c8] sm:$0xff]   ;;  %v2745_v49 = vld [vmem:[%s3570_s1 + $0x1d0] sm:$0xff]  }
   0xf   :  { %1775 = vmatprep.mubr.bf16.mxu1 %v2218_v39  ;;  %v2738_v42 = vld [vmem:[%s3570_s1 + $0x100] sm:$0xff]   ;;  %v2742_v46 = vld [vmem:[%s3570_s1 + $0x108] sm:$0xff]   ;;  %v2746_v50 = vld [vmem:[%s3570_s1 + $0x110] sm:$0xff]  }
  0x10   :  { %2447 = vmatpush3.bf16.msra.mxu0 %v2718_v14  ;;  %v2739_v43 = vld [vmem:[%s3570_s1 + $0x180] sm:$0xff]   ;;  %v2743_v47 = vld [vmem:[%s3570_s1 + $0x188] sm:$0xff]   ;;  %v2747_v51 = vld [vmem:[%s3570_s1 + $0x190] sm:$0xff]  }
  0x11   :  { %2469 = vmatpush3.bf16.msra.mxu1 %v2719_v15  ;;  %2448 = vmatprep.subr.bf16.mxu0 %v2720_v16  ;;  %v2748_v52 = vld [vmem:[%s3570_s1 + $0x158] sm:$0xff]   ;;  %v2752_v56 = vld [vmem:[%s3570_s1 + $0x160] sm:$0xff]   ;;  %v2756_v60 = vld [vmem:[%s3570_s1 + $0x168] sm:$0xff]  }
  0x12   :  { %2470 = vmatprep.subr.bf16.mxu1 %v2721_v17  ;;  %v2749_v53 = vld [vmem:[%s3570_s1 + $0x1d8] sm:$0xff]   ;;  %v2753_v57 = vld [vmem:[%s3570_s1 + $0x1e0] sm:$0xff]   ;;  %v2757_v61 = vld [vmem:[%s3570_s1 + $0x1e8] sm:$0xff]  }
  0x13   :  { %v2750_v54 = vld [vmem:[%s3570_s1 + $0x118] sm:$0xff]   ;;  %v2754_v58 = vld [vmem:[%s3570_s1 + $0x120] sm:$0xff]   ;;  %v2758_v62 = vld [vmem:[%s3570_s1 + $0x128] sm:$0xff]  }
  0x14   :  { %2449 = vmatpush3.bf16.msra.mxu0 %v2722_v18  ;;  %v2751_v55 = vld [vmem:[%s3570_s1 + $0x198] sm:$0xff]   ;;  %v2755_v59 = vld [vmem:[%s3570_s1 + $0x1a0] sm:$0xff]   ;;  %v2759_v63 = vld [vmem:[%s3570_s1 + $0x1a8] sm:$0xff]  }
  0x15   :  { %2471 = vmatpush3.bf16.msra.mxu1 %v2723_v19  ;;  %2450 = vmatprep.subr.bf16.mxu0 %v2724_v20  ;;  %v2760_v0 = vld [vmem:[%s3570_s1 + $0x170] sm:$0xff]   ;;  %v2764_v4 = vld [vmem:[%s3570_s1 + $0x178] sm:$0xff]   ;;  %v2768_v16 = vld [vmem:[%s3570_s1 + $0x240] sm:$0xff]  }
  0x16   :  { %2472 = vmatprep.subr.bf16.mxu1 %v2725_v21  ;;  %v2761_v1 = vld [vmem:[%s3570_s1 + $0x1f0] sm:$0xff]   ;;  %v2765_v5 = vld [vmem:[%s3570_s1 + $0x1f8] sm:$0xff]   ;;  %v2769_v17 = vld [vmem:[%s3570_s1 + $0x2c0] sm:$0xff]  }
  0x17   :  { %v2762_v2 = vld [vmem:[%s3570_s1 + $0x130] sm:$0xff]   ;;  %v2766_v6 = vld [vmem:[%s3570_s1 + $0x138] sm:$0xff]   ;;  %v2770_v18 = vld [vmem:[%s3570_s1 + $0x200] sm:$0xff]  }
  0x18   :  { %2451 = vmatpush3.bf16.msra.mxu0 %v2726_v22  ;;  %v2763_v3 = vld [vmem:[%s3570_s1 + $0x1b0] sm:$0xff]   ;;  %v2767_v7 = vld [vmem:[%s3570_s1 + $0x1b8] sm:$0xff]   ;;  %v2771_v19 = vld [vmem:[%s3570_s1 + $0x280] sm:$0xff]  }
  0x19   :  { %2473 = vmatpush3.bf16.msra.mxu1 %v2727_v23  ;;  %2452 = vmatprep.subr.bf16.mxu0 %v2728_v24  ;;  %v17_v8 = vld [vmem:[%s3571_s0 + $0x10] sm:$0xff]  ;;  %v18_v12 = vld [vmem:[%s3571_s0 + $0x18] sm:$0xff]  ;;  %v2772_v20 = vld [vmem:[%s3570_s1 + $0x248] sm:$0xff]  }
  0x1a   :  { %2474 = vmatprep.subr.bf16.mxu1 %v2729_v25  ;;  %v29_v9 = vld [vmem:[%s3571_s0 + $0x70] sm:$0xff]  ;;  %v30_v13 = vld [vmem:[%s3571_s0 + $0x78] sm:$0xff]  ;;  %v2773_v21 = vld [vmem:[%s3570_s1 + $0x2c8] sm:$0xff]  }
  0x1b   :  { %v2219_v10 = vcombine.low %v17_v8, %v29_v9  ;;  %v2220_v11 = vcombine.high %v17_v8, %v29_v9  ;;  %v2221_v14 = vcombine.low %v18_v12, %v30_v13  ;;  %v2222_v15 = vcombine.high %v18_v12, %v30_v13  ;;  %v2774_v22 = vld [vmem:[%s3570_s1 + $0x208] sm:$0xff]   ;;  %v2776_v24 = vld [vmem:[%s3570_s1 + $0x250] sm:$0xff]   ;;  %v2784_v32 = vld [vmem:[%s3570_s1 + $0x260] sm:$0xff]  }
  0x1c   :  { %2453 = vmatpush3.bf16.msra.mxu0 %v2730_v26  ;;  %v2775_v23 = vld [vmem:[%s3570_s1 + $0x288] sm:$0xff]   ;;  %v2777_v25 = vld [vmem:[%s3570_s1 + $0x2d0] sm:$0xff]   ;;  %v2785_v33 = vld [vmem:[%s3570_s1 + $0x2e0] sm:$0xff]  }
  0x1d   :  { %2475 = vmatpush3.bf16.msra.mxu1 %v2731_v27  ;;  %2454 = vmatprep.subr.bf16.mxu0 %v2732_v28  ;;  %v2778_v26 = vld [vmem:[%s3570_s1 + $0x210] sm:$0xff]   ;;  %v2780_v28 = vld [vmem:[%s3570_s1 + $0x258] sm:$0xff]   ;;  %v2786_v34 = vld [vmem:[%s3570_s1 + $0x220] sm:$0xff]  }
  0x1e   :  { %2476 = vmatprep.subr.bf16.mxu1 %v2733_v29  ;;  %v2779_v27 = vld [vmem:[%s3570_s1 + $0x290] sm:$0xff]   ;;  %v2781_v29 = vld [vmem:[%s3570_s1 + $0x2d8] sm:$0xff]   ;;  %v2788_v36 = vld [vmem:[%s3570_s1 + $0x268] sm:$0xff]  }
  0x1f   :  { %v2789_v37 = vld [vmem:[%s3570_s1 + $0x2e8] sm:$0xff]   ;;  %v2816_v8 = vld [vmem:[%s3570_s1 + $0x360] sm:$0xff]  }
  0x20   :  { %2455 = vmatpush3.bf16.msra.mxu0 %v2734_v30  ;;  %v2782_v30 = vld [vmem:[%s3570_s1 + $0x218] sm:$0xff]   ;;  %v2791_v39 = vld [vmem:[%s3570_s1 + $0x2a8] sm:$0xff]   ;;  %v2817_v9 = vld [vmem:[%s3570_s1 + $0x3e0] sm:$0xff]  }
  0x21   :  { %2477 = vmatpush3.bf16.msra.mxu1 %v2735_v31  ;;  %2484 = vmatprep.subr.bf16.mxu0 %v2736_v40  ;;  %v2783_v31 = vld [vmem:[%s3570_s1 + $0x298] sm:$0xff]   ;;  %v2792_v40 = vld [vmem:[%s3570_s1 + $0x270] sm:$0xff]   ;;  %v2820_v12 = vld [vmem:[%s3570_s1 + $0x368] sm:$0xff]  }
  0x22   :  { %2506 = vmatprep.subr.bf16.mxu1 %v2737_v41  ;;  %v2793_v41 = vld [vmem:[%s3570_s1 + $0x2f0] sm:$0xff]   ;;  %v2821_v13 = vld [vmem:[%s3570_s1 + $0x3e8] sm:$0xff]  }
  0x23   :  { %1735 = vmatmul.mubr.bf16.vlgmr.msra.gmra.mrb[0].mxu0 %v2215_v35  ;;  %v2787_v35 = vld [vmem:[%s3570_s1 + $0x2a0] sm:$0xff]  }
  0x24   :  { %1776 = vmatmul.mubr.bf16.vlgmr.msra.gmra.mrb[0].mxu1 %v2217_v38  ;;  %2485 = vmatpush3.bf16.msra.mxu0 %v2738_v42  ;;  %v2790_v38 = vld [vmem:[%s3570_s1 + $0x228] sm:$0xff]   ;;  %v2794_v42 = vld [vmem:[%s3570_s1 + $0x230] sm:$0xff]  }
  0x25   :  { %2507 = vmatpush3.bf16.msra.mxu1 %v2739_v43  ;;  %2486 = vmatprep.subr.bf16.mxu0 %v2740_v44  ;;  %v2795_v43 = vld [vmem:[%s3570_s1 + $0x2b0] sm:$0xff]   ;;  %v2796_v44 = vld [vmem:[%s3570_s1 + $0x278] sm:$0xff]  }
  0x26   :  { %2508 = vmatprep.subr.bf16.mxu1 %v2741_v45  ;;  %1816 = vmatprep.mubr.bf16.mxu0 %v2220_v11  ;;  %v2797_v45 = vld [vmem:[%s3570_s1 + $0x2f8] sm:$0xff]   ;;  %v2819_v11 = vld [vmem:[%s3570_s1 + $0x3a0] sm:$0xff]  }
  0x27   :  { %1857 = vmatprep.mubr.bf16.mxu1 %v2222_v15  ;;  %v2823_v15 = vld [vmem:[%s3570_s1 + $0x3a8] sm:$0xff]  }
  0x28   :  { %2487 = vmatpush3.bf16.msra.mxu0 %v2742_v46  ;;  %v2798_v46 = vld [vmem:[%s3570_s1 + $0x238] sm:$0xff]  }
  0x29   :  { %2509 = vmatpush3.bf16.msra.mxu1 %v2743_v47  ;;  %2488 = vmatprep.subr.bf16.mxu0 %v2744_v48  ;;  %v2799_v47 = vld [vmem:[%s3570_s1 + $0x2b8] sm:$0xff]   ;;  %v19_v48 = vld [vmem:[%s3571_s0 + $0x20] sm:$0xff] }
  0x2a   :  { %2510 = vmatprep.subr.bf16.mxu1 %v2745_v49  ;;  %v31_v49 = vld [vmem:[%s3571_s0 + $0x80] sm:$0xff] }
  0x2c   :  { %2489 = vmatpush3.bf16.msra.mxu0 %v2746_v50  ;;  %v20_v50 = vld [vmem:[%s3571_s0 + $0x28] sm:$0xff] }
  0x2d   :  { %2511 = vmatpush3.bf16.msra.mxu1 %v2747_v51  ;;  %2490 = vmatprep.subr.bf16.mxu0 %v2748_v52  ;;  %v32_v51 = vld [vmem:[%s3571_s0 + $0x88] sm:$0xff]  ;;  %v2223_v52 = vcombine.low %v19_v48, %v31_v49 }
  0x2e   :  { %2512 = vmatprep.subr.bf16.mxu1 %v2749_v53  ;;  %v2224_v53 = vcombine.high %v19_v48, %v31_v49  ;;  %v2848_v48 = vld [vmem:[%s3570_s1 + $0x460] sm:$0xff]  }
  0x2f   :  { %v2849_v49 = vld [vmem:[%s3570_s1 + $0x4e0] sm:$0xff]  }
  0x30   :  { %2491 = vmatpush3.bf16.msra.mxu0 %v2750_v54  ;;  %v2225_v54 = vcombine.low %v20_v50, %v32_v51 }
  0x31   :  { %2513 = vmatpush3.bf16.msra.mxu1 %v2751_v55  ;;  %2492 = vmatprep.subr.bf16.mxu0 %v2752_v56  ;;  %v2226_v55 = vcombine.high %v20_v50, %v32_v51  ;;  %v2800_v56 = vld [vmem:[%s3570_s1 + $0x340] sm:$0xff]  }
  0x32   :  { %2514 = vmatprep.subr.bf16.mxu1 %v2753_v57  ;;  %v2801_v57 = vld [vmem:[%s3570_s1 + $0x3c0] sm:$0xff]  }
  0x33   :  { %v2850_v50 = vld [vmem:[%s3570_s1 + $0x420] sm:$0xff]  }
  0x34   :  { %2493 = vmatpush3.bf16.msra.mxu0 %v2754_v58  ;;  %v2802_v58 = vld [vmem:[%s3570_s1 + $0x300] sm:$0xff]  }
  0x35   :  { %2515 = vmatpush3.bf16.msra.mxu1 %v2755_v59  ;;  %2494 = vmatprep.subr.bf16.mxu0 %v2756_v60  ;;  %v2803_v59 = vld [vmem:[%s3570_s1 + $0x380] sm:$0xff]   ;;  %v2804_v60 = vld [vmem:[%s3570_s1 + $0x348] sm:$0xff]  }
  0x36   :  { %2516 = vmatprep.subr.bf16.mxu1 %v2757_v61  ;;  %v2805_v61 = vld [vmem:[%s3570_s1 + $0x3c8] sm:$0xff]   ;;  %v2851_v51 = vld [vmem:[%s3570_s1 + $0x4a0] sm:$0xff]  }
  0x38   :  { %2495 = vmatpush3.bf16.msra.mxu0 %v2758_v62  ;;  %v2806_v62 = vld [vmem:[%s3570_s1 + $0x308] sm:$0xff]  }
  0x39   :  { %2517 = vmatpush3.bf16.msra.mxu1 %v2759_v63  ;;  %2496 = vmatprep.subr.bf16.mxu0 %v2760_v0  ;;  %v2807_v63 = vld [vmem:[%s3570_s1 + $0x388] sm:$0xff]   ;;  %v2808_v0 = vld [vmem:[%s3570_s1 + $0x350] sm:$0xff]  }
  0x3a   :  { %2518 = vmatprep.subr.bf16.mxu1 %v2761_v1  ;;  %v2809_v1 = vld [vmem:[%s3570_s1 + $0x3d0] sm:$0xff]  }
  0x3c   :  { %2497 = vmatpush3.bf16.msra.mxu0 %v2762_v2  ;;  %v2810_v2 = vld [vmem:[%s3570_s1 + $0x310] sm:$0xff]  }
  0x3d   :  { %2519 = vmatpush3.bf16.msra.mxu1 %v2763_v3  ;;  %2498 = vmatprep.subr.bf16.mxu0 %v2764_v4  ;;  %v2811_v3 = vld [vmem:[%s3570_s1 + $0x390] sm:$0xff]   ;;  %v2812_v4 = vld [vmem:[%s3570_s1 + $0x358] sm:$0xff]  }
  0x3e   :  { %2520 = vmatprep.subr.bf16.mxu1 %v2765_v5  ;;  %v2813_v5 = vld [vmem:[%s3570_s1 + $0x3d8] sm:$0xff]  }
  0x40   :  { %2499 = vmatpush3.bf16.msra.mxu0 %v2766_v6  ;;  %v2814_v6 = vld [vmem:[%s3570_s1 + $0x318] sm:$0xff]  }
  0x41   :  { %2521 = vmatpush3.bf16.msra.mxu1 %v2767_v7  ;;  %2528 = vmatprep.subr.bf16.mxu0 %v2768_v16  ;;  %v2815_v7 = vld [vmem:[%s3570_s1 + $0x398] sm:$0xff]   ;;  %v2824_v16 = vld [vmem:[%s3570_s1 + $0x370] sm:$0xff]  }
  0x42   :  { %2550 = vmatprep.subr.bf16.mxu1 %v2769_v17  ;;  %v2825_v17 = vld [vmem:[%s3570_s1 + $0x3f0] sm:$0xff]  }
  0x43   :  { %1817 = vmatmul.mubr.bf16.vlgmr.msra.gmra.mrb[4].mxu0 %v2219_v10  ;;  %v2818_v10 = vld [vmem:[%s3570_s1 + $0x320] sm:$0xff]  }
  0x44   :  { %1858 = vmatmul.mubr.bf16.vlgmr.msra.gmra.mrb[4].mxu1 %v2221_v14  ;;  %2529 = vmatpush3.bf16.msra.mxu0 %v2770_v18  ;;  %v2822_v14 = vld [vmem:[%s3570_s1 + $0x328] sm:$0xff]   ;;  %v2826_v18 = vld [vmem:[%s3570_s1 + $0x330] sm:$0xff]  }
  0x45   :  { %2551 = vmatpush3.bf16.msra.mxu1 %v2771_v19  ;;  %2530 = vmatprep.subr.bf16.mxu0 %v2772_v20  ;;  %v2827_v19 = vld [vmem:[%s3570_s1 + $0x3b0] sm:$0xff]   ;;  %v2828_v20 = vld [vmem:[%s3570_s1 + $0x378] sm:$0xff]  }
  0x46   :  { %2552 = vmatprep.subr.bf16.mxu1 %v2773_v21  ;;  %1898 = vmatprep.mubr.bf16.mxu0 %v2224_v53  ;;  %v2829_v21 = vld [vmem:[%s3570_s1 + $0x3f8] sm:$0xff]   ;;  %v2853_v53 = vld [vmem:[%s3570_s1 + $0x4e8] sm:$0xff]  }
  0x47   :  { %1939 = vmatprep.mubr.bf16.mxu1 %v2226_v55  ;;  %v2855_v55 = vld [vmem:[%s3570_s1 + $0x4a8] sm:$0xff]  }
  0x48   :  { %2531 = vmatpush3.bf16.msra.mxu0 %v2774_v22  ;;  %v2830_v22 = vld [vmem:[%s3570_s1 + $0x338] sm:$0xff]  }
  0x49   :  { %2553 = vmatpush3.bf16.msra.mxu1 %v2775_v23  ;;  %2532 = vmatprep.subr.bf16.mxu0 %v2776_v24  ;;  %v2831_v23 = vld [vmem:[%s3570_s1 + $0x3b8] sm:$0xff]   ;;  %v21_v24 = vld [vmem:[%s3571_s0 + $0x30] sm:$0xff] }
  0x4a   :  { %2554 = vmatprep.subr.bf16.mxu1 %v2777_v25  ;;  %v33_v25 = vld [vmem:[%s3571_s0 + $0x90] sm:$0xff] }
  0x4c   :  { %2533 = vmatpush3.bf16.msra.mxu0 %v2778_v26  ;;  %v22_v26 = vld [vmem:[%s3571_s0 + $0x38] sm:$0xff] }
  0x4d   :  { %2555 = vmatpush3.bf16.msra.mxu1 %v2779_v27  ;;  %2534 = vmatprep.subr.bf16.mxu0 %v2780_v28  ;;  %v2227_v27 = vcombine.low %v21_v24, %v33_v25  ;;  %v2228_v28 = vcombine.high %v21_v24, %v33_v25  ;;  %v2880_v24 = vld [vmem:[%s3570_s1 + $0x560] sm:$0xff]  }
  0x4e   :  { %2556 = vmatprep.subr.bf16.mxu1 %v2781_v29  ;;  %v34_v29 = vld [vmem:[%s3571_s0 + $0x98] sm:$0xff]  ;;  %v2881_v25 = vld [vmem:[%s3570_s1 + $0x5e0] sm:$0xff]  }
  0x50   :  { %2535 = vmatpush3.bf16.msra.mxu0 %v2782_v30  ;;  %v2229_v30 = vcombine.low %v22_v26, %v34_v29 }
  0x51   :  { %2557 = vmatpush3.bf16.msra.mxu1 %v2783_v31  ;;  %2536 = vmatprep.subr.bf16.mxu0 %v2784_v32  ;;  %v2230_v31 = vcombine.high %v22_v26, %v34_v29  ;;  %v2832_v32 = vld [vmem:[%s3570_s1 + $0x440] sm:$0xff]   ;;  %v2885_v29 = vld [vmem:[%s3570_s1 + $0x5e8] sm:$0xff]  }
  0x52   :  { %2558 = vmatprep.subr.bf16.mxu1 %v2785_v33  ;;  %v2833_v33 = vld [vmem:[%s3570_s1 + $0x4c0] sm:$0xff]  }
  0x53   :  { %v2882_v26 = vld [vmem:[%s3570_s1 + $0x520] sm:$0xff]  }
  0x54   :  { %2537 = vmatpush3.bf16.msra.mxu0 %v2786_v34  ;;  %v2834_v34 = vld [vmem:[%s3570_s1 + $0x400] sm:$0xff]  }
  0x55   :  { %2559 = vmatpush3.bf16.msra.mxu1 %v2787_v35  ;;  %2538 = vmatprep.subr.bf16.mxu0 %v2788_v36  ;;  %v2835_v35 = vld [vmem:[%s3570_s1 + $0x480] sm:$0xff]   ;;  %v2836_v36 = vld [vmem:[%s3570_s1 + $0x448] sm:$0xff]  }
  0x56   :  { %2560 = vmatprep.subr.bf16.mxu1 %v2789_v37  ;;  %v2837_v37 = vld [vmem:[%s3570_s1 + $0x4c8] sm:$0xff]  }
  0x58   :  { %2539 = vmatpush3.bf16.msra.mxu0 %v2790_v38  ;;  %v2838_v38 = vld [vmem:[%s3570_s1 + $0x408] sm:$0xff]  }
  0x59   :  { %2561 = vmatpush3.bf16.msra.mxu1 %v2791_v39  ;;  %2540 = vmatprep.subr.bf16.mxu0 %v2792_v40  ;;  %v2839_v39 = vld [vmem:[%s3570_s1 + $0x488] sm:$0xff]   ;;  %v2840_v40 = vld [vmem:[%s3570_s1 + $0x450] sm:$0xff]  }
  0x5a   :  { %2562 = vmatprep.subr.bf16.mxu1 %v2793_v41  ;;  %v2841_v41 = vld [vmem:[%s3570_s1 + $0x4d0] sm:$0xff]  }
  0x5c   :  { %2541 = vmatpush3.bf16.msra.mxu0 %v2794_v42  ;;  %v2842_v42 = vld [vmem:[%s3570_s1 + $0x410] sm:$0xff]  }
  0x5d   :  { %2563 = vmatpush3.bf16.msra.mxu1 %v2795_v43  ;;  %2542 = vmatprep.subr.bf16.mxu0 %v2796_v44  ;;  %v2843_v43 = vld [vmem:[%s3570_s1 + $0x490] sm:$0xff]   ;;  %v2844_v44 = vld [vmem:[%s3570_s1 + $0x458] sm:$0xff]  }
  0x5e   :  { %2564 = vmatprep.subr.bf16.mxu1 %v2797_v45  ;;  %v2845_v45 = vld [vmem:[%s3570_s1 + $0x4d8] sm:$0xff]  }
  0x60   :  { %2543 = vmatpush3.bf16.msra.mxu0 %v2798_v46  ;;  %v2846_v46 = vld [vmem:[%s3570_s1 + $0x418] sm:$0xff]  }
  0x61   :  { %2565 = vmatpush3.bf16.msra.mxu1 %v2799_v47  ;;  %2572 = vmatprep.subr.bf16.mxu0 %v2800_v56  ;;  %v2847_v47 = vld [vmem:[%s3570_s1 + $0x498] sm:$0xff]   ;;  %v2856_v56 = vld [vmem:[%s3570_s1 + $0x470] sm:$0xff]  }
  0x62   :  { %2594 = vmatprep.subr.bf16.mxu1 %v2801_v57  ;;  %v2857_v57 = vld [vmem:[%s3570_s1 + $0x4f0] sm:$0xff]  }
  0x63   :  { %1899 = vmatmul.mubr.bf16.vlgmr.msra.gmra.mrb[8].mxu0 %v2223_v52  ;;  %v2852_v52 = vld [vmem:[%s3570_s1 + $0x468] sm:$0xff]  }
  0x64   :  { %1940 = vmatmul.mubr.bf16.vlgmr.msra.gmra.mrb[8].mxu1 %v2225_v54  ;;  %2573 = vmatpush3.bf16.msra.mxu0 %v2802_v58  ;;  %v2854_v54 = vld [vmem:[%s3570_s1 + $0x428] sm:$0xff]   ;;  %v2858_v58 = vld [vmem:[%s3570_s1 + $0x430] sm:$0xff]  }
  0x65   :  { %2595 = vmatpush3.bf16.msra.mxu1 %v2803_v59  ;;  %2574 = vmatprep.subr.bf16.mxu0 %v2804_v60  ;;  %v2859_v59 = vld [vmem:[%s3570_s1 + $0x4b0] sm:$0xff]   ;;  %v2860_v60 = vld [vmem:[%s3570_s1 + $0x478] sm:$0xff]  }
  0x66   :  { %2596 = vmatprep.subr.bf16.mxu1 %v2805_v61  ;;  %1980 = vmatprep.mubr.bf16.mxu0 %v2228_v28  ;;  %v2861_v61 = vld [vmem:[%s3570_s1 + $0x4f8] sm:$0xff]   ;;  %v2884_v28 = vld [vmem:[%s3570_s1 + $0x568] sm:$0xff]  }
  0x67   :  { %2021 = vmatprep.mubr.bf16.mxu1 %v2230_v31  ;;  %v2887_v31 = vld [vmem:[%s3570_s1 + $0x5a8] sm:$0xff]  }
  0x68   :  { %2575 = vmatpush3.bf16.msra.mxu0 %v2806_v62  ;;  %v2862_v62 = vld [vmem:[%s3570_s1 + $0x438] sm:$0xff]  }
  0x69   :  { %2597 = vmatpush3.bf16.msra.mxu1 %v2807_v63  ;;  %2576 = vmatprep.subr.bf16.mxu0 %v2808_v0  ;;  %v2863_v63 = vld [vmem:[%s3570_s1 + $0x4b8] sm:$0xff]   ;;  %v23_v0 = vld [vmem:[%s3571_s0 + $0x40] sm:$0xff] }
  0x6a   :  { %2598 = vmatprep.subr.bf16.mxu1 %v2809_v1  ;;  %v35_v1 = vld [vmem:[%s3571_s0 + $0xa0] sm:$0xff] }
  0x6c   :  { %2577 = vmatpush3.bf16.msra.mxu0 %v2810_v2  ;;  %v2231_v2 = vcombine.low %v23_v0, %v35_v1 }
  0x6d   :  { %2599 = vmatpush3.bf16.msra.mxu1 %v2811_v3  ;;  %2578 = vmatprep.subr.bf16.mxu0 %v2812_v4  ;;  %v2232_v3 = vcombine.high %v23_v0, %v35_v1  ;;  %v24_v4 = vld [vmem:[%s3571_s0 + $0x48] sm:$0xff] }
  0x6e   :  { %2600 = vmatprep.subr.bf16.mxu1 %v2813_v5  ;;  %v36_v5 = vld [vmem:[%s3571_s0 + $0xa8] sm:$0xff] }
  0x70   :  { %2579 = vmatpush3.bf16.msra.mxu0 %v2814_v6  ;;  %v2233_v6 = vcombine.low %v24_v4, %v36_v5 }
  0x71   :  { %2601 = vmatpush3.bf16.msra.mxu1 %v2815_v7  ;;  %2580 = vmatprep.subr.bf16.mxu0 %v2816_v8  ;;  %v2234_v7 = vcombine.high %v24_v4, %v36_v5  ;;  %v2864_v8 = vld [vmem:[%s3570_s1 + $0x540] sm:$0xff]  }
  0x72   :  { %2602 = vmatprep.subr.bf16.mxu1 %v2817_v9  ;;  %v2865_v9 = vld [vmem:[%s3570_s1 + $0x5c0] sm:$0xff]  }
  0x74   :  { %2581 = vmatpush3.bf16.msra.mxu0 %v2818_v10  ;;  %v2866_v10 = vld [vmem:[%s3570_s1 + $0x500] sm:$0xff]  }
  0x75   :  { %2603 = vmatpush3.bf16.msra.mxu1 %v2819_v11  ;;  %2582 = vmatprep.subr.bf16.mxu0 %v2820_v12  ;;  %v2867_v11 = vld [vmem:[%s3570_s1 + $0x580] sm:$0xff]   ;;  %v2868_v12 = vld [vmem:[%s3570_s1 + $0x548] sm:$0xff]  }
  0x76   :  { %2604 = vmatprep.subr.bf16.mxu1 %v2821_v13  ;;  %v2869_v13 = vld [vmem:[%s3570_s1 + $0x5c8] sm:$0xff]  }
  0x78   :  { %2583 = vmatpush3.bf16.msra.mxu0 %v2822_v14  ;;  %v2870_v14 = vld [vmem:[%s3570_s1 + $0x508] sm:$0xff]  }
  0x79   :  { %2605 = vmatpush3.bf16.msra.mxu1 %v2823_v15  ;;  %2584 = vmatprep.subr.bf16.mxu0 %v2824_v16  ;;  %v2871_v15 = vld [vmem:[%s3570_s1 + $0x588] sm:$0xff]   ;;  %v2872_v16 = vld [vmem:[%s3570_s1 + $0x550] sm:$0xff]  }
  0x7a   :  { %2606 = vmatprep.subr.bf16.mxu1 %v2825_v17  ;;  %v2873_v17 = vld [vmem:[%s3570_s1 + $0x5d0] sm:$0xff]  }
  0x7c   :  { %2585 = vmatpush3.bf16.msra.mxu0 %v2826_v18  ;;  %v2874_v18 = vld [vmem:[%s3570_s1 + $0x510] sm:$0xff]  }
  0x7d   :  { %2607 = vmatpush3.bf16.msra.mxu1 %v2827_v19  ;;  %2586 = vmatprep.subr.bf16.mxu0 %v2828_v20  ;;  %v2875_v19 = vld [vmem:[%s3570_s1 + $0x590] sm:$0xff]   ;;  %v2876_v20 = vld [vmem:[%s3570_s1 + $0x558] sm:$0xff]  }
  0x7e   :  { %2608 = vmatprep.subr.bf16.mxu1 %v2829_v21  ;;  %v2877_v21 = vld [vmem:[%s3570_s1 + $0x5d8] sm:$0xff]  }
  0x80   :  { %2587 = vmatpush3.bf16.msra.mxu0 %v2830_v22  ;;  %v2878_v22 = vld [vmem:[%s3570_s1 + $0x518] sm:$0xff]  }
  0x81   :  { %2609 = vmatpush3.bf16.msra.mxu1 %v2831_v23  ;;  %2616 = vmatprep.subr.bf16.mxu0 %v2832_v32  ;;  %v2879_v23 = vld [vmem:[%s3570_s1 + $0x598] sm:$0xff]   ;;  %v2888_v32 = vld [vmem:[%s3570_s1 + $0x570] sm:$0xff]  }
  0x82   :  { %2638 = vmatprep.subr.bf16.mxu1 %v2833_v33  ;;  %v2889_v33 = vld [vmem:[%s3570_s1 + $0x5f0] sm:$0xff]  }
  0x83   :  { %1981 = vmatmul.mubr.bf16.vlgmr.msra.gmra.mrb[12].mxu0 %v2227_v27  ;;  %v2883_v27 = vld [vmem:[%s3570_s1 + $0x5a0] sm:$0xff]  }
  0x84   :  { %2022 = vmatmul.mubr.bf16.vlgmr.msra.gmra.mrb[12].mxu1 %v2229_v30  ;;  %2617 = vmatpush3.bf16.msra.mxu0 %v2834_v34  ;;  %v2886_v30 = vld [vmem:[%s3570_s1 + $0x528] sm:$0xff]   ;;  %v2890_v34 = vld [vmem:[%s3570_s1 + $0x530] sm:$0xff]  }
  0x85   :  { %2639 = vmatpush3.bf16.msra.mxu1 %v2835_v35  ;;  %2618 = vmatprep.subr.bf16.mxu0 %v2836_v36  ;;  %v2891_v35 = vld [vmem:[%s3570_s1 + $0x5b0] sm:$0xff]   ;;  %v2892_v36 = vld [vmem:[%s3570_s1 + $0x578] sm:$0xff]  }
  0x86   :  { %2640 = vmatprep.subr.bf16.mxu1 %v2837_v37  ;;  %2062 = vmatprep.mubr.bf16.mxu0 %v2232_v3  ;;  %v2893_v37 = vld [vmem:[%s3570_s1 + $0x5f8] sm:$0xff]  }
  0x87   :  { %2103 = vmatprep.mubr.bf16.mxu1 %v2234_v7 }
  0x88   :  { %2619 = vmatpush3.bf16.msra.mxu0 %v2838_v38  ;;  %v2894_v38 = vld [vmem:[%s3570_s1 + $0x538] sm:$0xff]  }
  0x89   :  { %2641 = vmatpush3.bf16.msra.mxu1 %v2839_v39  ;;  %2620 = vmatprep.subr.bf16.mxu0 %v2840_v40  ;;  %v2895_v39 = vld [vmem:[%s3570_s1 + $0x5b8] sm:$0xff]   ;;  %v25_v40 = vld [vmem:[%s3571_s0 + $0x50] sm:$0xff] }
  0x8a   :  { %2642 = vmatprep.subr.bf16.mxu1 %v2841_v41  ;;  %v37_v41 = vld [vmem:[%s3571_s0 + $0xb0] sm:$0xff] }
  0x8c   :  { %2621 = vmatpush3.bf16.msra.mxu0 %v2842_v42  ;;  %v26_v42 = vld [vmem:[%s3571_s0 + $0x58] sm:$0xff] }
  0x8d   :  { %2643 = vmatpush3.bf16.msra.mxu1 %v2843_v43  ;;  %2622 = vmatprep.subr.bf16.mxu0 %v2844_v44  ;;  %v38_v43 = vld [vmem:[%s3571_s0 + $0xb8] sm:$0xff]  ;;  %v2235_v44 = vcombine.low %v25_v40, %v37_v41 }
  0x8e   :  { %2644 = vmatprep.subr.bf16.mxu1 %v2845_v45  ;;  %v2236_v45 = vcombine.high %v25_v40, %v37_v41 }
  0x90   :  { %2623 = vmatpush3.bf16.msra.mxu0 %v2846_v46  ;;  %v2237_v46 = vcombine.low %v26_v42, %v38_v43 }
  0x91   :  { %2645 = vmatpush3.bf16.msra.mxu1 %v2847_v47  ;;  %2624 = vmatprep.subr.bf16.mxu0 %v2848_v48  ;;  %v2238_v47 = vcombine.high %v26_v42, %v38_v43 }
  0x92   :  { %2646 = vmatprep.subr.bf16.mxu1 %v2849_v49 }
  0x94   :  { %2625 = vmatpush3.bf16.msra.mxu0 %v2850_v50  ;;  %v2214_v50 = vld [vmem:[%s3572_s2] ss:$0 sm:$0xff] }
  0x95   :  { %2647 = vmatpush3.bf16.msra.mxu1 %v2851_v51  ;;  %2626 = vmatprep.subr.bf16.mxu0 %v2852_v52 }
  0x96   :  { %2648 = vmatprep.subr.bf16.mxu1 %v2853_v53 }
  0x98   :  { %2627 = vmatpush3.bf16.msra.mxu0 %v2854_v54 }
  0x99   :  { %2649 = vmatpush3.bf16.msra.mxu1 %v2855_v55  ;;  %2628 = vmatprep.subr.bf16.mxu0 %v2856_v56 }
  0x9a   :  { %2650 = vmatprep.subr.bf16.mxu1 %v2857_v57 }
  0x9c   :  { %2629 = vmatpush3.bf16.msra.mxu0 %v2858_v58 }
  0x9d   :  { %2651 = vmatpush3.bf16.msra.mxu1 %v2859_v59  ;;  %2630 = vmatprep.subr.bf16.mxu0 %v2860_v60 }
  0x9e   :  { %2652 = vmatprep.subr.bf16.mxu1 %v2861_v61 }
  0xa0   :  { %2631 = vmatpush3.bf16.msra.mxu0 %v2862_v62 }
  0xa1   :  { %2653 = vmatpush3.bf16.msra.mxu1 %v2863_v63  ;;  %2660 = vmatprep.subr.bf16.mxu0 %v2864_v8 }
  0xa2   :  { %2682 = vmatprep.subr.bf16.mxu1 %v2865_v9 }
  0xa3   :  { %2063 = vmatmul.mubr.bf16.vlgmr.msra.gmra.mrb[16].mxu0 %v2231_v2 }
  0xa4   :  { %2104 = vmatmul.mubr.bf16.vlgmr.msra.gmra.mrb[16].mxu1 %v2233_v6  ;;  %2661 = vmatpush3.bf16.msra.mxu0 %v2866_v10 }
  0xa5   :  { %2683 = vmatpush3.bf16.msra.mxu1 %v2867_v11  ;;  %2662 = vmatprep.subr.bf16.mxu0 %v2868_v12 }
  0xa6   :  { %2684 = vmatprep.subr.bf16.mxu1 %v2869_v13  ;;  %2144 = vmatprep.mubr.bf16.mxu0 %v2236_v45 }
  0xa7   :  { %2185 = vmatprep.mubr.bf16.mxu1 %v2238_v47 }
  0xa8   :  { %2663 = vmatpush3.bf16.msra.mxu0 %v2870_v14 }
  0xa9   :  { %2685 = vmatpush3.bf16.msra.mxu1 %v2871_v15  ;;  %2664 = vmatprep.subr.bf16.mxu0 %v2872_v16 }
  0xaa   :  { %2686 = vmatprep.subr.bf16.mxu1 %v2873_v17 }
  0xac   :  { %2665 = vmatpush3.bf16.msra.mxu0 %v2874_v18 }
  0xad   :  { %2687 = vmatpush3.bf16.msra.mxu1 %v2875_v19  ;;  %2666 = vmatprep.subr.bf16.mxu0 %v2876_v20 }
  0xae   :  { %2688 = vmatprep.subr.bf16.mxu1 %v2877_v21 }
  0xb0   :  { %2667 = vmatpush3.bf16.msra.mxu0 %v2878_v22 }
  0xb1   :  { %2689 = vmatpush3.bf16.msra.mxu1 %v2879_v23  ;;  %2668 = vmatprep.subr.bf16.mxu0 %v2880_v24 }
  0xb2   :  { %2690 = vmatprep.subr.bf16.mxu1 %v2881_v25 }
  0xb4   :  { %2669 = vmatpush3.bf16.msra.mxu0 %v2882_v26 }
  0xb5   :  { %2691 = vmatpush3.bf16.msra.mxu1 %v2883_v27  ;;  %2670 = vmatprep.subr.bf16.mxu0 %v2884_v28 }
  0xb6   :  { %2692 = vmatprep.subr.bf16.mxu1 %v2885_v29 }
  0xb8   :  { %2671 = vmatpush3.bf16.msra.mxu0 %v2886_v30 }
  0xb9   :  { %2693 = vmatpush3.bf16.msra.mxu1 %v2887_v31  ;;  %2672 = vmatprep.subr.bf16.mxu0 %v2888_v32 }
  0xba   :  { %2694 = vmatprep.subr.bf16.mxu1 %v2889_v33 }
  0xbc   :  { %2673 = vmatpush3.bf16.msra.mxu0 %v2890_v34 }
  0xbd   :  { %2695 = vmatpush3.bf16.msra.mxu1 %v2891_v35  ;;  %2674 = vmatprep.subr.bf16.mxu0 %v2892_v36 }
  0xbe   :  { %2696 = vmatprep.subr.bf16.mxu1 %v2893_v37 }
  0xc0   :  { %2675 = vmatpush3.bf16.msra.mxu0 %v2894_v38 }
  0xc1   :  { %2697 = vmatpush3.bf16.msra.mxu1 %v2895_v39 }
  0xc3   :  { %2145 = vmatmul.mubr.bf16.vlgmr.msra.gmra.mrb[20].mxu0 %v2235_v44 }
  0xc4   :  { %2186 = vmatmul.mubr.bf16.vlgmr.msra.gmra.mrb[20].mxu1 %v2237_v46 }
  0xf6   :  { %v2456_v48 = vpop.f32.mrb[0].mxu0 }
  0xf7   :  { %v2478_v49 = vpop.f32.mrb[0].mxu1  ;;  %v2457_v51 = vpop.f32.mrb[1].mxu0 }
  0xf8   :  { %v2458_v52 = vadd.f32 %v2457_v51, %v2456_v48  ;;  %v2479_v53 = vpop.f32.mrb[1].mxu1  ;;  %v2459_v54 = vpop.f32.mrb[2].mxu0 }
  0xf9   :  { %v2480_v55 = vadd.f32 %v2479_v53, %v2478_v49  ;;  %v2481_v56 = vpop.f32.mrb[2].mxu1  ;;  %v2460_v57 = vpop.f32.mrb[3].mxu0 }
  0xfa   :  { %v1737_v58 = vadd.f32 %v2458_v52, %v2214_v50  ;;  %v2461_v59 = vadd.f32 %v2460_v57, %v2459_v54  ;;  %v2482_v60 = vpop.f32.mrb[3].mxu1 }
  0xfb   :  { %v2483_v61 = vadd.f32 %v2482_v60, %v2481_v56 }
  0xfc   :  { %v1778_v62 = vadd.f32 %v2480_v55, %v1737_v58  ;;  %v1740_v63 = vadd.f32 %v2461_v59, %v2214_v50 }
  0xfe   :  { %v1781_v0 = vadd.f32 %v2483_v61, %v1740_v63 }
 0x116   :  { %v2500_v1 = vpop.f32.mrb[4].mxu0 }
 0x117   :  { %v2522_v2 = vpop.f32.mrb[4].mxu1  ;;  %v2501_v3 = vpop.f32.mrb[5].mxu0 }
 0x118   :  { %v2502_v4 = vadd.f32 %v2501_v3, %v2500_v1  ;;  %v2523_v5 = vpop.f32.mrb[5].mxu1  ;;  %v2503_v6 = vpop.f32.mrb[6].mxu0 }
 0x119   :  { %v2524_v7 = vadd.f32 %v2523_v5, %v2522_v2  ;;  %v2525_v8 = vpop.f32.mrb[6].mxu1  ;;  %v2504_v9 = vpop.f32.mrb[7].mxu0 }
 0x11a   :  { %v1819_v10 = vadd.f32 %v2502_v4, %v1778_v62  ;;  %v2505_v11 = vadd.f32 %v2504_v9, %v2503_v6  ;;  %v2526_v12 = vpop.f32.mrb[7].mxu1 }
 0x11b   :  { %v2527_v13 = vadd.f32 %v2526_v12, %v2525_v8 }
 0x11c   :  { %v1860_v14 = vadd.f32 %v2524_v7, %v1819_v10  ;;  %v1822_v15 = vadd.f32 %v2505_v11, %v1781_v0 }
 0x11e   :  { %v1863_v16 = vadd.f32 %v2527_v13, %v1822_v15 }
 0x136   :  { %v2544_v17 = vpop.f32.mrb[8].mxu0 }
 0x137   :  { %v2566_v18 = vpop.f32.mrb[8].mxu1  ;;  %v2545_v19 = vpop.f32.mrb[9].mxu0 }
 0x138   :  { %v2567_v20 = vpop.f32.mrb[9].mxu1  ;;  %v2546_v21 = vadd.f32 %v2545_v19, %v2544_v17  ;;  %v2547_v23 = vpop.f32.mrb[10].mxu0 }
 0x139   :  { %v2568_v22 = vadd.f32 %v2567_v20, %v2566_v18  ;;  %v2569_v24 = vpop.f32.mrb[10].mxu1  ;;  %v2548_v25 = vpop.f32.mrb[11].mxu0 }
 0x13a   :  { %v2570_v26 = vpop.f32.mrb[11].mxu1  ;;  %v1901_v27 = vadd.f32 %v2546_v21, %v1860_v14  ;;  %v2549_v28 = vadd.f32 %v2548_v25, %v2547_v23 }
 0x13b   :  { %v2571_v29 = vadd.f32 %v2570_v26, %v2569_v24 }
 0x13c   :  { %v1942_v30 = vadd.f32 %v2568_v22, %v1901_v27  ;;  %v1904_v31 = vadd.f32 %v2549_v28, %v1863_v16 }
 0x13e   :  { %v1945_v32 = vadd.f32 %v2571_v29, %v1904_v31 }
 0x156   :  { %v2588_v33 = vpop.f32.mrb[12].mxu0 }
 0x157   :  { %v2610_v34 = vpop.f32.mrb[12].mxu1  ;;  %v2589_v35 = vpop.f32.mrb[13].mxu0 }
 0x158   :  { %v2590_v36 = vadd.f32 %v2589_v35, %v2588_v33  ;;  %v2611_v37 = vpop.f32.mrb[13].mxu1  ;;  %v2591_v38 = vpop.f32.mrb[14].mxu0 }
 0x159   :  { %v2612_v39 = vadd.f32 %v2611_v37, %v2610_v34  ;;  %v2613_v40 = vpop.f32.mrb[14].mxu1  ;;  %v2592_v41 = vpop.f32.mrb[15].mxu0 }
 0x15a   :  { %v1983_v42 = vadd.f32 %v2590_v36, %v1942_v30  ;;  %v2593_v43 = vadd.f32 %v2592_v41, %v2591_v38  ;;  %v2614_v44 = vpop.f32.mrb[15].mxu1 }
 0x15b   :  { %v2615_v45 = vadd.f32 %v2614_v44, %v2613_v40 }
 0x15c   :  { %v2024_v46 = vadd.f32 %v2612_v39, %v1983_v42  ;;  %v1986_v47 = vadd.f32 %v2593_v43, %v1945_v32 }
 0x15e   :  { %v2027_v48 = vadd.f32 %v2615_v45, %v1986_v47 }
 0x176   :  { %v2632_v49 = vpop.f32.mrb[16].mxu0 }
 0x177   :  { %v2654_v50 = vpop.f32.mrb[16].mxu1  ;;  %v2633_v51 = vpop.f32.mrb[17].mxu0 }
 0x178   :  { %v2634_v52 = vadd.f32 %v2633_v51, %v2632_v49  ;;  %v2655_v53 = vpop.f32.mrb[17].mxu1  ;;  %v2635_v54 = vpop.f32.mrb[18].mxu0 }
 0x179   :  { %v2656_v55 = vadd.f32 %v2655_v53, %v2654_v50  ;;  %v2657_v56 = vpop.f32.mrb[18].mxu1  ;;  %v2636_v57 = vpop.f32.mrb[19].mxu0 }
 0x17a   :  { %v2065_v58 = vadd.f32 %v2634_v52, %v2024_v46  ;;  %v2637_v59 = vadd.f32 %v2636_v57, %v2635_v54  ;;  %v2658_v60 = vpop.f32.mrb[19].mxu1 }
 0x17b   :  { %v2659_v61 = vadd.f32 %v2658_v60, %v2657_v56 }
 0x17c   :  { %v2106_v62 = vadd.f32 %v2656_v55, %v2065_v58  ;;  %v2068_v63 = vadd.f32 %v2637_v59, %v2027_v48 }
 0x17e   :  { %v2109_v0 = vadd.f32 %v2659_v61, %v2068_v63 }
 0x196   :  { %v2676_v1 = vpop.f32.mrb[20].mxu0 }
 0x197   :  { %v2698_v2 = vpop.f32.mrb[20].mxu1  ;;  %v2677_v3 = vpop.f32.mrb[21].mxu0 }
 0x198   :  { %v2699_v4 = vpop.f32.mrb[21].mxu1  ;;  %v2678_v5 = vadd.f32 %v2677_v3, %v2676_v1  ;;  %v2679_v7 = vpop.f32.mrb[22].mxu0 }
 0x199   :  { %v2700_v6 = vadd.f32 %v2699_v4, %v2698_v2  ;;  %v2701_v8 = vpop.f32.mrb[22].mxu1  ;;  %v2680_v9 = vpop.f32.mrb[23].mxu0 }
 0x19a   :  { %v2702_v10 = vpop.f32.mrb[23].mxu1  ;;  %v2147_v11 = vadd.f32 %v2678_v5, %v2106_v62  ;;  %v2681_v12 = vadd.f32 %v2680_v9, %v2679_v7 }
 0x19b   :  { %v2703_v13 = vadd.f32 %v2702_v10, %v2701_v8 }
 0x19c   :  { %v2188_v14 = vadd.f32 %v2700_v6, %v2147_v11  ;;  %v2150_v15 = vadd.f32 %v2681_v12, %v2109_v0 }
 0x19e   :  { %v2196_v16 = vmul.f32 0.2, %v2188_v14  ;;  %v2191_v17 = vadd.f32 %v2703_v13, %v2150_v15  ;;  %vm2194_vm0 = vcmp.ge.f32.partialorder %v2188_v14, 0.0 }
 0x1a0   :  { %vm2195_vm1 = vcmp.ge.f32.partialorder %v2191_v17, 0.0  ;;  %v2197_v18 = vmul.f32 0.2, %v2191_v17  ;;  %v2198_v19 = vsel %vm2194_vm0, %v2188_v14, %v2196_v16 }
 0x1a2   :  { %v2199_v20 = vsel %vm2195_vm1, %v2191_v17, %v2197_v18 }
 0x1a3   :  { %v2438_v21 = vpack.c.bf16 %v2199_v20, %v2198_v19 }
 0x1a5   :  { %2439 = vst [vmem:[%s3573_s3] sm:$0xff] %v2438_v21  }

// kernel: a_call__.14
= control target key start
LH: loop header
LB: loop body
LE: loop exit
PB: predicated region body
PF: predicated region fallthrough
CT: control target
= control target key end

     0   :  { %s2917_s1 = inlined_call_operand.vmem [shape: bf16[640,128], index: 1, kind: input, shape index: {}]   ;;  %s2918_s0 = inlined_call_operand.vmem [shape: bf16[256,640], index: 0, kind: input, shape index: {}]   ;;  %s2919_s2 = inlined_call_operand.vmem [shape: f32[1,128], index: 2, kind: input, shape index: {}]   ;;  %s2920_s3 = inlined_call_operand.vmem [shape: bf16[256,128], index: 3, kind: output, shape index: {}]  }
   0x1   :  { %v2189_v0 = vld [vmem:[%s2917_s1 + $0x40] sm:$0xff]   ;;  %v2191_v2 = vld [vmem:[%s2917_s1 + $0x48] sm:$0xff]   ;;  %v2193_v4 = vld [vmem:[%s2917_s1 + $0x50] sm:$0xff]  }
   0x2   :  { %v2190_v1 = vld [vmem:[%s2917_s1] sm:$0xff]   ;;  %1877 = vmatprep.subr.bf16.mxu0 %v2189_v0  ;;  %2173 = vmatprep.subr.bf16.mxu1 %v2189_v0  ;;  %v2192_v3 = vld [vmem:[%s2917_s1 + $0x8] sm:$0xff]   ;;  %v2194_v5 = vld [vmem:[%s2917_s1 + $0x10] sm:$0xff]  }
   0x3   :  { %1878 = vmatpush3.bf16.msra.mxu0 %v2190_v1  ;;  %2181 = vmatpush3.bf16.msra.mxu1 %v2190_v1  ;;  %v2195_v6 = vld [vmem:[%s2917_s1 + $0x58] sm:$0xff]   ;;  %v2197_v8 = vld [vmem:[%s2917_s1 + $0x60] sm:$0xff]   ;;  %v2199_v10 = vld [vmem:[%s2917_s1 + $0x68] sm:$0xff]  }
   0x4   :  { %1879 = vmatprep.subr.bf16.mxu0 %v2191_v2  ;;  %2174 = vmatprep.subr.bf16.mxu1 %v2191_v2  ;;  %v2196_v7 = vld [vmem:[%s2917_s1 + $0x18] sm:$0xff]   ;;  %v2198_v9 = vld [vmem:[%s2917_s1 + $0x20] sm:$0xff]   ;;  %v2200_v13 = vld [vmem:[%s2917_s1 + $0x28] sm:$0xff]  }
   0x5   :  { %v2207_v11 = vld [vmem:[%s2918_s0 + $0x4] ss:$20 sps:$4 sm:$0xff]   ;;  %v2201_v14 = vld [vmem:[%s2917_s1 + $0x70] sm:$0xff]   ;;  %v2213_v23 = vld [vmem:[%s2917_s1 + $0xc8] sm:$0xff]  }
   0x6   :  { %v2210_v12 = vld [vmem:[%s2918_s0 + $0x1e4] ss:$20 sps:$4 sm:$0xff]   ;;  %886 = vmatprep.mubr.bf16.mxu0 %v2207_v11  ;;  %v2202_v15 = vld [vmem:[%s2917_s1 + $0x30] sm:$0xff]   ;;  %v2216_v24 = vld [vmem:[%s2918_s0 + $0x2c] ss:$20 sps:$4 sm:$0xff]  }
   0x7   :  { %1880 = vmatpush3.bf16.msra.mxu0 %v2192_v3  ;;  %2182 = vmatpush3.bf16.msra.mxu1 %v2192_v3  ;;  %v2203_v16 = vld [vmem:[%s2917_s1 + $0x78] sm:$0xff]   ;;  %v2211_v18 = vld [vmem:[%s2917_s1 + $0xc0] sm:$0xff]   ;;  %v2233_v26 = vld [vmem:[%s2917_s1 + $0x108] sm:$0xff]  }
   0x8   :  { %1881 = vmatprep.subr.bf16.mxu0 %v2193_v4  ;;  %2175 = vmatprep.subr.bf16.mxu1 %v2193_v4  ;;  %v2204_v17 = vld [vmem:[%s2917_s1 + $0x38] sm:$0xff]   ;;  %v2214_v19 = vld [vmem:[%s2917_s1 + $0x100] sm:$0xff]   ;;  %v2215_v27 = vld [vmem:[%s2917_s1 + $0x88] sm:$0xff]  }
   0x9   :  { %982 = vmatprep.mubr.bf16.mxu1 %v2210_v12  ;;  %v2205_v20 = vld [vmem:[%s2918_s0] ss:$20 sps:$4 sm:$0xff]   ;;  %v2220_v28 = vld [vmem:[%s2918_s0 + $0x28] ss:$20 sps:$4 sm:$0xff]   ;;  %v2230_v37 = vld [vmem:[%s2918_s0 + $0x50] ss:$20 sps:$4 sm:$0xff]  }
   0xa   :  { %v2208_v21 = vld [vmem:[%s2918_s0 + $0x1e0] ss:$20 sps:$4 sm:$0xff]   ;;  %v2221_v30 = vld [vmem:[%s2918_s0 + $0x208] ss:$20 sps:$4 sm:$0xff]   ;;  %v2231_v39 = vld [vmem:[%s2918_s0 + $0x230] ss:$20 sps:$4 sm:$0xff]  }
   0xb   :  { %1882 = vmatpush3.bf16.msra.mxu0 %v2194_v5  ;;  %2183 = vmatpush3.bf16.msra.mxu1 %v2194_v5  ;;  %v2212_v22 = vld [vmem:[%s2917_s1 + $0x80] sm:$0xff]   ;;  %v2222_v29 = vld [vmem:[%s2917_s1 + $0xd0] sm:$0xff]   ;;  %v2224_v33 = vld [vmem:[%s2917_s1 + $0xd8] sm:$0xff]  }
   0xc   :  { %1883 = vmatprep.subr.bf16.mxu0 %v2195_v6  ;;  %2176 = vmatprep.subr.bf16.mxu1 %v2195_v6  ;;  %v2218_v25 = vld [vmem:[%s2918_s0 + $0x20c] ss:$20 sps:$4 sm:$0xff]   ;;  %v2223_v31 = vld [vmem:[%s2917_s1 + $0x90] sm:$0xff]   ;;  %v2225_v35 = vld [vmem:[%s2917_s1 + $0x98] sm:$0xff]  }
   0xd   :  { %v2226_v32 = vld [vmem:[%s2918_s0 + $0x54] ss:$20 sps:$4 sm:$0xff]   ;;  %v2232_v36 = vld [vmem:[%s2917_s1 + $0xe0] sm:$0xff]   ;;  %v2237_v42 = vld [vmem:[%s2918_s0 + $0x7c] ss:$20 sps:$4 sm:$0xff]  }
   0xe   :  { %v2228_v34 = vld [vmem:[%s2918_s0 + $0x234] ss:$20 sps:$4 sm:$0xff]   ;;  %v2234_v40 = vld [vmem:[%s2917_s1 + $0xa0] sm:$0xff]   ;;  %v2239_v43 = vld [vmem:[%s2918_s0 + $0x25c] ss:$20 sps:$4 sm:$0xff]  }
   0xf   :  { %1884 = vmatpush3.bf16.msra.mxu0 %v2196_v7  ;;  %2184 = vmatpush3.bf16.msra.mxu1 %v2196_v7  ;;  %v2246_v38 = vld [vmem:[%s2917_s1 + $0x110] sm:$0xff]   ;;  %v2235_v41 = vld [vmem:[%s2917_s1 + $0xe8] sm:$0xff]   ;;  %v2260_v45 = vld [vmem:[%s2917_s1 + $0x118] sm:$0xff]  }
  0x10   :  { %1885 = vmatprep.subr.bf16.mxu0 %v2197_v8  ;;  %2177 = vmatprep.subr.bf16.mxu1 %v2197_v8  ;;  %v2236_v44 = vld [vmem:[%s2917_s1 + $0xa8] sm:$0xff]   ;;  %v2243_v48 = vld [vmem:[%s2917_s1 + $0xf0] sm:$0xff]   ;;  %v2245_v50 = vld [vmem:[%s2917_s1 + $0xf8] sm:$0xff]  }
  0x11   :  { %v2241_v46 = vld [vmem:[%s2918_s0 + $0x78] ss:$20 sps:$4 sm:$0xff]   ;;  %v2244_v49 = vld [vmem:[%s2917_s1 + $0xb0] sm:$0xff]   ;;  %v2267_v52 = vld [vmem:[%s2917_s1 + $0x120] sm:$0xff]  }
  0x12   :  { %v2242_v47 = vld [vmem:[%s2918_s0 + $0x258] ss:$20 sps:$4 sm:$0xff]   ;;  %v2250_v55 = vld [vmem:[%s2918_s0 + $0x8] ss:$20 sps:$4 sm:$0xff]   ;;  %v2253_v56 = vld [vmem:[%s2918_s0 + $0xa0] ss:$20 sps:$4 sm:$0xff]  }
  0x13   :  { %1886 = vmatpush3.bf16.msra.mxu0 %v2198_v9  ;;  %2185 = vmatpush3.bf16.msra.mxu1 %v2198_v9  ;;  %v2248_v51 = vld [vmem:[%s2918_s0 + $0xa4] ss:$20 sps:$4 sm:$0xff]   ;;  %v2252_v53 = vld [vmem:[%s2918_s0 + $0xc] ss:$20 sps:$4 sm:$0xff]   ;;  %v2256_v59 = vld [vmem:[%s2918_s0 + $0x34] ss:$20 sps:$4 sm:$0xff]  }
  0x14   :  { %1887 = vmatprep.subr.bf16.mxu0 %v2199_v10  ;;  %2178 = vmatprep.subr.bf16.mxu1 %v2199_v10  ;;  %v2247_v54 = vld [vmem:[%s2917_s1 + $0xb8] sm:$0xff]   ;;  %v2280_v57 = vld [vmem:[%s2917_s1 + $0x128] sm:$0xff]   ;;  %v2287_v60 = vld [vmem:[%s2917_s1 + $0x130] sm:$0xff]  }
  0x15   :  { %v2254_v58 = vld [vmem:[%s2918_s0 + $0xcc] ss:$20 sps:$4 sm:$0xff]   ;;  %v2258_v61 = vld [vmem:[%s2918_s0 + $0xc8] ss:$20 sps:$4 sm:$0xff]   ;;  %v2259_v62 = vld [vmem:[%s2918_s0 + $0x30] ss:$20 sps:$4 sm:$0xff]  }
  0x16   :  { %v2261_v63 = vld [vmem:[%s2918_s0 + $0xf4] ss:$20 sps:$4 sm:$0xff]   ;;  %v2263_v0 = vld [vmem:[%s2918_s0 + $0x5c] ss:$20 sps:$4 sm:$0xff]   ;;  %v2266_v3 = vld [vmem:[%s2918_s0 + $0x58] ss:$20 sps:$4 sm:$0xff]  }
  0x17   :  { %1888 = vmatpush3.bf16.msra.mxu0 %v2200_v13  ;;  %2186 = vmatpush3.bf16.msra.mxu1 %v2200_v13  ;;  %v2300_v1 = vld [vmem:[%s2917_s1 + $0x138] sm:$0xff]   ;;  %v2265_v2 = vld [vmem:[%s2918_s0 + $0xf0] ss:$20 sps:$4 sm:$0xff]   ;;  %v2273_v7 = vld [vmem:[%s2918_s0 + $0x80] ss:$20 sps:$4 sm:$0xff]  }
  0x18   :  { %1889 = vmatprep.subr.bf16.mxu0 %v2201_v14  ;;  %2179 = vmatprep.subr.bf16.mxu1 %v2201_v14  ;;  %v2268_v4 = vld [vmem:[%s2918_s0 + $0x11c] ss:$20 sps:$4 sm:$0xff]   ;;  %v2270_v5 = vld [vmem:[%s2918_s0 + $0x84] ss:$20 sps:$4 sm:$0xff]   ;;  %v2276_v9 = vld [vmem:[%s2918_s0 + $0xac] ss:$20 sps:$4 sm:$0xff]  }
  0x19   :  { %v2272_v6 = vld [vmem:[%s2918_s0 + $0x118] ss:$20 sps:$4 sm:$0xff]   ;;  %v2278_v10 = vld [vmem:[%s2918_s0 + $0x140] ss:$20 sps:$4 sm:$0xff]   ;;  %v2279_v11 = vld [vmem:[%s2918_s0 + $0xa8] ss:$20 sps:$4 sm:$0xff]  }
  0x1a   :  { %v2274_v8 = vld [vmem:[%s2918_s0 + $0x144] ss:$20 sps:$4 sm:$0xff]   ;;  %v2281_v12 = vld [vmem:[%s2918_s0 + $0x16c] ss:$20 sps:$4 sm:$0xff]   ;;  %v2283_v13 = vld [vmem:[%s2918_s0 + $0xd4] ss:$20 sps:$4 sm:$0xff]  }
  0x1b   :  { %1890 = vmatpush3.bf16.msra.mxu0 %v2202_v15  ;;  %2187 = vmatpush3.bf16.msra.mxu1 %v2202_v15  ;;  %v2285_v14 = vld [vmem:[%s2918_s0 + $0x168] ss:$20 sps:$4 sm:$0xff]   ;;  %v2286_v15 = vld [vmem:[%s2918_s0 + $0xd0] ss:$20 sps:$4 sm:$0xff]  }
  0x1c   :  { %1891 = vmatprep.subr.bf16.mxu0 %v2203_v16  ;;  %2180 = vmatprep.subr.bf16.mxu1 %v2203_v16  ;;  %v2288_v16 = vld [vmem:[%s2918_s0 + $0x194] ss:$20 sps:$4 sm:$0xff]  }
  0x1f   :  { %1892 = vmatpush3.bf16.msra.mxu0 %v2204_v17  ;;  %2188 = vmatpush3.bf16.msra.mxu1 %v2204_v17  ;;  %v2290_v17 = vld [vmem:[%s2918_s0 + $0xfc] ss:$20 sps:$4 sm:$0xff]  }
  0x20   :  { %1989 = vmatprep.subr.bf16.mxu1 %v2211_v18  ;;  %2125 = vmatprep.subr.bf16.mxu0 %v2214_v19  ;;  %v2292_v18 = vld [vmem:[%s2918_s0 + $0x190] ss:$20 sps:$4 sm:$0xff]  }
  0x22   :  { %887 = vmatmul.mubr.bf16.vlgmr.msra.gmra.mrb[0].mxu0 %v2205_v20  ;;  %983 = vmatmul.mubr.bf16.vlgmr.msra.gmra.mrb[0].mxu1 %v2208_v21  ;;  %v2294_v20 = vld [vmem:[%s2918_s0 + $0x1bc] ss:$20 sps:$4 sm:$0xff]   ;;  %v2296_v21 = vld [vmem:[%s2918_s0 + $0x124] ss:$20 sps:$4 sm:$0xff]  }
  0x23   :  { %1990 = vmatpush3.bf16.msra.mxu1 %v2212_v22  ;;  %2126 = vmatpush3.bf16.msra.mxu0 %v2214_v19  ;;  %v2293_v19 = vld [vmem:[%s2918_s0 + $0xf8] ss:$20 sps:$4 sm:$0xff]  }
  0x24   :  { %1991 = vmatprep.subr.bf16.mxu1 %v2213_v23  ;;  %894 = vmatprep.mubr.bf16.mxu0 %v2216_v24  ;;  %v2298_v22 = vld [vmem:[%s2918_s0 + $0x1b8] ss:$20 sps:$4 sm:$0xff]   ;;  %v2299_v23 = vld [vmem:[%s2918_s0 + $0x120] ss:$20 sps:$4 sm:$0xff]  }
  0x25   :  { %990 = vmatprep.mubr.bf16.mxu1 %v2218_v25  ;;  %2127 = vmatprep.subr.bf16.mxu0 %v2233_v26  ;;  %v2301_v24 = vld [vmem:[%s2918_s0 + $0x14c] ss:$20 sps:$4 sm:$0xff]   ;;  %v2303_v25 = vld [vmem:[%s2918_s0 + $0x10] ss:$20 sps:$4 sm:$0xff]  }
  0x27   :  { %1992 = vmatpush3.bf16.msra.mxu1 %v2215_v27  ;;  %2128 = vmatpush3.bf16.msra.mxu0 %v2233_v26  ;;  %v2304_v26 = vld [vmem:[%s2918_s0 + $0x148] ss:$20 sps:$4 sm:$0xff]   ;;  %v2305_v27 = vld [vmem:[%s2918_s0 + $0x38] ss:$20 sps:$4 sm:$0xff]  }
  0x28   :  { %1993 = vmatprep.subr.bf16.mxu1 %v2222_v29  ;;  %2129 = vmatprep.subr.bf16.mxu0 %v2246_v38  ;;  %v2308_v29 = vld [vmem:[%s2918_s0 + $0x60] ss:$20 sps:$4 sm:$0xff]  }
  0x2a   :  { %895 = vmatmul.mubr.bf16.gmra.mrb[4].mxu0 %v2220_v28  ;;  %991 = vmatmul.mubr.bf16.gmra.mrb[4].mxu1 %v2221_v30  ;;  %v2306_v28 = vld [vmem:[%s2918_s0 + $0x174] ss:$20 sps:$4 sm:$0xff]   ;;  %v2309_v30 = vld [vmem:[%s2918_s0 + $0x170] ss:$20 sps:$4 sm:$0xff]  }
  0x2b   :  { %1994 = vmatpush3.bf16.msra.mxu1 %v2223_v31  ;;  %902 = vmatprep.mubr.bf16.mxu0 %v2226_v32  ;;  %v2310_v31 = vld [vmem:[%s2918_s0 + $0x88] ss:$20 sps:$4 sm:$0xff]  }
  0x2c   :  { %1995 = vmatprep.subr.bf16.mxu1 %v2224_v33  ;;  %998 = vmatprep.mubr.bf16.mxu1 %v2228_v34  ;;  %v2311_v32 = vld [vmem:[%s2918_s0 + $0x19c] ss:$20 sps:$4 sm:$0xff]   ;;  %v2314_v34 = vld [vmem:[%s2918_s0 + $0x198] ss:$20 sps:$4 sm:$0xff]  }
  0x2d   :  { %2130 = vmatpush3.bf16.msra.mxu0 %v2246_v38  ;;  %v2313_v33 = vld [vmem:[%s2918_s0 + $0xb0] ss:$20 sps:$4 sm:$0xff]   ;;  %v2319_v38 = vld [vmem:[%s2918_s0 + $0x1c0] ss:$20 sps:$4 sm:$0xff]  }
  0x2e   :  { %2131 = vmatprep.subr.bf16.mxu0 %v2260_v45 }
  0x2f   :  { %1996 = vmatpush3.bf16.msra.mxu1 %v2225_v35  ;;  %v2315_v35 = vld [vmem:[%s2918_s0 + $0xd8] ss:$20 sps:$4 sm:$0xff]  }
  0x30   :  { %1997 = vmatprep.subr.bf16.mxu1 %v2232_v36  ;;  %v2316_v36 = vld [vmem:[%s2918_s0 + $0x1c4] ss:$20 sps:$4 sm:$0xff]  }
  0x31   :  { %2132 = vmatpush3.bf16.msra.mxu0 %v2260_v45  ;;  %v2328_v45 = vld [vmem:[%s2918_s0 + $0x1a0] ss:$20 sps:$4 sm:$0xff]  }
  0x32   :  { %903 = vmatmul.mubr.bf16.gmra.mrb[8].mxu0 %v2230_v37  ;;  %999 = vmatmul.mubr.bf16.gmra.mrb[8].mxu1 %v2231_v39  ;;  %v2318_v37 = vld [vmem:[%s2918_s0 + $0x100] ss:$20 sps:$4 sm:$0xff]   ;;  %v2320_v39 = vld [vmem:[%s2918_s0 + $0x128] ss:$20 sps:$4 sm:$0xff]  }
  0x33   :  { %1998 = vmatpush3.bf16.msra.mxu1 %v2234_v40  ;;  %910 = vmatprep.mubr.bf16.mxu0 %v2237_v42  ;;  %v2321_v40 = vld [vmem:[%s2918_s0 + $0x1ec] ss:$20 sps:$4 sm:$0xff]   ;;  %v2324_v42 = vld [vmem:[%s2918_s0 + $0x1e8] ss:$20 sps:$4 sm:$0xff]  }
  0x34   :  { %1999 = vmatprep.subr.bf16.mxu1 %v2235_v41  ;;  %1006 = vmatprep.mubr.bf16.mxu1 %v2239_v43  ;;  %v2323_v41 = vld [vmem:[%s2918_s0 + $0x150] ss:$20 sps:$4 sm:$0xff]   ;;  %v2325_v43 = vld [vmem:[%s2918_s0 + $0x178] ss:$20 sps:$4 sm:$0xff]  }
  0x35   :  { %2133 = vmatprep.subr.bf16.mxu0 %v2267_v52 }
  0x36   :  { %2134 = vmatpush3.bf16.msra.mxu0 %v2267_v52  ;;  %v2336_v52 = vld [vmem:[%s2918_s0 + $0x264] ss:$20 sps:$4 sm:$0xff]  }
  0x37   :  { %2000 = vmatpush3.bf16.msra.mxu1 %v2236_v44  ;;  %2135 = vmatprep.subr.bf16.mxu0 %v2280_v57  ;;  %v2326_v44 = vld [vmem:[%s2918_s0 + $0x214] ss:$20 sps:$4 sm:$0xff]  }
  0x38   :  { %2001 = vmatprep.subr.bf16.mxu1 %v2243_v48  ;;  %v2331_v48 = vld [vmem:[%s2918_s0 + $0x23c] ss:$20 sps:$4 sm:$0xff]  }
  0x3a   :  { %911 = vmatmul.mubr.bf16.gmra.mrb[12].mxu0 %v2241_v46  ;;  %1007 = vmatmul.mubr.bf16.gmra.mrb[12].mxu1 %v2242_v47  ;;  %v2329_v46 = vld [vmem:[%s2918_s0 + $0x210] ss:$20 sps:$4 sm:$0xff]   ;;  %v2330_v47 = vld [vmem:[%s2918_s0 + $0x1c8] ss:$20 sps:$4 sm:$0xff]  }
  0x3b   :  { %2002 = vmatpush3.bf16.msra.mxu1 %v2244_v49  ;;  %918 = vmatprep.mubr.bf16.mxu0 %v2248_v51  ;;  %v2333_v49 = vld [vmem:[%s2918_s0 + $0x1f0] ss:$20 sps:$4 sm:$0xff]   ;;  %v2335_v51 = vld [vmem:[%s2918_s0 + $0x218] ss:$20 sps:$4 sm:$0xff]  }
  0x3c   :  { %2003 = vmatprep.subr.bf16.mxu1 %v2245_v50  ;;  %1047 = vmatprep.mubr.bf16.mxu1 %v2252_v53  ;;  %v2334_v50 = vld [vmem:[%s2918_s0 + $0x238] ss:$20 sps:$4 sm:$0xff]   ;;  %v2338_v53 = vld [vmem:[%s2918_s0 + $0x240] ss:$20 sps:$4 sm:$0xff]  }
  0x3d   :  { %2136 = vmatpush3.bf16.msra.mxu0 %v2280_v57 }
  0x3e   :  { %2137 = vmatprep.subr.bf16.mxu0 %v2287_v60 }
  0x3f   :  { %2004 = vmatpush3.bf16.msra.mxu1 %v2247_v54  ;;  %v2339_v54 = vld [vmem:[%s2918_s0 + $0x260] ss:$20 sps:$4 sm:$0xff]  }
  0x41   :  { %2138 = vmatpush3.bf16.msra.mxu0 %v2287_v60 }
  0x42   :  { %919 = vmatmul.mubr.bf16.gmra.mrb[16].mxu0 %v2253_v56  ;;  %1048 = vmatmul.mubr.bf16.vlgmr.msra.gmra.mrb[16].mxu1 %v2250_v55  ;;  %v2340_v55 = vld [vmem:[%s2918_s0 + $0x268] ss:$20 sps:$4 sm:$0xff]  }
  0x43   :  { %926 = vmatprep.mubr.bf16.mxu0 %v2254_v58  ;;  %1055 = vmatprep.mubr.bf16.mxu1 %v2256_v59 }
  0x44   :  { %2139 = vmatprep.subr.bf16.mxu0 %v2300_v1 }
  0x45   :  { %2140 = vmatpush3.bf16.msra.mxu0 %v2300_v1 }
  0x4a   :  { %927 = vmatmul.mubr.bf16.gmra.mrb[20].mxu0 %v2258_v61  ;;  %1056 = vmatmul.mubr.bf16.gmra.mrb[20].mxu1 %v2259_v62 }
  0x4b   :  { %934 = vmatprep.mubr.bf16.mxu0 %v2261_v63  ;;  %1063 = vmatprep.mubr.bf16.mxu1 %v2263_v0 }
  0x52   :  { %935 = vmatmul.mubr.bf16.gmra.mrb[24].mxu0 %v2265_v2  ;;  %1064 = vmatmul.mubr.bf16.gmra.mrb[24].mxu1 %v2266_v3 }
  0x53   :  { %942 = vmatprep.mubr.bf16.mxu0 %v2268_v4  ;;  %1071 = vmatprep.mubr.bf16.mxu1 %v2270_v5 }
  0x5a   :  { %943 = vmatmul.mubr.bf16.gmra.mrb[28].mxu0 %v2272_v6  ;;  %1072 = vmatmul.mubr.bf16.gmra.mrb[28].mxu1 %v2273_v7 }
  0x5b   :  { %950 = vmatprep.mubr.bf16.mxu0 %v2274_v8  ;;  %1079 = vmatprep.mubr.bf16.mxu1 %v2276_v9 }
  0x62   :  { %951 = vmatmul.mubr.bf16.gmra.mrb[32].mxu0 %v2278_v10  ;;  %1080 = vmatmul.mubr.bf16.gmra.mrb[32].mxu1 %v2279_v11 }
  0x63   :  { %958 = vmatprep.mubr.bf16.mxu0 %v2281_v12  ;;  %1087 = vmatprep.mubr.bf16.mxu1 %v2283_v13 }
  0x6a   :  { %959 = vmatmul.mubr.bf16.gmra.mrb[36].mxu0 %v2285_v14  ;;  %1088 = vmatmul.mubr.bf16.gmra.mrb[36].mxu1 %v2286_v15 }
  0x6b   :  { %966 = vmatprep.mubr.bf16.mxu0 %v2288_v16  ;;  %1095 = vmatprep.mubr.bf16.mxu1 %v2290_v17 }
  0x72   :  { %967 = vmatmul.mubr.bf16.gmra.mrb[40].mxu0 %v2292_v18  ;;  %1096 = vmatmul.mubr.bf16.gmra.mrb[40].mxu1 %v2293_v19 }
  0x73   :  { %974 = vmatprep.mubr.bf16.mxu0 %v2294_v20  ;;  %1103 = vmatprep.mubr.bf16.mxu1 %v2296_v21 }
  0x7a   :  { %975 = vmatmul.mubr.bf16.gmra.mrb[44].mxu0 %v2298_v22  ;;  %1104 = vmatmul.mubr.bf16.gmra.mrb[44].mxu1 %v2299_v23 }
  0x7b   :  { %1111 = vmatprep.mubr.bf16.mxu1 %v2301_v24  ;;  %2141 = vmatprep.mubr.bf16.mxu0 %v2303_v25 }
  0x82   :  { %1112 = vmatmul.mubr.bf16.gmra.mrb[48].mxu1 %v2304_v26  ;;  %2142 = vmatmul.mubr.bf16.vlgmr.msra.gmra.mrb[48].mxu0 %v2305_v27 }
  0x83   :  { %1119 = vmatprep.mubr.bf16.mxu1 %v2306_v28  ;;  %2145 = vmatprep.mubr.bf16.mxu0 %v2308_v29 }
  0x8a   :  { %1120 = vmatmul.mubr.bf16.gmra.mrb[52].mxu1 %v2309_v30  ;;  %2146 = vmatmul.mubr.bf16.gmra.mrb[52].mxu0 %v2310_v31 }
  0x8b   :  { %1127 = vmatprep.mubr.bf16.mxu1 %v2311_v32  ;;  %2149 = vmatprep.mubr.bf16.mxu0 %v2313_v33 }
  0x92   :  { %1128 = vmatmul.mubr.bf16.gmra.mrb[56].mxu1 %v2314_v34  ;;  %2150 = vmatmul.mubr.bf16.gmra.mrb[56].mxu0 %v2315_v35 }
  0x93   :  { %1135 = vmatprep.mubr.bf16.mxu1 %v2316_v36  ;;  %2153 = vmatprep.mubr.bf16.mxu0 %v2318_v37 }
  0x9a   :  { %1136 = vmatmul.mubr.bf16.gmra.mrb[60].mxu1 %v2319_v38  ;;  %2154 = vmatmul.mubr.bf16.gmra.mrb[60].mxu0 %v2320_v39 }
  0x9b   :  { %1143 = vmatprep.mubr.bf16.mxu1 %v2321_v40  ;;  %2157 = vmatprep.mubr.bf16.mxu0 %v2323_v41 }
  0xa2   :  { %1144 = vmatmul.mubr.bf16.gmra.mrb[64].mxu1 %v2324_v42  ;;  %2158 = vmatmul.mubr.bf16.gmra.mrb[64].mxu0 %v2325_v43  ;;  %v2740_v42 = vld [vmem:[%s2919_s2] ss:$0 sm:$0xff] }
  0xa3   :  { %1151 = vmatprep.mubr.bf16.mxu1 %v2326_v44  ;;  %2161 = vmatprep.mubr.bf16.mxu0 %v2328_v45 }
  0xaa   :  { %1152 = vmatmul.mubr.bf16.gmra.mrb[68].mxu1 %v2329_v46  ;;  %2162 = vmatmul.mubr.bf16.gmra.mrb[68].mxu0 %v2330_v47 }
  0xab   :  { %1159 = vmatprep.mubr.bf16.mxu1 %v2331_v48  ;;  %2165 = vmatprep.mubr.bf16.mxu0 %v2333_v49 }
  0xb2   :  { %1160 = vmatmul.mubr.bf16.gmra.mrb[72].mxu1 %v2334_v50  ;;  %2166 = vmatmul.mubr.bf16.gmra.mrb[72].mxu0 %v2335_v51 }
  0xb3   :  { %1167 = vmatprep.mubr.bf16.mxu1 %v2336_v52  ;;  %2169 = vmatprep.mubr.bf16.mxu0 %v2338_v53 }
  0xba   :  { %1168 = vmatmul.mubr.bf16.gmra.mrb[76].mxu1 %v2339_v54  ;;  %2170 = vmatmul.mubr.bf16.gmra.mrb[76].mxu0 %v2340_v55 }
  0xf5   :  { %v1965_v56 = vpop.f32.mrb[0].mxu1  ;;  %v1893_v57 = vpop.f32.mrb[0].mxu0 }
  0xf6   :  { %v1966_v58 = vpop.f32.mrb[1].mxu1  ;;  %v1894_v59 = vpop.f32.mrb[1].mxu0 }
  0xf7   :  { %v2721_v60 = vadd.f32 %v1966_v58, %v1965_v56  ;;  %v1968_v61 = vpop.f32.mrb[2].mxu1  ;;  %v1895_v62 = vadd.f32 %v1894_v59, %v1893_v57  ;;  %v1896_v63 = vpop.f32.mrb[2].mxu0 }
  0xf8   :  { %v1969_v0 = vpop.f32.mrb[3].mxu1  ;;  %v1897_v1 = vpop.f32.mrb[3].mxu0 }
  0xf9   :  { %v2723_v2 = vadd.f32 %v1969_v0, %v1968_v61  ;;  %v1898_v3 = vadd.f32 %v1897_v1, %v1896_v63  ;;  %v889_v45 = vadd.f32 %v1895_v62, %v2740_v42 }
  0xfb   :  { %v892_v52 = vadd.f32 %v1898_v3, %v2740_v42 }
  0xfd   :  { %v1971_v4 = vpop.f32.mrb[4].mxu1  ;;  %v1899_v5 = vpop.f32.mrb[4].mxu0 }
  0xfe   :  { %v1972_v6 = vpop.f32.mrb[5].mxu1  ;;  %v1900_v7 = vpop.f32.mrb[5].mxu0 }
  0xff   :  { %v2725_v8 = vadd.f32 %v1972_v6, %v1971_v4  ;;  %v1974_v9 = vpop.f32.mrb[6].mxu1  ;;  %v1901_v10 = vadd.f32 %v1900_v7, %v1899_v5  ;;  %v1902_v11 = vpop.f32.mrb[6].mxu0 }
 0x100   :  { %v1975_v12 = vpop.f32.mrb[7].mxu1  ;;  %v1903_v13 = vpop.f32.mrb[7].mxu0 }
 0x101   :  { %v2727_v14 = vadd.f32 %v1975_v12, %v1974_v9  ;;  %v1904_v15 = vadd.f32 %v1903_v13, %v1902_v11  ;;  %v897_v62 = vadd.f32 %v1901_v10, %v2740_v42 }
 0x103   :  { %v900_v3 = vadd.f32 %v1904_v15, %v2740_v42 }
 0x105   :  { %v1977_v16 = vpop.f32.mrb[8].mxu1  ;;  %v1905_v17 = vpop.f32.mrb[8].mxu0 }
 0x106   :  { %v1978_v18 = vpop.f32.mrb[9].mxu1  ;;  %v1906_v19 = vpop.f32.mrb[9].mxu0 }
 0x107   :  { %v2729_v20 = vadd.f32 %v1978_v18, %v1977_v16  ;;  %v1980_v21 = vpop.f32.mrb[10].mxu1  ;;  %v1907_v22 = vadd.f32 %v1906_v19, %v1905_v17  ;;  %v1908_v23 = vpop.f32.mrb[10].mxu0 }
 0x108   :  { %v1981_v24 = vpop.f32.mrb[11].mxu1  ;;  %v1909_v25 = vpop.f32.mrb[11].mxu0 }
 0x109   :  { %v2731_v26 = vadd.f32 %v1981_v24, %v1980_v21  ;;  %v1910_v27 = vadd.f32 %v1909_v25, %v1908_v23  ;;  %v905_v10 = vadd.f32 %v1907_v22, %v2740_v42 }
 0x10b   :  { %v908_v15 = vadd.f32 %v1910_v27, %v2740_v42 }
 0x10d   :  { %v1983_v28 = vpop.f32.mrb[12].mxu1  ;;  %v1911_v29 = vpop.f32.mrb[12].mxu0 }
 0x10e   :  { %v1984_v30 = vpop.f32.mrb[13].mxu1  ;;  %v1912_v31 = vpop.f32.mrb[13].mxu0 }
 0x10f   :  { %v2733_v32 = vadd.f32 %v1984_v30, %v1983_v28  ;;  %v1986_v33 = vpop.f32.mrb[14].mxu1  ;;  %v1913_v34 = vadd.f32 %v1912_v31, %v1911_v29  ;;  %v1914_v35 = vpop.f32.mrb[14].mxu0 }
 0x110   :  { %v1987_v36 = vpop.f32.mrb[15].mxu1  ;;  %v1915_v37 = vpop.f32.mrb[15].mxu0 }
 0x111   :  { %v2735_v38 = vadd.f32 %v1987_v36, %v1986_v33  ;;  %v1916_v39 = vadd.f32 %v1915_v37, %v1914_v35  ;;  %v913_v22 = vadd.f32 %v1913_v34, %v2740_v42 }
 0x113   :  { %v916_v27 = vadd.f32 %v1916_v39, %v2740_v42 }
 0x115   :  { %v2005_v40 = vpop.f32.mrb[16].mxu1  ;;  %v1917_v41 = vpop.f32.mrb[16].mxu0 }
 0x116   :  { %v2006_v43 = vpop.f32.mrb[17].mxu1  ;;  %v1918_v44 = vpop.f32.mrb[17].mxu0 }
 0x117   :  { %v2007_v46 = vadd.f32 %v2006_v43, %v2005_v40  ;;  %v2008_v47 = vpop.f32.mrb[18].mxu1  ;;  %v1919_v48 = vadd.f32 %v1918_v44, %v1917_v41  ;;  %v1920_v49 = vpop.f32.mrb[18].mxu0 }
 0x118   :  { %v2009_v50 = vpop.f32.mrb[19].mxu1  ;;  %v1921_v51 = vpop.f32.mrb[19].mxu0 }
 0x119   :  { %v2010_v53 = vadd.f32 %v2009_v50, %v2008_v47  ;;  %v1922_v54 = vadd.f32 %v1921_v51, %v1920_v49  ;;  %v2744_v55 = vadd.f32 %v2007_v46, %v889_v45  ;;  %v921_v34 = vadd.f32 %v1919_v48, %v2740_v42 }
 0x11b   :  { %v2746_v56 = vadd.f32 %v2010_v53, %v892_v52  ;;  %v924_v39 = vadd.f32 %v1922_v54, %v2740_v42 }
 0x11d   :  { %v2011_v57 = vpop.f32.mrb[20].mxu1  ;;  %v1923_v58 = vpop.f32.mrb[20].mxu0 }
 0x11e   :  { %v2012_v59 = vpop.f32.mrb[21].mxu1  ;;  %v1924_v61 = vpop.f32.mrb[21].mxu0 }
 0x11f   :  { %v2013_v63 = vadd.f32 %v2012_v59, %v2011_v57  ;;  %v2014_v0 = vpop.f32.mrb[22].mxu1  ;;  %v1925_v1 = vadd.f32 %v1924_v61, %v1923_v58  ;;  %v1926_v4 = vpop.f32.mrb[22].mxu0 }
 0x120   :  { %v2015_v5 = vpop.f32.mrb[23].mxu1  ;;  %v1927_v6 = vpop.f32.mrb[23].mxu0 }
 0x121   :  { %v2016_v7 = vadd.f32 %v2015_v5, %v2014_v0  ;;  %v1928_v9 = vadd.f32 %v1927_v6, %v1926_v4  ;;  %v2750_v11 = vadd.f32 %v2013_v63, %v897_v62  ;;  %v929_v48 = vadd.f32 %v1925_v1, %v2740_v42 }
 0x123   :  { %v2752_v12 = vadd.f32 %v2016_v7, %v900_v3  ;;  %v932_v54 = vadd.f32 %v1928_v9, %v2740_v42 }
 0x125   :  { %v2017_v13 = vpop.f32.mrb[24].mxu1  ;;  %v1929_v16 = vpop.f32.mrb[24].mxu0 }
 0x126   :  { %v2018_v17 = vpop.f32.mrb[25].mxu1  ;;  %v1930_v18 = vpop.f32.mrb[25].mxu0 }
 0x127   :  { %v2019_v19 = vadd.f32 %v2018_v17, %v2017_v13  ;;  %v2020_v21 = vpop.f32.mrb[26].mxu1  ;;  %v1931_v23 = vadd.f32 %v1930_v18, %v1929_v16  ;;  %v1932_v24 = vpop.f32.mrb[26].mxu0 }
 0x128   :  { %v2021_v25 = vpop.f32.mrb[27].mxu1  ;;  %v1933_v28 = vpop.f32.mrb[27].mxu0 }
 0x129   :  { %v2022_v29 = vadd.f32 %v2021_v25, %v2020_v21  ;;  %v1934_v30 = vadd.f32 %v1933_v28, %v1932_v24  ;;  %v2756_v31 = vadd.f32 %v2019_v19, %v905_v10 }
 0x12b   :  { %v2758_v33 = vadd.f32 %v2022_v29, %v908_v15 }
 0x12d   :  { %v2023_v35 = vpop.f32.mrb[28].mxu1  ;;  %v1935_v36 = vpop.f32.mrb[28].mxu0 }
 0x12e   :  { %v2024_v37 = vpop.f32.mrb[29].mxu1  ;;  %v1936_v40 = vpop.f32.mrb[29].mxu0 }
 0x12f   :  { %v2025_v41 = vadd.f32 %v2024_v37, %v2023_v35  ;;  %v2026_v43 = vpop.f32.mrb[30].mxu1  ;;  %v1937_v44 = vadd.f32 %v1936_v40, %v1935_v36  ;;  %v1938_v45 = vpop.f32.mrb[30].mxu0 }
 0x130   :  { %v2027_v46 = vpop.f32.mrb[31].mxu1  ;;  %v1939_v47 = vpop.f32.mrb[31].mxu0 }
 0x131   :  { %v2028_v49 = vadd.f32 %v2027_v46, %v2026_v43  ;;  %v1940_v50 = vadd.f32 %v1939_v47, %v1938_v45  ;;  %v2762_v51 = vadd.f32 %v2025_v41, %v913_v22  ;;  %v937_v43 = vadd.f32 %v1931_v23, %v2740_v42 }
 0x133   :  { %v2764_v52 = vadd.f32 %v2028_v49, %v916_v27 }
 0x135   :  { %v2029_v53 = vpop.f32.mrb[32].mxu1  ;;  %v1941_v57 = vpop.f32.mrb[32].mxu0 }
 0x136   :  { %v2030_v58 = vpop.f32.mrb[33].mxu1  ;;  %v1942_v59 = vpop.f32.mrb[33].mxu0 }
 0x137   :  { %v2031_v61 = vadd.f32 %v2030_v58, %v2029_v53  ;;  %v2032_v62 = vpop.f32.mrb[34].mxu1  ;;  %v2767_v63 = vadd.f32 %v1942_v59, %v1941_v57  ;;  %v1944_v0 = vpop.f32.mrb[34].mxu0  ;;  %v940_v53 = vadd.f32 %v1934_v30, %v2740_v42 }
 0x138   :  { %v2033_v4 = vpop.f32.mrb[35].mxu1  ;;  %v1945_v5 = vpop.f32.mrb[35].mxu0 }
 0x139   :  { %v2034_v6 = vadd.f32 %v2033_v4, %v2032_v62  ;;  %v1946_v3 = vadd.f32 %v1945_v5, %v1944_v0  ;;  %v2770_v7 = vadd.f32 %v2031_v61, %v921_v34  ;;  %v945_v4 = vadd.f32 %v1937_v44, %v2740_v42 }
 0x13b   :  { %v2772_v13 = vadd.f32 %v2034_v6, %v924_v39 }
 0x13d   :  { %v2035_v16 = vpop.f32.mrb[36].mxu1  ;;  %v1947_v17 = vpop.f32.mrb[36].mxu0 }
 0x13e   :  { %v2036_v18 = vpop.f32.mrb[37].mxu1  ;;  %v1948_v10 = vpop.f32.mrb[37].mxu0 }
 0x13f   :  { %v2037_v19 = vadd.f32 %v2036_v18, %v2035_v16  ;;  %v2038_v21 = vpop.f32.mrb[38].mxu1  ;;  %v2775_v24 = vadd.f32 %v1948_v10, %v1947_v17  ;;  %v1950_v25 = vpop.f32.mrb[38].mxu0  ;;  %v948_v18 = vadd.f32 %v1940_v50, %v2740_v42  ;;  %v953_v50 = vadd.f32 %v2767_v63, %v2740_v42 }
 0x140   :  { %v2039_v28 = vpop.f32.mrb[39].mxu1  ;;  %v1951_v15 = vpop.f32.mrb[39].mxu0 }
 0x141   :  { %v2040_v29 = vadd.f32 %v2039_v28, %v2038_v21  ;;  %v2778_v35 = vadd.f32 %v1951_v15, %v1950_v25  ;;  %v2780_v36 = vadd.f32 %v2037_v19, %v929_v48 }
 0x143   :  { %v2782_v37 = vadd.f32 %v2040_v29, %v932_v54 }
 0x145   :  { %v2041_v40 = vpop.f32.mrb[40].mxu1  ;;  %v1953_v22 = vpop.f32.mrb[40].mxu0 }
 0x146   :  { %v2042_v41 = vpop.f32.mrb[41].mxu1  ;;  %v1954_v1 = vpop.f32.mrb[41].mxu0 }
 0x147   :  { %v2043_v45 = vadd.f32 %v2042_v41, %v2041_v40  ;;  %v2044_v46 = vpop.f32.mrb[42].mxu1  ;;  %v2785_v47 = vadd.f32 %v1954_v1, %v1953_v22  ;;  %v1956_v27 = vpop.f32.mrb[42].mxu0  ;;  %v956_v1 = vadd.f32 %v1946_v3, %v2740_v42 }
 0x148   :  { %v2045_v49 = vpop.f32.mrb[43].mxu1  ;;  %v1957_v9 = vpop.f32.mrb[43].mxu0 }
 0x149   :  { %v2046_v57 = vadd.f32 %v2045_v49, %v2044_v46  ;;  %v2788_v58 = vadd.f32 %v1957_v9, %v1956_v27  ;;  %v2790_v59 = vadd.f32 %v2043_v45, %v937_v43 }
 0x14b   :  { %v2792_v34 = vadd.f32 %v2046_v57, %v940_v53 }
 0x14d   :  { %v2047_v61 = vpop.f32.mrb[44].mxu1  ;;  %v1959_v62 = vpop.f32.mrb[44].mxu0 }
 0x14e   :  { %v2048_v0 = vpop.f32.mrb[45].mxu1  ;;  %v1960_v23 = vpop.f32.mrb[45].mxu0 }
 0x14f   :  { %v2049_v5 = vadd.f32 %v2048_v0, %v2047_v61  ;;  %v2050_v39 = vpop.f32.mrb[46].mxu1  ;;  %v2795_v6 = vadd.f32 %v1960_v23, %v1959_v62  ;;  %v1962_v16 = vpop.f32.mrb[46].mxu0 }
 0x150   :  { %v2051_v17 = vpop.f32.mrb[47].mxu1  ;;  %v1963_v30 = vpop.f32.mrb[47].mxu0 }
 0x151   :  { %v2052_v10 = vadd.f32 %v2051_v17, %v2050_v39  ;;  %v2798_v48 = vadd.f32 %v1963_v30, %v1962_v16  ;;  %v2800_v19 = vadd.f32 %v2049_v5, %v945_v4 }
 0x153   :  { %v2802_v21 = vadd.f32 %v2052_v10, %v948_v18 }
 0x155   :  { %v2053_v25 = vpop.f32.mrb[48].mxu1  ;;  %v2143_v28 = vpop.f32.mrb[48].mxu0 }
 0x156   :  { %v1219_v44 = vadd.f32 %v2143_v28, %v2750_v11  ;;  %v2054_v15 = vpop.f32.mrb[49].mxu1  ;;  %v1210_v54 = vpop.f32.mrb[49].mxu0  ;;  %v964_v28 = vadd.f32 %v2778_v35, %v2740_v42 }
 0x157   :  { %v2055_v29 = vadd.f32 %v2054_v15, %v2053_v25  ;;  %v1211_v40 = vadd.f32 %v1210_v54, %v2744_v55  ;;  %v2056_v22 = vpop.f32.mrb[50].mxu1  ;;  %v2144_v41 = vpop.f32.mrb[50].mxu0  ;;  %v961_v25 = vadd.f32 %v2775_v24, %v2740_v42 }
 0x158   :  { %v1371_v43 = vmul.f32 0.2, %v1219_v44  ;;  %v1222_v45 = vadd.f32 %v2144_v41, %v2752_v12  ;;  %v2057_v46 = vpop.f32.mrb[51].mxu1  ;;  %v1213_v27 = vpop.f32.mrb[51].mxu0  ;;  %vm1339_vm0 = vcmp.ge.f32.partialorder %v1219_v44, 0.0 }
 0x159   :  { %v1369_v49 = vmul.f32 0.2, %v1211_v40  ;;  %v2058_v11 = vadd.f32 %v2057_v46, %v2056_v22  ;;  %v1214_v9 = vadd.f32 %v1213_v27, %v2746_v56  ;;  %vm1337_vm1 = vcmp.ge.f32.partialorder %v1211_v40, 0.0 }
 0x15a   :  { %vm1340_vm2 = vcmp.ge.f32.partialorder %v1222_v45, 0.0  ;;  %v1372_v55 = vmul.f32 0.2, %v1222_v45  ;;  %v2811_v53 = vadd.f32 %v2055_v29, %v953_v50  ;;  %v1403_v3 = vsel %vm1339_vm0, %v1219_v44, %v1371_v43 }
 0x15b   :  { %vm1338_vm3 = vcmp.ge.f32.partialorder %v1214_v9, 0.0  ;;  %v1370_v57 = vmul.f32 0.2, %v1214_v9  ;;  %v2813_v63 = vadd.f32 %v2058_v11, %v956_v1  ;;  %v1401_v62 = vsel %vm1337_vm1, %v1211_v40, %v1369_v49 }
 0x15c   :  { %v1404_v61 = vsel %vm1340_vm2, %v1222_v45, %v1372_v55 }
 0x15d   :  { %v1790_v12 = vpack.c.bf16 %v1404_v61, %v1403_v3  ;;  %v1402_v0 = vsel %vm1338_vm3, %v1214_v9, %v1370_v57  ;;  %v2059_v23 = vpop.f32.mrb[52].mxu1  ;;  %v2147_v4 = vpop.f32.mrb[52].mxu0 }
 0x15e   :  { %v1785_v5 = vpack.c.bf16 %v1402_v0, %v1401_v62  ;;  %v1235_v39 = vadd.f32 %v2147_v4, %v2762_v51  ;;  %v2060_v56 = vpop.f32.mrb[53].mxu1  ;;  %v1226_v16 = vpop.f32.mrb[53].mxu0  ;;  %v969_v62 = vadd.f32 %v2785_v47, %v2740_v42 }
 0x15f   :  { %1862 = vst [vmem:[%s2920_s3 + $0x8] sm:$0xff] %v1790_v12   ;;  %v2061_v17 = vadd.f32 %v2060_v56, %v2059_v23  ;;  %v1227_v30 = vadd.f32 %v1226_v16, %v2756_v31  ;;  %v2062_v18 = vpop.f32.mrb[54].mxu1  ;;  %v2148_v10 = vpop.f32.mrb[54].mxu0  ;;  %v972_v12 = vadd.f32 %v2788_v58, %v2740_v42 }
 0x160   :  { %1786 = vst [vmem:[%s2920_s3] sm:$0xff] %v1785_v5   ;;  %v1375_v51 = vmul.f32 0.2, %v1235_v39  ;;  %v1238_v44 = vadd.f32 %v2148_v10, %v2764_v52  ;;  %v2063_v15 = vpop.f32.mrb[55].mxu1  ;;  %v1229_v54 = vpop.f32.mrb[55].mxu0  ;;  %vm1343_vm4 = vcmp.ge.f32.partialorder %v1235_v39, 0.0 }
 0x161   :  { %v1373_v29 = vmul.f32 0.2, %v1227_v30  ;;  %v2064_v31 = vadd.f32 %v2063_v15, %v2062_v18  ;;  %v1230_v40 = vadd.f32 %v1229_v54, %v2758_v33  ;;  %vm1341_vm5 = vcmp.ge.f32.partialorder %v1227_v30, 0.0 }
 0x162   :  { %vm1344_vm6 = vcmp.ge.f32.partialorder %v1238_v44, 0.0  ;;  %v1376_v24 = vmul.f32 0.2, %v1238_v44  ;;  %v2829_v22 = vadd.f32 %v2061_v17, %v961_v25  ;;  %v1407_v50 = vsel %vm1343_vm4, %v1235_v39, %v1375_v51 }
 0x163   :  { %vm1342_vm7 = vcmp.ge.f32.partialorder %v1230_v40, 0.0  ;;  %v1374_v35 = vmul.f32 0.2, %v1230_v40  ;;  %v2831_v41 = vadd.f32 %v2064_v31, %v964_v28  ;;  %v1405_v43 = vsel %vm1341_vm5, %v1227_v30, %v1373_v29 }
 0x164   :  { %v1408_v1 = vsel %vm1344_vm6, %v1238_v44, %v1376_v24  ;;  %v977_v24 = vadd.f32 %v2795_v6, %v2740_v42 }
 0x165   :  { %v1800_v52 = vpack.c.bf16 %v1408_v1, %v1407_v50  ;;  %v1406_v45 = vsel %vm1342_vm7, %v1230_v40, %v1374_v35  ;;  %v2065_v46 = vpop.f32.mrb[56].mxu1  ;;  %v2151_v27 = vpop.f32.mrb[56].mxu0  ;;  %v980_v35 = vadd.f32 %v2798_v48, %v2740_v42 }
 0x166   :  { %v1795_v49 = vpack.c.bf16 %v1406_v45, %v1405_v43  ;;  %v1251_v11 = vadd.f32 %v2151_v27, %v2780_v36  ;;  %v2066_v33 = vpop.f32.mrb[57].mxu1  ;;  %v1242_v9 = vpop.f32.mrb[57].mxu0 }
 0x167   :  { %1864 = vst [vmem:[%s2920_s3 + $0x18] sm:$0xff] %v1800_v52   ;;  %v2067_v55 = vadd.f32 %v2066_v33, %v2065_v46  ;;  %v1243_v57 = vadd.f32 %v1242_v9, %v2770_v7  ;;  %v2068_v3 = vpop.f32.mrb[58].mxu1  ;;  %v2152_v61 = vpop.f32.mrb[58].mxu0 }
 0x168   :  { %1863 = vst [vmem:[%s2920_s3 + $0x10] sm:$0xff] %v1795_v49   ;;  %v1379_v36 = vmul.f32 0.2, %v1251_v11  ;;  %v1254_v0 = vadd.f32 %v2152_v61, %v2782_v37  ;;  %v2069_v23 = vpop.f32.mrb[59].mxu1  ;;  %v1245_v4 = vpop.f32.mrb[59].mxu0  ;;  %vm1347_vm8 = vcmp.ge.f32.partialorder %v1251_v11, 0.0 }
 0x169   :  { %v1377_v5 = vmul.f32 0.2, %v1243_v57  ;;  %v2070_v7 = vadd.f32 %v2069_v23, %v2068_v3  ;;  %v1246_v39 = vadd.f32 %v1245_v4, %v2772_v13  ;;  %vm1345_vm9 = vcmp.ge.f32.partialorder %v1243_v57, 0.0 }
 0x16a   :  { %vm1348_vm10 = vcmp.ge.f32.partialorder %v1254_v0, 0.0  ;;  %v1380_v47 = vmul.f32 0.2, %v1254_v0  ;;  %v2847_v56 = vadd.f32 %v2067_v55, %v969_v62  ;;  %v1411_v17 = vsel %vm1347_vm8, %v1251_v11, %v1379_v36 }
 0x16b   :  { %vm1346_vm11 = vcmp.ge.f32.partialorder %v1246_v39, 0.0  ;;  %v1378_v58 = vmul.f32 0.2, %v1246_v39  ;;  %v2849_v16 = vadd.f32 %v2070_v7, %v972_v12  ;;  %v1409_v18 = vsel %vm1345_vm9, %v1243_v57, %v1377_v5 }
 0x16c   :  { %v1412_v30 = vsel %vm1348_vm10, %v1254_v0, %v1380_v47  ;;  %v985_v4 = vadd.f32 %v2721_v60, %v2740_v42  ;;  %v988_v5 = vadd.f32 %v2723_v2, %v2740_v42 }
 0x16d   :  { %v1810_v37 = vpack.c.bf16 %v1412_v30, %v1411_v17  ;;  %v1410_v10 = vsel %vm1346_vm11, %v1246_v39, %v1378_v58  ;;  %v2071_v25 = vpop.f32.mrb[60].mxu1  ;;  %v2155_v28 = vpop.f32.mrb[60].mxu0 }
 0x16e   :  { %v1805_v51 = vpack.c.bf16 %v1410_v10, %v1409_v18  ;;  %v1267_v44 = vadd.f32 %v2155_v28, %v2800_v19  ;;  %v2072_v13 = vpop.f32.mrb[61].mxu1  ;;  %v1258_v15 = vpop.f32.mrb[61].mxu0 }
 0x16f   :  { %1866 = vst [vmem:[%s2920_s3 + $0x28] sm:$0xff] %v1810_v37   ;;  %v2073_v54 = vadd.f32 %v2072_v13, %v2071_v25  ;;  %v1259_v29 = vadd.f32 %v1258_v15, %v2790_v59  ;;  %v2074_v31 = vpop.f32.mrb[62].mxu1  ;;  %v2156_v40 = vpop.f32.mrb[62].mxu0 }
 0x170   :  { %1865 = vst [vmem:[%s2920_s3 + $0x20] sm:$0xff] %v1805_v51   ;;  %v1383_v19 = vmul.f32 0.2, %v1267_v44  ;;  %v1270_v50 = vadd.f32 %v2156_v40, %v2802_v21  ;;  %v2075_v1 = vpop.f32.mrb[63].mxu1  ;;  %v1261_v43 = vpop.f32.mrb[63].mxu0  ;;  %vm1351_vm12 = vcmp.ge.f32.partialorder %v1267_v44, 0.0 }
 0x171   :  { %v1381_v52 = vmul.f32 0.2, %v1259_v29  ;;  %v2076_v59 = vadd.f32 %v2075_v1, %v2074_v31  ;;  %v1262_v45 = vadd.f32 %v1261_v43, %v2792_v34  ;;  %vm1349_vm13 = vcmp.ge.f32.partialorder %v1259_v29, 0.0 }
 0x172   :  { %vm1352_vm14 = vcmp.ge.f32.partialorder %v1270_v50, 0.0  ;;  %v1384_v6 = vmul.f32 0.2, %v1270_v50  ;;  %v1138_v46 = vadd.f32 %v2073_v54, %v977_v24  ;;  %v1415_v49 = vsel %vm1351_vm12, %v1267_v44, %v1383_v19 }
 0x173   :  { %vm1350_vm15 = vcmp.ge.f32.partialorder %v1262_v45, 0.0  ;;  %v1382_v48 = vmul.f32 0.2, %v1262_v45  ;;  %v1141_v27 = vadd.f32 %v2076_v59, %v980_v35  ;;  %v1413_v33 = vsel %vm1349_vm13, %v1259_v29, %v1381_v52 }
 0x174   :  { %v1416_v11 = vsel %vm1352_vm14, %v1270_v50, %v1384_v6  ;;  %v993_v35 = vadd.f32 %v2725_v8, %v2740_v42  ;;  %v996_v19 = vadd.f32 %v2727_v14, %v2740_v42 }
 0x175   :  { %v1820_v9 = vpack.c.bf16 %v1416_v11, %v1415_v49  ;;  %v1414_v55 = vsel %vm1350_vm15, %v1262_v45, %v1382_v48  ;;  %v2077_v21 = vpop.f32.mrb[64].mxu1  ;;  %v2159_v57 = vpop.f32.mrb[64].mxu0 }
 0x176   :  { %v1815_v3 = vpack.c.bf16 %v1414_v55, %v1413_v33  ;;  %v1283_v61 = vadd.f32 %v2159_v57, %v2829_v22  ;;  %v2078_v62 = vpop.f32.mrb[65].mxu1  ;;  %v1274_v12 = vpop.f32.mrb[65].mxu0 }
 0x177   :  { %1868 = vst [vmem:[%s2920_s3 + $0x38] sm:$0xff] %v1820_v9   ;;  %v2079_v34 = vadd.f32 %v2078_v62, %v2077_v21  ;;  %v1275_v36 = vadd.f32 %v1274_v12, %v2811_v53  ;;  %v2080_v0 = vpop.f32.mrb[66].mxu1  ;;  %v2160_v23 = vpop.f32.mrb[66].mxu0 }
 0x178   :  { %1867 = vst [vmem:[%s2920_s3 + $0x30] sm:$0xff] %v1815_v3   ;;  %v1387_v22 = vmul.f32 0.2, %v1283_v61  ;;  %v1286_v7 = vadd.f32 %v2160_v23, %v2831_v41  ;;  %v2081_v39 = vpop.f32.mrb[67].mxu1  ;;  %v1277_v47 = vpop.f32.mrb[67].mxu0  ;;  %vm1355_vm0 = vcmp.ge.f32.partialorder %v1283_v61, 0.0 }
 0x179   :  { %v1385_v58 = vmul.f32 0.2, %v1275_v36  ;;  %v2082_v53 = vadd.f32 %v2081_v39, %v2080_v0  ;;  %v1278_v17 = vadd.f32 %v1277_v47, %v2813_v63  ;;  %vm1353_vm1 = vcmp.ge.f32.partialorder %v1275_v36, 0.0 }
 0x17a   :  { %vm1356_vm2 = vcmp.ge.f32.partialorder %v1286_v7, 0.0  ;;  %v1388_v60 = vmul.f32 0.2, %v1286_v7  ;;  %v1146_v30 = vadd.f32 %v2079_v34, %v985_v4  ;;  %v1419_v37 = vsel %vm1355_vm0, %v1283_v61, %v1387_v22 }
 0x17b   :  { %vm1354_vm3 = vcmp.ge.f32.partialorder %v1278_v17, 0.0  ;;  %v1386_v2 = vmul.f32 0.2, %v1278_v17  ;;  %v1149_v18 = vadd.f32 %v2082_v53, %v988_v5  ;;  %v1417_v25 = vsel %vm1353_vm1, %v1275_v36, %v1385_v58 }
 0x17c   :  { %v1420_v10 = vsel %vm1356_vm2, %v1286_v7, %v1388_v60  ;;  %v1001_v36 = vadd.f32 %v2729_v20, %v2740_v42  ;;  %v1004_v0 = vadd.f32 %v2731_v26, %v2740_v42 }
 0x17d   :  { %v1830_v28 = vpack.c.bf16 %v1420_v10, %v1419_v37  ;;  %v1418_v51 = vsel %vm1354_vm3, %v1278_v17, %v1386_v2  ;;  %v2083_v41 = vpop.f32.mrb[68].mxu1  ;;  %v2163_v44 = vpop.f32.mrb[68].mxu0 }
 0x17e   :  { %v1825_v13 = vpack.c.bf16 %v1418_v51, %v1417_v25  ;;  %v1299_v15 = vadd.f32 %v2163_v44, %v1138_v46  ;;  %v2084_v54 = vpop.f32.mrb[69].mxu1  ;;  %v1290_v29 = vpop.f32.mrb[69].mxu0 }
 0x17f   :  { %1870 = vst [vmem:[%s2920_s3 + $0x48] sm:$0xff] %v1830_v28   ;;  %v2085_v63 = vadd.f32 %v2084_v54, %v2083_v41  ;;  %v1291_v31 = vadd.f32 %v1290_v29, %v2847_v56  ;;  %v2086_v40 = vpop.f32.mrb[70].mxu1  ;;  %v2164_v24 = vpop.f32.mrb[70].mxu0 }
 0x180   :  { %1869 = vst [vmem:[%s2920_s3 + $0x40] sm:$0xff] %v1825_v13   ;;  %v1391_v50 = vmul.f32 0.2, %v1299_v15  ;;  %v1302_v1 = vadd.f32 %v2164_v24, %v1141_v27  ;;  %v2087_v43 = vpop.f32.mrb[71].mxu1  ;;  %v1293_v52 = vpop.f32.mrb[71].mxu0  ;;  %vm1359_vm4 = vcmp.ge.f32.partialorder %v1299_v15, 0.0 }
 0x181   :  { %v1389_v59 = vmul.f32 0.2, %v1291_v31  ;;  %v2088_v45 = vadd.f32 %v2087_v43, %v2086_v40  ;;  %v1294_v56 = vadd.f32 %v1293_v52, %v2849_v16  ;;  %vm1357_vm5 = vcmp.ge.f32.partialorder %v1291_v31, 0.0 }
 0x182   :  { %vm1360_vm6 = vcmp.ge.f32.partialorder %v1302_v1, 0.0  ;;  %v1392_v6 = vmul.f32 0.2, %v1302_v1  ;;  %v1154_v8 = vadd.f32 %v2085_v63, %v993_v35  ;;  %v1423_v48 = vsel %vm1359_vm4, %v1299_v15, %v1391_v50 }
 0x183   :  { %vm1358_vm7 = vcmp.ge.f32.partialorder %v1294_v56, 0.0  ;;  %v1390_v46 = vmul.f32 0.2, %v1294_v56  ;;  %v1157_v14 = vadd.f32 %v2088_v45, %v996_v19  ;;  %v1421_v11 = vsel %vm1357_vm5, %v1291_v31, %v1389_v59 }
 0x184   :  { %v1424_v49 = vsel %vm1360_vm6, %v1302_v1, %v1392_v6  ;;  %v1012_v31 = vadd.f32 %v2735_v38, %v2740_v42 }
 0x185   :  { %v1840_v33 = vpack.c.bf16 %v1424_v49, %v1423_v48  ;;  %v1422_v9 = vsel %vm1358_vm7, %v1294_v56, %v1390_v46  ;;  %v2089_v27 = vpop.f32.mrb[72].mxu1  ;;  %v2167_v55 = vpop.f32.mrb[72].mxu0 }
 0x186   :  { %v1835_v21 = vpack.c.bf16 %v1422_v9, %v1421_v11  ;;  %v1315_v57 = vadd.f32 %v2167_v55, %v1154_v8  ;;  %v2090_v3 = vpop.f32.mrb[73].mxu1  ;;  %v1306_v61 = vpop.f32.mrb[73].mxu0 }
 0x187   :  { %1872 = vst [vmem:[%s2920_s3 + $0x58] sm:$0xff] %v1840_v33   ;;  %v2091_v16 = vadd.f32 %v2090_v3, %v2089_v27  ;;  %v1307_v62 = vadd.f32 %v1306_v61, %v1146_v30  ;;  %v2092_v12 = vpop.f32.mrb[74].mxu1  ;;  %v2168_v34 = vpop.f32.mrb[74].mxu0 }
 0x188   :  { %1871 = vst [vmem:[%s2920_s3 + $0x50] sm:$0xff] %v1835_v21   ;;  %v1395_v23 = vmul.f32 0.2, %v1315_v57  ;;  %v1318_v4 = vadd.f32 %v2168_v34, %v1157_v14  ;;  %v2093_v5 = vpop.f32.mrb[75].mxu1  ;;  %v1309_v22 = vpop.f32.mrb[75].mxu0  ;;  %vm1363_vm8 = vcmp.ge.f32.partialorder %v1315_v57, 0.0 }
 0x189   :  { %v1393_v7 = vmul.f32 0.2, %v1307_v62  ;;  %v2094_v39 = vadd.f32 %v2093_v5, %v2092_v12  ;;  %v1310_v47 = vadd.f32 %v1309_v22, %v1149_v18  ;;  %vm1361_vm9 = vcmp.ge.f32.partialorder %v1307_v62, 0.0 }
 0x18a   :  { %vm1364_vm10 = vcmp.ge.f32.partialorder %v1318_v4, 0.0  ;;  %v1396_v58 = vmul.f32 0.2, %v1318_v4  ;;  %v1162_v53 = vadd.f32 %v2091_v16, %v1001_v36  ;;  %v1427_v26 = vsel %vm1363_vm8, %v1315_v57, %v1395_v23 }
 0x18b   :  { %vm1362_vm11 = vcmp.ge.f32.partialorder %v1310_v47, 0.0  ;;  %v1394_v20 = vmul.f32 0.2, %v1310_v47  ;;  %v1165_v17 = vadd.f32 %v2094_v39, %v1004_v0  ;;  %v1425_v30 = vsel %vm1361_vm9, %v1307_v62, %v1393_v7 }
 0x18c   :  { %v1428_v60 = vsel %vm1364_vm10, %v1318_v4, %v1396_v58  ;;  %v1009_v18 = vadd.f32 %v2733_v32, %v2740_v42 }
 0x18d   :  { %v1850_v2 = vpack.c.bf16 %v1428_v60, %v1427_v26  ;;  %v1426_v37 = vsel %vm1362_vm11, %v1310_v47, %v1394_v20  ;;  %v2095_v10 = vpop.f32.mrb[76].mxu1  ;;  %v2171_v25 = vpop.f32.mrb[76].mxu0 }
 0x18e   :  { %v1845_v28 = vpack.c.bf16 %v1426_v37, %v1425_v30  ;;  %v2096_v51 = vpop.f32.mrb[77].mxu1  ;;  %v1322_v41 = vpop.f32.mrb[77].mxu0 }
 0x18f   :  { %1874 = vst [vmem:[%s2920_s3 + $0x68] sm:$0xff] %v1850_v2   ;;  %v2097_v44 = vadd.f32 %v2096_v51, %v2095_v10  ;;  %v1323_v13 = vadd.f32 %v1322_v41, %v1162_v53  ;;  %v2098_v15 = vpop.f32.mrb[78].mxu1  ;;  %v2172_v54 = vpop.f32.mrb[78].mxu0 }
 0x190   :  { %1873 = vst [vmem:[%s2920_s3 + $0x60] sm:$0xff] %v1845_v28   ;;  %v2099_v29 = vpop.f32.mrb[79].mxu1  ;;  %v1325_v63 = vpop.f32.mrb[79].mxu0 }
 0x191   :  { %v1170_v40 = vadd.f32 %v2097_v44, %v1009_v18  ;;  %v2100_v24 = vadd.f32 %v2099_v29, %v2098_v15  ;;  %v1397_v32 = vmul.f32 0.2, %v1323_v13  ;;  %v1326_v35 = vadd.f32 %v1325_v63, %v1165_v17 }
 0x192   :  { %vm1365_vm12 = vcmp.ge.f32.partialorder %v1323_v13, 0.0 }
 0x193   :  { %v1331_v19 = vadd.f32 %v2171_v25, %v1170_v40  ;;  %v1173_v50 = vadd.f32 %v2100_v24, %v1012_v31  ;;  %vm1366_vm13 = vcmp.ge.f32.partialorder %v1326_v35, 0.0  ;;  %v1398_v1 = vmul.f32 0.2, %v1326_v35 }
 0x194   :  { %v1429_v59 = vsel %vm1365_vm12, %v1323_v13, %v1397_v32 }
 0x195   :  { %v1399_v43 = vmul.f32 0.2, %v1331_v19  ;;  %v1334_v52 = vadd.f32 %v2172_v54, %v1173_v50  ;;  %vm1367_vm14 = vcmp.ge.f32.partialorder %v1331_v19, 0.0  ;;  %v1430_v45 = vsel %vm1366_vm13, %v1326_v35, %v1398_v1 }
 0x196   :  { %v1855_v6 = vpack.c.bf16 %v1430_v45, %v1429_v59 }
 0x197   :  { %vm1368_vm15 = vcmp.ge.f32.partialorder %v1334_v52, 0.0  ;;  %v1400_v56 = vmul.f32 0.2, %v1334_v52  ;;  %v1431_v8 = vsel %vm1367_vm14, %v1331_v19, %v1399_v43 }
 0x198   :  { %1875 = vst [vmem:[%s2920_s3 + $0x70] sm:$0xff] %v1855_v6  }
 0x199   :  { %v1432_v46 = vsel %vm1368_vm15, %v1334_v52, %v1400_v56 }
 0x19a   :  { %v1860_v38 = vpack.c.bf16 %v1432_v46, %v1431_v8 }
 0x19c   :  { %1876 = vst [vmem:[%s2920_s3 + $0x78] sm:$0xff] %v1860_v38  }

// kernel: a_call__.15
= control target key start
LH: loop header
LB: loop body
LE: loop exit
PB: predicated region body
PF: predicated region fallthrough
CT: control target
= control target key end

     0   :  { %s1868_s12 = smov 0   ;;  %s2118_s0 = inlined_call_operand.vmem [shape: bf16[1024,384], index: 0, kind: input, shape index: {}]   ;;  %s2119_s1 = inlined_call_operand.vmem [shape: bf16[384,128], index: 1, kind: input, shape index: {}]   ;;  %s2120_s2 = inlined_call_operand.vmem [shape: f32[1,128], index: 2, kind: input, shape index: {}]   ;;  %s2121_s3 = inlined_call_operand.vmem [shape: f32[1024,128], index: 3, kind: output, shape index: {}]  }
   0x1 LB: > { %s1299_s13 = sadd.s32 4294967295, %s1846_s12   ;;  %p1303_p0 = scmp.ge.s32.totalorder %s1846_s12, 1  ;;  %s1846_s12 = sphi %s1868_s12, %s13_s12  }
   0x2   : > { %p139_p1 = scmp.lt.s32.totalorder %s1846_s12, 5 }
   0x4   : > { %p140_p2 = pnand %p1303_p0, %p139_p1 }
   0x5   : > { %v1624_v0 = vld [vmem:[%s2119_s1 + $0x40] sm:$0xff] (!%p140_p2)   ;;  %s1304_s16 = sshll.u32 (!%p140_p2), %s1299_s13, 5  ;;  %v1626_v2 = vld [vmem:[%s2119_s1 + $0x48] sm:$0xff] (!%p140_p2)   ;;  %v1628_v4 = vld [vmem:[%s2119_s1 + $0x50] sm:$0xff] (!%p140_p2)  }
   0x6   : > { %143 = sbr.rel (%p140_p2) target bundleno = 384 (0x180), region = 32  ;;  %v1625_v1 = vld [vmem:[%s2119_s1] sm:$0xff] (!%p140_p2)   ;;  %1415 = vmatprep.subr.bf16.mxu0 (!%p140_p2), %v1624_v0  ;;  %1599 = vmatprep.subr.bf16.mxu1 (!%p140_p2), %v1624_v0  ;;  %p165_p3 = scmp.lt.s32.totalorder (!%p140_p2), %s1304_s16, 127  ;;  %v1627_v3 = vld [vmem:[%s2119_s1 + $0x8] sm:$0xff] (!%p140_p2)   ;;  %v1629_v5 = vld [vmem:[%s2119_s1 + $0x10] sm:$0xff] (!%p140_p2)  }
   0x7   : > { %1416 = vmatpush3.bf16.msra.mxu0 (!%p140_p2), %v1625_v1  ;;  %1607 = vmatpush3.bf16.msra.mxu1 (!%p140_p2), %v1625_v1  ;;  %v1630_v6 = vld [vmem:[%s2119_s1 + $0x58] sm:$0xff] (!%p140_p2)   ;;  %v1632_v8 = vld [vmem:[%s2119_s1 + $0x60] sm:$0xff] (!%p140_p2)   ;;  %v1634_v10 = vld [vmem:[%s2119_s1 + $0x68] sm:$0xff] (!%p140_p2)  }
   0x8   : > { %1417 = vmatprep.subr.bf16.mxu0 (!%p140_p2), %v1626_v2  ;;  %1600 = vmatprep.subr.bf16.mxu1 (!%p140_p2), %v1626_v2  ;;  %v1631_v7 = vld [vmem:[%s2119_s1 + $0x18] sm:$0xff] (!%p140_p2)   ;;  %v1633_v9 = vld [vmem:[%s2119_s1 + $0x20] sm:$0xff] (!%p140_p2)   ;;  %v1635_v13 = vld [vmem:[%s2119_s1 + $0x28] sm:$0xff] (!%p140_p2)  }
   0x9   : > { %v1636_v14 = vld [vmem:[%s2119_s1 + $0x70] sm:$0xff] (!%p140_p2)   ;;  %v1638_v16 = vld [vmem:[%s2119_s1 + $0x78] sm:$0xff] (!%p140_p2)   ;;  %v1646_v18 = vld [vmem:[%s2119_s1 + $0x80] sm:$0xff] (!%p140_p2)  }
   0xa   : > { %v1637_v15 = vld [vmem:[%s2119_s1 + $0x30] sm:$0xff] (!%p140_p2)   ;;  %v1639_v17 = vld [vmem:[%s2119_s1 + $0x38] sm:$0xff] (!%p140_p2)   ;;  %v1647_v22 = vld [vmem:[%s2119_s1 + $0x88] sm:$0xff] (!%p140_p2)  }
   0xb   : > { %1418 = vmatpush3.bf16.msra.mxu0 (!%p140_p2), %v1627_v3  ;;  %1608 = vmatpush3.bf16.msra.mxu1 (!%p140_p2), %v1627_v3  ;;  %v1654_v25 = vld [vmem:[%s2119_s1 + $0x90] sm:$0xff] (!%p140_p2)   ;;  %v1655_v27 = vld [vmem:[%s2119_s1 + $0x98] sm:$0xff] (!%p140_p2)   ;;  %v1662_v30 = vld [vmem:[%s2119_s1 + $0xa0] sm:$0xff] (!%p140_p2)  }
   0xc   : > { %1419 = vmatprep.subr.bf16.mxu0 (!%p140_p2), %v1628_v4  ;;  %1601 = vmatprep.subr.bf16.mxu1 (!%p140_p2), %v1628_v4  ;;  %v1663_v33 = vld [vmem:[%s2119_s1 + $0xa8] sm:$0xff] (!%p140_p2)   ;;  %v1670_v36 = vld [vmem:[%s2119_s1 + $0xb0] sm:$0xff] (!%p140_p2)   ;;  %v1671_v40 = vld [vmem:[%s2119_s1 + $0xb8] sm:$0xff] (!%p140_p2)  }
   0xd   : > { %s2123_s16 = smov (!%p165_p3, %s1304_s16), 127 }
   0xe   : > { %s1615_s29 = smul.u32 12, %s2123_s16  ;;  %s1307_s19 = sshll.u32 %s2123_s16, 3 }
   0xf   : > { %1420 = vmatpush3.bf16.msra.mxu0 %v1629_v5  ;;  %1609 = vmatpush3.bf16.msra.mxu1 %v1629_v5  ;;  %s2042_s22 = scalar_lea.vmem %s2121_s3, %s1307_s19 }
  0x10   : > { %1421 = vmatprep.subr.bf16.mxu0 %v1630_v6  ;;  %1602 = vmatprep.subr.bf16.mxu1 %v1630_v6  ;;  %s1909_s9 = scalar_lea.vmem %s2118_s0, %s1615_s29 }
  0x11   : > { %v1642_v11 = vld [vmem:[%s1909_s9 + $0x4] ss:$12 sps:$4 sm:$0xff]   ;;  %v1640_v19 = vld [vmem:[%s1909_s9] ss:$12 sps:$4 sm:$0xff]   ;;  %v1648_v21 = vld [vmem:[%s1909_s9 + $0x1c] ss:$12 sps:$4 sm:$0xff]  }
  0x12   : > { %v1645_v12 = vld [vmem:[%s1909_s9 + $0x124] ss:$12 sps:$4 sm:$0xff]   ;;  %729 = vmatprep.mubr.bf16.mxu0 %v1642_v11  ;;  %v1643_v20 = vld [vmem:[%s1909_s9 + $0x120] ss:$12 sps:$4 sm:$0xff]   ;;  %v1650_v23 = vld [vmem:[%s1909_s9 + $0x13c] ss:$12 sps:$4 sm:$0xff]  }
  0x13   : > { %1422 = vmatpush3.bf16.msra.mxu0 %v1631_v7  ;;  %1610 = vmatpush3.bf16.msra.mxu1 %v1631_v7  ;;  %v1652_v24 = vld [vmem:[%s1909_s9 + $0x18] ss:$12 sps:$4 sm:$0xff]   ;;  %v1656_v28 = vld [vmem:[%s1909_s9 + $0x34] ss:$12 sps:$4 sm:$0xff]   ;;  %v1660_v31 = vld [vmem:[%s1909_s9 + $0x30] ss:$12 sps:$4 sm:$0xff]  }
  0x14   : > { %1423 = vmatprep.subr.bf16.mxu0 %v1632_v8  ;;  %1603 = vmatprep.subr.bf16.mxu1 %v1632_v8  ;;  %v1653_v26 = vld [vmem:[%s1909_s9 + $0x138] ss:$12 sps:$4 sm:$0xff]   ;;  %v1658_v29 = vld [vmem:[%s1909_s9 + $0x154] ss:$12 sps:$4 sm:$0xff]   ;;  %v1661_v32 = vld [vmem:[%s1909_s9 + $0x150] ss:$12 sps:$4 sm:$0xff]  }
  0x15   : > { %825 = vmatprep.mubr.bf16.mxu1 %v1645_v12  ;;  %v1664_v34 = vld [vmem:[%s1909_s9 + $0x4c] ss:$12 sps:$4 sm:$0xff]   ;;  %v1668_v37 = vld [vmem:[%s1909_s9 + $0x48] ss:$12 sps:$4 sm:$0xff]   ;;  %v1672_v39 = vld [vmem:[%s1909_s9 + $0x64] ss:$12 sps:$4 sm:$0xff]  }
  0x16   : > { %v1666_v35 = vld [vmem:[%s1909_s9 + $0x16c] ss:$12 sps:$4 sm:$0xff]   ;;  %v1669_v38 = vld [vmem:[%s1909_s9 + $0x168] ss:$12 sps:$4 sm:$0xff]   ;;  %v1681_v47 = vld [vmem:[%s1909_s9 + $0x50] ss:$12 sps:$4 sm:$0xff]  }
  0x17   : > { %1424 = vmatpush3.bf16.msra.mxu0 %v1633_v9  ;;  %1611 = vmatpush3.bf16.msra.mxu1 %v1633_v9  ;;  %v1674_v41 = vld [vmem:[%s1909_s9 + $0x8] ss:$12 sps:$4 sm:$0xff]   ;;  %v1675_v42 = vld [vmem:[%s1909_s9 + $0x60] ss:$12 sps:$4 sm:$0xff]   ;;  %v1679_v45 = vld [vmem:[%s1909_s9 + $0x38] ss:$12 sps:$4 sm:$0xff]  }
  0x18   : > { %1425 = vmatprep.subr.bf16.mxu0 %v1634_v10  ;;  %1604 = vmatprep.subr.bf16.mxu1 %v1634_v10  ;;  %v1676_v43 = vld [vmem:[%s1909_s9 + $0x20] ss:$12 sps:$4 sm:$0xff]   ;;  %v1677_v44 = vld [vmem:[%s1909_s9 + $0x7c] ss:$12 sps:$4 sm:$0xff]   ;;  %v1680_v46 = vld [vmem:[%s1909_s9 + $0x78] ss:$12 sps:$4 sm:$0xff]  }
  0x19   : > { %v1682_v48 = vld [vmem:[%s1909_s9 + $0x94] ss:$12 sps:$4 sm:$0xff]   ;;  %v1685_v50 = vld [vmem:[%s1909_s9 + $0x90] ss:$12 sps:$4 sm:$0xff]   ;;  %v1687_v52 = vld [vmem:[%s1909_s9 + $0xac] ss:$12 sps:$4 sm:$0xff]  }
  0x1a   : > { %v1684_v49 = vld [vmem:[%s1909_s9 + $0x68] ss:$12 sps:$4 sm:$0xff]   ;;  %v1686_v51 = vld [vmem:[%s1909_s9 + $0x80] ss:$12 sps:$4 sm:$0xff]   ;;  %v1689_v53 = vld [vmem:[%s1909_s9 + $0x98] ss:$12 sps:$4 sm:$0xff]  }
  0x1b   : > { %1426 = vmatpush3.bf16.msra.mxu0 %v1635_v13  ;;  %1612 = vmatpush3.bf16.msra.mxu1 %v1635_v13  ;;  %v1690_v54 = vld [vmem:[%s1909_s9 + $0xa8] ss:$12 sps:$4 sm:$0xff]   ;;  %v1691_v55 = vld [vmem:[%s1909_s9 + $0xb0] ss:$12 sps:$4 sm:$0xff]   ;;  %v1695_v58 = vld [vmem:[%s1909_s9 + $0xc0] ss:$12 sps:$4 sm:$0xff]  }
  0x1c   : > { %1427 = vmatprep.subr.bf16.mxu0 %v1636_v14  ;;  %1605 = vmatprep.subr.bf16.mxu1 %v1636_v14  ;;  %v1692_v56 = vld [vmem:[%s1909_s9 + $0xc4] ss:$12 sps:$4 sm:$0xff]   ;;  %v1694_v57 = vld [vmem:[%s1909_s9 + $0xc8] ss:$12 sps:$4 sm:$0xff]   ;;  %v1696_v59 = vld [vmem:[%s1909_s9 + $0xe0] ss:$12 sps:$4 sm:$0xff]  }
  0x1d   : > { %v1697_v60 = vld [vmem:[%s1909_s9 + $0xdc] ss:$12 sps:$4 sm:$0xff]   ;;  %v1699_v61 = vld [vmem:[%s1909_s9 + $0xf8] ss:$12 sps:$4 sm:$0xff]   ;;  %v1702_v0 = vld [vmem:[%s1909_s9 + $0xf4] ss:$12 sps:$4 sm:$0xff]  }
  0x1e   : > { %v1700_v62 = vld [vmem:[%s1909_s9 + $0xd8] ss:$12 sps:$4 sm:$0xff]   ;;  %v1701_v63 = vld [vmem:[%s1909_s9 + $0x110] ss:$12 sps:$4 sm:$0xff]   ;;  %v1704_v1 = vld [vmem:[%s1909_s9 + $0x128] ss:$12 sps:$4 sm:$0xff]  }
  0x1f   : > { %1428 = vmatpush3.bf16.msra.mxu0 %v1637_v15  ;;  %1613 = vmatpush3.bf16.msra.mxu1 %v1637_v15  ;;  %v1705_v2 = vld [vmem:[%s1909_s9 + $0xf0] ss:$12 sps:$4 sm:$0xff]   ;;  %v1706_v3 = vld [vmem:[%s1909_s9 + $0x140] ss:$12 sps:$4 sm:$0xff]   ;;  %v1709_v5 = vld [vmem:[%s1909_s9 + $0x158] ss:$12 sps:$4 sm:$0xff]  }
  0x20   : > { %1429 = vmatprep.subr.bf16.mxu0 %v1638_v16  ;;  %1606 = vmatprep.subr.bf16.mxu1 %v1638_v16  ;;  %v1707_v4 = vld [vmem:[%s1909_s9 + $0x10c] ss:$12 sps:$4 sm:$0xff]   ;;  %v1710_v6 = vld [vmem:[%s1909_s9 + $0x108] ss:$12 sps:$4 sm:$0xff]   ;;  %v1711_v7 = vld [vmem:[%s1909_s9 + $0x170] ss:$12 sps:$4 sm:$0xff]  }
  0x23   : > { %1430 = vmatpush3.bf16.msra.mxu0 %v1639_v17  ;;  %1614 = vmatpush3.bf16.msra.mxu1 %v1639_v17 }
  0x24   : > { %1551 = vmatprep.subr.bf16.mxu1 %v1646_v18 }
  0x26   : > { %730 = vmatmul.mubr.bf16.vlgmr.msra.gmra.mrb[0].mxu0 %v1640_v19  ;;  %826 = vmatmul.mubr.bf16.vlgmr.msra.gmra.mrb[0].mxu1 %v1643_v20 }
  0x27   : > { %1552 = vmatpush3.bf16.msra.mxu1 %v1646_v18  ;;  %737 = vmatprep.mubr.bf16.mxu0 %v1648_v21 }
  0x28   : > { %1553 = vmatprep.subr.bf16.mxu1 %v1647_v22  ;;  %833 = vmatprep.mubr.bf16.mxu1 %v1650_v23 }
  0x2b   : > { %1554 = vmatpush3.bf16.msra.mxu1 %v1647_v22 }
  0x2c   : > { %1555 = vmatprep.subr.bf16.mxu1 %v1654_v25 }
  0x2e   : > { %738 = vmatmul.mubr.bf16.gmra.mrb[4].mxu0 %v1652_v24  ;;  %834 = vmatmul.mubr.bf16.gmra.mrb[4].mxu1 %v1653_v26 }
  0x2f   : > { %1556 = vmatpush3.bf16.msra.mxu1 %v1654_v25  ;;  %745 = vmatprep.mubr.bf16.mxu0 %v1656_v28 }
  0x30   : > { %1557 = vmatprep.subr.bf16.mxu1 %v1655_v27  ;;  %841 = vmatprep.mubr.bf16.mxu1 %v1658_v29 }
  0x33   : > { %1558 = vmatpush3.bf16.msra.mxu1 %v1655_v27 }
  0x34   : > { %1559 = vmatprep.subr.bf16.mxu1 %v1662_v30 }
  0x36   : > { %746 = vmatmul.mubr.bf16.gmra.mrb[8].mxu0 %v1660_v31  ;;  %842 = vmatmul.mubr.bf16.gmra.mrb[8].mxu1 %v1661_v32 }
  0x37   : > { %1560 = vmatpush3.bf16.msra.mxu1 %v1662_v30  ;;  %753 = vmatprep.mubr.bf16.mxu0 %v1664_v34 }
  0x38   : > { %1561 = vmatprep.subr.bf16.mxu1 %v1663_v33  ;;  %849 = vmatprep.mubr.bf16.mxu1 %v1666_v35 }
  0x3b   : > { %1562 = vmatpush3.bf16.msra.mxu1 %v1663_v33 }
  0x3c   : > { %1563 = vmatprep.subr.bf16.mxu1 %v1670_v36 }
  0x3e   : > { %754 = vmatmul.mubr.bf16.gmra.mrb[12].mxu0 %v1668_v37  ;;  %850 = vmatmul.mubr.bf16.gmra.mrb[12].mxu1 %v1669_v38 }
  0x3f   : > { %1564 = vmatpush3.bf16.msra.mxu1 %v1670_v36  ;;  %761 = vmatprep.mubr.bf16.mxu0 %v1672_v39 }
  0x40   : > { %1565 = vmatprep.subr.bf16.mxu1 %v1671_v40  ;;  %1567 = vmatprep.mubr.bf16.mxu1 %v1674_v41 }
  0x43   : > { %1566 = vmatpush3.bf16.msra.mxu1 %v1671_v40 }
  0x46   : > { %762 = vmatmul.mubr.bf16.gmra.mrb[16].mxu0 %v1675_v42  ;;  %1568 = vmatmul.mubr.bf16.vlgmr.msra.gmra.mrb[16].mxu1 %v1676_v43 }
  0x47   : > { %769 = vmatprep.mubr.bf16.mxu0 %v1677_v44  ;;  %1571 = vmatprep.mubr.bf16.mxu1 %v1679_v45 }
  0x4e   : > { %770 = vmatmul.mubr.bf16.gmra.mrb[20].mxu0 %v1680_v46  ;;  %1572 = vmatmul.mubr.bf16.gmra.mrb[20].mxu1 %v1681_v47 }
  0x4f   : > { %777 = vmatprep.mubr.bf16.mxu0 %v1682_v48  ;;  %1575 = vmatprep.mubr.bf16.mxu1 %v1684_v49 }
  0x56   : > { %778 = vmatmul.mubr.bf16.gmra.mrb[24].mxu0 %v1685_v50  ;;  %1576 = vmatmul.mubr.bf16.gmra.mrb[24].mxu1 %v1686_v51 }
  0x57   : > { %785 = vmatprep.mubr.bf16.mxu0 %v1687_v52  ;;  %1579 = vmatprep.mubr.bf16.mxu1 %v1689_v53 }
  0x5e   : > { %786 = vmatmul.mubr.bf16.gmra.mrb[28].mxu0 %v1690_v54  ;;  %1580 = vmatmul.mubr.bf16.gmra.mrb[28].mxu1 %v1691_v55 }
  0x5f   : > { %793 = vmatprep.mubr.bf16.mxu0 %v1692_v56  ;;  %1583 = vmatprep.mubr.bf16.mxu1 %v1694_v57  ;;  %v2023_v56 = vld [vmem:[%s2120_s2] ss:$0 sm:$0xff] }
  0x66   : > { %794 = vmatmul.mubr.bf16.gmra.mrb[32].mxu0 %v1695_v58  ;;  %1584 = vmatmul.mubr.bf16.gmra.mrb[32].mxu1 %v1696_v59 }
  0x67   : > { %801 = vmatprep.mubr.bf16.mxu0 %v1697_v60  ;;  %1587 = vmatprep.mubr.bf16.mxu1 %v1699_v61 }
  0x6e   : > { %802 = vmatmul.mubr.bf16.gmra.mrb[36].mxu0 %v1700_v62  ;;  %1588 = vmatmul.mubr.bf16.gmra.mrb[36].mxu1 %v1701_v63 }
  0x6f   : > { %809 = vmatprep.mubr.bf16.mxu0 %v1702_v0  ;;  %1591 = vmatprep.mubr.bf16.mxu1 %v1704_v1 }
  0x76   : > { %810 = vmatmul.mubr.bf16.gmra.mrb[40].mxu0 %v1705_v2  ;;  %1592 = vmatmul.mubr.bf16.gmra.mrb[40].mxu1 %v1706_v3 }
  0x77   : > { %817 = vmatprep.mubr.bf16.mxu0 %v1707_v4  ;;  %1595 = vmatprep.mubr.bf16.mxu1 %v1709_v5 }
  0x7e   : > { %818 = vmatmul.mubr.bf16.gmra.mrb[44].mxu0 %v1710_v6  ;;  %1596 = vmatmul.mubr.bf16.gmra.mrb[44].mxu1 %v1711_v7 }
  0xf9   : > { %v1431_v8 = vpop.f32.mrb[0].mxu0  ;;  %v1503_v9 = vpop.f32.mrb[0].mxu1 }
  0xfa   : > { %v1432_v10 = vpop.f32.mrb[1].mxu0  ;;  %v1504_v11 = vpop.f32.mrb[1].mxu1 }
  0xfb   : > { %v1433_v12 = vadd.f32 %v1432_v10, %v1431_v8  ;;  %v1434_v13 = vpop.f32.mrb[2].mxu0  ;;  %v2004_v14 = vadd.f32 %v1504_v11, %v1503_v9  ;;  %v1506_v15 = vpop.f32.mrb[2].mxu1 }
  0xfc   : > { %v1435_v16 = vpop.f32.mrb[3].mxu0  ;;  %v1507_v17 = vpop.f32.mrb[3].mxu1 }
  0xfd   : > { %v1436_v18 = vadd.f32 %v1435_v16, %v1434_v13  ;;  %v2006_v19 = vadd.f32 %v1507_v17, %v1506_v15  ;;  %v732_v60 = vadd.f32 %v1433_v12, %v2023_v56 }
  0xff   : > { %v735_v5 = vadd.f32 %v1436_v18, %v2023_v56 }
 0x101   : > { %v1437_v20 = vpop.f32.mrb[4].mxu0  ;;  %v1509_v21 = vpop.f32.mrb[4].mxu1 }
 0x102   : > { %v1438_v22 = vpop.f32.mrb[5].mxu0  ;;  %v1510_v23 = vpop.f32.mrb[5].mxu1 }
 0x103   : > { %v1439_v24 = vadd.f32 %v1438_v22, %v1437_v20  ;;  %v1440_v25 = vpop.f32.mrb[6].mxu0  ;;  %v2008_v26 = vadd.f32 %v1510_v23, %v1509_v21  ;;  %v1512_v27 = vpop.f32.mrb[6].mxu1 }
 0x104   : > { %v1441_v28 = vpop.f32.mrb[7].mxu0  ;;  %v1513_v29 = vpop.f32.mrb[7].mxu1 }
 0x105   : > { %v1442_v30 = vadd.f32 %v1441_v28, %v1440_v25  ;;  %v2010_v31 = vadd.f32 %v1513_v29, %v1512_v27  ;;  %v740_v57 = vadd.f32 %v1439_v24, %v2023_v56 }
 0x107   : > { %v743_v0 = vadd.f32 %v1442_v30, %v2023_v56 }
 0x109   : > { %v1443_v32 = vpop.f32.mrb[8].mxu0  ;;  %v1515_v33 = vpop.f32.mrb[8].mxu1 }
 0x10a   : > { %v1444_v34 = vpop.f32.mrb[9].mxu0  ;;  %v1516_v35 = vpop.f32.mrb[9].mxu1 }
 0x10b   : > { %v1445_v36 = vadd.f32 %v1444_v34, %v1443_v32  ;;  %v1446_v37 = vpop.f32.mrb[10].mxu0  ;;  %v2012_v38 = vadd.f32 %v1516_v35, %v1515_v33  ;;  %v1518_v39 = vpop.f32.mrb[10].mxu1 }
 0x10c   : > { %v1447_v40 = vpop.f32.mrb[11].mxu0  ;;  %v1519_v41 = vpop.f32.mrb[11].mxu1 }
 0x10d   : > { %v1448_v42 = vadd.f32 %v1447_v40, %v1446_v37  ;;  %v2014_v43 = vadd.f32 %v1519_v41, %v1518_v39  ;;  %v748_v21 = vadd.f32 %v1445_v36, %v2023_v56 }
 0x10f   : > { %v751_v30 = vadd.f32 %v1448_v42, %v2023_v56 }
 0x111   : > { %v1449_v44 = vpop.f32.mrb[12].mxu0  ;;  %v1521_v45 = vpop.f32.mrb[12].mxu1 }
 0x112   : > { %v1450_v46 = vpop.f32.mrb[13].mxu0  ;;  %v1522_v47 = vpop.f32.mrb[13].mxu1 }
 0x113   : > { %v1451_v48 = vadd.f32 %v1450_v46, %v1449_v44  ;;  %v1452_v49 = vpop.f32.mrb[14].mxu0  ;;  %v2016_v50 = vadd.f32 %v1522_v47, %v1521_v45  ;;  %v1524_v51 = vpop.f32.mrb[14].mxu1 }
 0x114   : > { %v1453_v52 = vpop.f32.mrb[15].mxu0  ;;  %v1525_v53 = vpop.f32.mrb[15].mxu1 }
 0x115   : > { %v1454_v54 = vadd.f32 %v1453_v52, %v1452_v49  ;;  %v2018_v55 = vadd.f32 %v1525_v53, %v1524_v51  ;;  %v756_v16 = vadd.f32 %v1451_v48, %v2023_v56 }
 0x117   : > { %v759_v24 = vadd.f32 %v1454_v54, %v2023_v56 }
 0x119   : > { %v1455_v58 = vpop.f32.mrb[16].mxu0  ;;  %v1569_v59 = vpop.f32.mrb[16].mxu1 }
 0x11a   : > { %v901_v61 = vadd.f32 %v1569_v59, %v740_v57  ;;  %v1456_v62 = vpop.f32.mrb[17].mxu0  ;;  %v892_v63 = vpop.f32.mrb[17].mxu1 }
 0x11b   : > { %v1457_v1 = vadd.f32 %v1456_v62, %v1455_v58  ;;  %v893_v2 = vadd.f32 %v892_v63, %v732_v60  ;;  %v1458_v3 = vpop.f32.mrb[18].mxu0  ;;  %v1570_v4 = vpop.f32.mrb[18].mxu1 }
 0x11c   : > { %v1383_v6 = vmul.f32 -1.442695, %v901_v61  ;;  %v904_v7 = vadd.f32 %v1570_v4, %v743_v0  ;;  %v1459_v8 = vpop.f32.mrb[19].mxu0  ;;  %v895_v9 = vpop.f32.mrb[19].mxu1 }
 0x11d   : > { %v1381_v10 = vmul.f32 -1.442695, %v893_v2  ;;  %v1460_v11 = vadd.f32 %v1459_v8, %v1458_v3  ;;  %v896_v13 = vadd.f32 %v895_v9, %v735_v5  ;;  %v764_v49 = vadd.f32 %v1457_v1, %v2023_v56 }
 0x11e   : > { %1712 = vpow2.f32 %v1383_v6  ;;  %v1384_v12 = vmul.f32 -1.442695, %v904_v7 }
 0x11f   : > { %1714 = vpow2.f32 %v1381_v10  ;;  %v1382_v15 = vmul.f32 -1.442695, %v896_v13  ;;  %v767_v59 = vadd.f32 %v1460_v11, %v2023_v56 }
 0x120   : > { %1716 = vpow2.f32 %v1384_v12 }
 0x121   : > { %1718 = vpow2.f32 %v1382_v15  ;;  %v1461_v17 = vpop.f32.mrb[20].mxu0  ;;  %v1573_v20 = vpop.f32.mrb[20].mxu1 }
 0x122   : > { %v917_v18 = vadd.f32 %v1573_v20, %v756_v16  ;;  %v1462_v22 = vpop.f32.mrb[21].mxu0  ;;  %v908_v23 = vpop.f32.mrb[21].mxu1 }
 0x123   : > { %v1463_v25 = vadd.f32 %v1462_v22, %v1461_v17  ;;  %v909_v27 = vadd.f32 %v908_v23, %v748_v21  ;;  %v1464_v28 = vpop.f32.mrb[22].mxu0  ;;  %v1574_v29 = vpop.f32.mrb[22].mxu1 }
 0x124   : > { %v1387_v32 = vmul.f32 -1.442695, %v917_v18  ;;  %v920_v33 = vadd.f32 %v1574_v29, %v759_v24  ;;  %v1465_v34 = vpop.f32.mrb[23].mxu0  ;;  %v911_v35 = vpop.f32.mrb[23].mxu1 }
 0x125   : > { %v1385_v37 = vmul.f32 -1.442695, %v909_v27  ;;  %v1466_v39 = vadd.f32 %v1465_v34, %v1464_v28  ;;  %v912_v40 = vadd.f32 %v911_v35, %v751_v30  ;;  %v772_v45 = vadd.f32 %v1463_v25, %v2023_v56 }
 0x126   : > { %1720 = vpow2.f32 %v1387_v32  ;;  %v1388_v36 = vmul.f32 -1.442695, %v920_v33 }
 0x127   : > { %1722 = vpow2.f32 %v1385_v37  ;;  %v1386_v41 = vmul.f32 -1.442695, %v912_v40  ;;  %v775_v58 = vadd.f32 %v1466_v39, %v2023_v56 }
 0x128   : > { %v1713_v44 = vpop.eup %1712  ;;  %1724 = vpow2.f32 %v1388_v36 }
 0x129   : > { %v1715_v46 = vpop.eup %1714  ;;  %v1117_v47 = vadd.f32 1.0, %v1713_v44  ;;  %1726 = vpow2.f32 %v1386_v41  ;;  %v1467_v48 = vpop.f32.mrb[24].mxu0 }
 0x12a   : > { %v1577_v42 = vpop.f32.mrb[24].mxu1  ;;  %v1717_v51 = vpop.eup %1716  ;;  %v1115_v52 = vadd.f32 1.0, %v1715_v46 }
 0x12b   : > { %v933_v53 = vadd.f32 %v1577_v42, %v772_v45  ;;  %v1468_v54 = vpop.f32.mrb[25].mxu0  ;;  %v924_v57 = vpop.f32.mrb[25].mxu1  ;;  %1728 = vrcp.f32 %v1117_v47  ;;  %v1118_v61 = vadd.f32 1.0, %v1717_v51 }
 0x12c   : > { %v1719_v60 = vpop.eup %1718  ;;  %v1469_v62 = vadd.f32 %v1468_v54, %v1467_v48  ;;  %v925_v63 = vadd.f32 %v924_v57, %v764_v49  ;;  %v1470_v0 = vpop.f32.mrb[26].mxu0  ;;  %1730 = vrcp.f32 %v1115_v52 }
 0x12d   : > { %v1578_v2 = vpop.f32.mrb[26].mxu1  ;;  %v1116_v3 = vadd.f32 1.0, %v1719_v60  ;;  %v1391_v1 = vmul.f32 -1.442695, %v933_v53  ;;  %v1471_v5 = vpop.f32.mrb[27].mxu0  ;;  %1732 = vrcp.f32 %v1118_v61 }
 0x12e   : > { %v936_v4 = vadd.f32 %v1578_v2, %v775_v58  ;;  %v927_v6 = vpop.f32.mrb[27].mxu1  ;;  %v1389_v7 = vmul.f32 -1.442695, %v925_v63  ;;  %v1472_v8 = vadd.f32 %v1471_v5, %v1470_v0  ;;  %v780_v20 = vadd.f32 %v1469_v62, %v2023_v56 }
 0x12f   : > { %v928_v9 = vadd.f32 %v927_v6, %v767_v59  ;;  %1734 = vrcp.f32 %v1116_v3 }
 0x130   : > { %v1392_v10 = vmul.f32 -1.442695, %v936_v4  ;;  %1736 = vpow2.f32 %v1391_v1  ;;  %v1721_v13 = vpop.eup %1720  ;;  %v783_v34 = vadd.f32 %v1472_v8, %v2023_v56 }
 0x131   : > { %v1390_v11 = vmul.f32 -1.442695, %v928_v9  ;;  %1738 = vpow2.f32 %v1389_v7  ;;  %v1723_v12 = vpop.eup %1722  ;;  %v1121_v15 = vadd.f32 1.0, %v1721_v13  ;;  %v1473_v16 = vpop.f32.mrb[28].mxu0 }
 0x132   : > { %1740 = vpow2.f32 %v1392_v10  ;;  %v1581_v17 = vpop.f32.mrb[28].mxu1  ;;  %v1725_v21 = vpop.eup %1724  ;;  %v1119_v18 = vadd.f32 1.0, %v1723_v12 }
 0x133   : > { %1742 = vpow2.f32 %v1390_v11  ;;  %v1474_v22 = vpop.f32.mrb[29].mxu0  ;;  %v940_v23 = vpop.f32.mrb[29].mxu1  ;;  %v1122_v25 = vadd.f32 1.0, %v1725_v21 }
 0x134   : > { %v1727_v24 = vpop.eup %1726  ;;  %1744 = vrcp.f32 %v1121_v15  ;;  %v1475_v27 = vadd.f32 %v1474_v22, %v1473_v16  ;;  %v941_v28 = vadd.f32 %v940_v23, %v780_v20  ;;  %v1476_v29 = vpop.f32.mrb[30].mxu0 }
 0x135   : > { %v1582_v30 = vpop.f32.mrb[30].mxu1  ;;  %1746 = vrcp.f32 %v1119_v18  ;;  %v1120_v32 = vadd.f32 1.0, %v1727_v24  ;;  %v1477_v33 = vpop.f32.mrb[31].mxu0 }
 0x136   : > { %v943_v35 = vpop.f32.mrb[31].mxu1  ;;  %v1729_v37 = vpop.eup %1728  ;;  %1748 = vrcp.f32 %v1122_v25  ;;  %v788_v39 = vadd.f32 %v1475_v27, %v2023_v56  ;;  %v1393_v40 = vmul.f32 -1.442695, %v941_v28  ;;  %v1478_v36 = vadd.f32 %v1477_v33, %v1476_v29 }
 0x137   : > { %v1731_v41 = vpop.eup %1730  ;;  %1213 = vst [vmem:[%s2042_s22 + $0x10] sm:$0xff] %v1729_v37  ;;  %1750 = vrcp.f32 %v1120_v32  ;;  %v944_v44 = vadd.f32 %v943_v35, %v783_v34 }
 0x138   : > { %v1733_v45 = vpop.eup %1732  ;;  %1211 = vst [vmem:[%s2042_s22] sm:$0xff] %v1731_v41  ;;  %v949_v46 = vadd.f32 %v1581_v17, %v788_v39  ;;  %1752 = vpow2.f32 %v1393_v40  ;;  %v791_v47 = vadd.f32 %v1478_v36, %v2023_v56 }
 0x139   : > { %v1735_v48 = vpop.eup %1734  ;;  %1214 = vst [vmem:[%s2042_s22 + $0x18] sm:$0xff] %v1733_v45  ;;  %v1394_v42 = vmul.f32 -1.442695, %v944_v44  ;;  %v1479_v53 = vpop.f32.mrb[32].mxu0 }
 0x13a   : > { %v1737_v49 = vpop.eup %1736  ;;  %1212 = vst [vmem:[%s2042_s22 + $0x8] sm:$0xff] %v1735_v48  ;;  %v1395_v51 = vmul.f32 -1.442695, %v949_v46  ;;  %v952_v52 = vadd.f32 %v1582_v30, %v791_v47  ;;  %v1585_v54 = vpop.f32.mrb[32].mxu1  ;;  %v836_v48 = vadd.f32 %v2008_v26, %v2023_v56  ;;  %v831_v26 = vadd.f32 %v2006_v19, %v2023_v56 }
 0x13b   : > { %v1739_v57 = vpop.eup %1738  ;;  %v1125_v58 = vadd.f32 1.0, %v1737_v49  ;;  %1754 = vpow2.f32 %v1394_v42  ;;  %v1480_v59 = vpop.f32.mrb[33].mxu0 }
 0x13c   : > { %v956_v60 = vpop.f32.mrb[33].mxu1  ;;  %v1741_v61 = vpop.eup %1740  ;;  %v1123_v62 = vadd.f32 1.0, %v1739_v57  ;;  %1756 = vpow2.f32 %v1395_v51  ;;  %v1481_v63 = vadd.f32 %v1480_v59, %v1479_v53  ;;  %v1396_v4 = vmul.f32 -1.442695, %v952_v52 }
 0x13d   : > { %v1482_v0 = vpop.f32.mrb[34].mxu0  ;;  %v1586_v2 = vpop.f32.mrb[34].mxu1  ;;  %1758 = vrcp.f32 %v1125_v58  ;;  %v1126_v1 = vadd.f32 1.0, %v1741_v61  ;;  %v839_v61 = vadd.f32 %v2010_v31, %v2023_v56 }
 0x13e   : > { %v1743_v3 = vpop.eup %1742  ;;  %v1483_v5 = vpop.f32.mrb[35].mxu0  ;;  %1760 = vrcp.f32 %v1123_v62  ;;  %v796_v9 = vadd.f32 %v1481_v63, %v2023_v56 }
 0x13f   : > { %v959_v6 = vpop.f32.mrb[35].mxu1  ;;  %v1745_v7 = vpop.eup %1744  ;;  %v1124_v8 = vadd.f32 1.0, %v1743_v3  ;;  %v1484_v10 = vadd.f32 %v1483_v5, %v1482_v0  ;;  %1762 = vrcp.f32 %v1126_v1 }
 0x140   : > { %v1747_v11 = vpop.eup %1746  ;;  %1217 = vst [vmem:[%s2042_s22 + $0x30] sm:$0xff] %v1745_v7  ;;  %v957_v12 = vadd.f32 %v956_v60, %v796_v9 }
 0x141   : > { %v1749_v13 = vpop.eup %1748  ;;  %1215 = vst [vmem:[%s2042_s22 + $0x20] sm:$0xff] %v1747_v11  ;;  %1764 = vrcp.f32 %v1124_v8  ;;  %v799_v15 = vadd.f32 %v1484_v10, %v2023_v56  ;;  %v1485_v18 = vpop.f32.mrb[36].mxu0 }
 0x142   : > { %v1751_v16 = vpop.eup %1750  ;;  %1218 = vst [vmem:[%s2042_s22 + $0x38] sm:$0xff] %v1749_v13  ;;  %1766 = vpow2.f32 %v1396_v4  ;;  %v1397_v20 = vmul.f32 -1.442695, %v957_v12  ;;  %v2057_v22 = vpop.f32.mrb[36].mxu1 }
 0x143   : > { %v1753_v17 = vpop.eup %1752  ;;  %1216 = vst [vmem:[%s2042_s22 + $0x28] sm:$0xff] %v1751_v16  ;;  %v960_v21 = vadd.f32 %v959_v6, %v799_v15  ;;  %v1486_v24 = vpop.f32.mrb[37].mxu0 }
 0x144   : > { %v1127_v23 = vadd.f32 1.0, %v1753_v17  ;;  %v2059_v25 = vpop.f32.mrb[37].mxu1  ;;  %1768 = vpow2.f32 %v1397_v20  ;;  %v1487_v28 = vadd.f32 %v1486_v24, %v1485_v18  ;;  %v1488_v29 = vpop.f32.mrb[38].mxu0  ;;  %v852_v20 = vadd.f32 %v2016_v50, %v2023_v56 }
 0x145   : > { %v1398_v27 = vmul.f32 -1.442695, %v960_v21  ;;  %v2061_v30 = vpop.f32.mrb[38].mxu1  ;;  %v1755_v32 = vpop.eup %1754  ;;  %v855_v50 = vadd.f32 %v2018_v55, %v2023_v56 }
 0x146   : > { %1770 = vrcp.f32 %v1127_v23  ;;  %v1489_v33 = vpop.f32.mrb[39].mxu0  ;;  %v2063_v34 = vpop.f32.mrb[39].mxu1  ;;  %v1128_v37 = vadd.f32 1.0, %v1755_v32  ;;  %v804_v39 = vadd.f32 %v1487_v28, %v2023_v56  ;;  %v844_v28 = vadd.f32 %v2012_v38, %v2023_v56 }
 0x147   : > { %v1757_v35 = vpop.eup %1756  ;;  %1772 = vpow2.f32 %v1398_v27  ;;  %v1490_v40 = vadd.f32 %v1489_v33, %v1488_v29 }
 0x148   : > { %v1759_v36 = vpop.eup %1758  ;;  %v1129_v41 = vadd.f32 1.0, %v1757_v35  ;;  %1774 = vrcp.f32 %v1128_v37  ;;  %v965_v45 = vadd.f32 %v1585_v54, %v804_v39  ;;  %v828_v54 = vadd.f32 %v2004_v14, %v2023_v56 }
 0x149   : > { %v1761_v44 = vpop.eup %1760  ;;  %1221 = vst [vmem:[%s2042_s22 + $0x50] sm:$0xff] %v1759_v36  ;;  %v807_v46 = vadd.f32 %v1490_v40, %v2023_v56  ;;  %v1491_v52 = vpop.f32.mrb[40].mxu0 }
 0x14a   : > { %v1763_v47 = vpop.eup %1762  ;;  %1219 = vst [vmem:[%s2042_s22 + $0x40] sm:$0xff] %v1761_v44  ;;  %1776 = vrcp.f32 %v1129_v41  ;;  %v1399_v49 = vmul.f32 -1.442695, %v965_v45  ;;  %v1593_v53 = vpop.f32.mrb[40].mxu1  ;;  %v847_v45 = vadd.f32 %v2014_v43, %v2023_v56 }
 0x14b   : > { %v1765_v42 = vpop.eup %1764  ;;  %1222 = vst [vmem:[%s2042_s22 + $0x58] sm:$0xff] %v1763_v47  ;;  %v968_v51 = vadd.f32 %v1586_v2, %v807_v46  ;;  %v997_v58 = vadd.f32 %v1593_v53, %v836_v48  ;;  %v1492_v59 = vpop.f32.mrb[41].mxu0 }
 0x14c   : > { %v1767_v57 = vpop.eup %1766  ;;  %1220 = vst [vmem:[%s2042_s22 + $0x48] sm:$0xff] %v1765_v42  ;;  %v988_v60 = vpop.f32.mrb[41].mxu1  ;;  %1778 = vpow2.f32 %v1399_v49  ;;  %v1493_v0 = vadd.f32 %v1492_v59, %v1491_v52 }
 0x14d   : > { %v1130_v62 = vadd.f32 1.0, %v1767_v57  ;;  %v1400_v63 = vmul.f32 -1.442695, %v968_v51  ;;  %v1494_v2 = vpop.f32.mrb[42].mxu0  ;;  %v1594_v3 = vpop.f32.mrb[42].mxu1  ;;  %v989_v4 = vadd.f32 %v988_v60, %v828_v54 }
 0x14e   : > { %v1407_v1 = vmul.f32 -1.442695, %v997_v58  ;;  %v1000_v5 = vadd.f32 %v1594_v3, %v839_v61  ;;  %v1495_v6 = vpop.f32.mrb[43].mxu0  ;;  %v991_v7 = vpop.f32.mrb[43].mxu1  ;;  %v812_v8 = vadd.f32 %v1493_v0, %v2023_v56 }
 0x14f   : > { %v1769_v14 = vpop.eup %1768  ;;  %1780 = vrcp.f32 %v1130_v62  ;;  %v1496_v31 = vadd.f32 %v1495_v6, %v1494_v2  ;;  %v992_v9 = vadd.f32 %v991_v7, %v831_v26  ;;  %v1405_v11 = vmul.f32 -1.442695, %v989_v4 }
 0x150   : > { %v1771_v10 = vpop.eup %1770  ;;  %v1131_v19 = vadd.f32 1.0, %v1769_v14  ;;  %1782 = vpow2.f32 %v1400_v63  ;;  %v973_v12 = vadd.f32 %v2059_v25, %v812_v8  ;;  %v1408_v17 = vmul.f32 -1.442695, %v1000_v5 }
 0x151   : > { %v1773_v13 = vpop.eup %1772  ;;  %1223 = vst [vmem:[%s2042_s22 + $0x60] sm:$0xff] %v1771_v10  ;;  %1784 = vpow2.f32 %v1407_v1  ;;  %v815_v15 = vadd.f32 %v1496_v31, %v2023_v56  ;;  %v1497_v24 = vpop.f32.mrb[44].mxu0  ;;  %v1406_v29 = vmul.f32 -1.442695, %v992_v9 }
 0x152   : > { %1786 = vrcp.f32 %v1131_v19  ;;  %v1132_v16 = vadd.f32 1.0, %v1773_v13  ;;  %v1775_v21 = vpop.eup %1774  ;;  %v1401_v18 = vmul.f32 -1.442695, %v973_v12  ;;  %v1597_v27 = vpop.f32.mrb[44].mxu1 }
 0x153   : > { %1788 = vpow2.f32 %v1405_v11  ;;  %v976_v23 = vadd.f32 %v2063_v34, %v815_v15  ;;  %1224 = vst [vmem:[%s2042_s22 + $0x68] sm:$0xff] %v1775_v21  ;;  %v1013_v32 = vadd.f32 %v1597_v27, %v852_v20  ;;  %v1498_v33 = vpop.f32.mrb[45].mxu0  ;;  %v1004_v35 = vpop.f32.mrb[45].mxu1 }
 0x154   : > { %v1777_v25 = vpop.eup %1776  ;;  %1790 = vrcp.f32 %v1132_v16  ;;  %v1499_v39 = vadd.f32 %v1498_v33, %v1497_v24  ;;  %v1005_v34 = vadd.f32 %v1004_v35, %v844_v28  ;;  %v1500_v40 = vpop.f32.mrb[46].mxu0 }
 0x155   : > { %1225 = vst [vmem:[%s2042_s22 + $0x70] sm:$0xff] %v1777_v25  ;;  %1792 = vpow2.f32 %v1401_v18  ;;  %v1402_v37 = vmul.f32 -1.442695, %v976_v23  ;;  %v1598_v36 = vpop.f32.mrb[46].mxu1  ;;  %v1411_v41 = vmul.f32 -1.442695, %v1013_v32 }
 0x156   : > { %1794 = vpow2.f32 %v1408_v17  ;;  %v1016_v38 = vadd.f32 %v1598_v36, %v855_v50  ;;  %v1501_v44 = vpop.f32.mrb[47].mxu0  ;;  %v1007_v46 = vpop.f32.mrb[47].mxu1  ;;  %v820_v55 = vadd.f32 %v1499_v39, %v2023_v56  ;;  %v1409_v48 = vmul.f32 -1.442695, %v1005_v34 }
 0x157   : > { %v1779_v47 = vpop.eup %1778  ;;  %1796 = vpow2.f32 %v1402_v37  ;;  %v1502_v42 = vadd.f32 %v1501_v44, %v1500_v40  ;;  %v1008_v52 = vadd.f32 %v1007_v46, %v847_v45 }
 0x158   : > { %v1133_v49 = vadd.f32 1.0, %v1779_v47  ;;  %1798 = vpow2.f32 %v1406_v29  ;;  %v1412_v51 = vmul.f32 -1.442695, %v1016_v38  ;;  %v981_v57 = vadd.f32 %v2057_v22, %v820_v55 }
 0x159   : > { %v1781_v53 = vpop.eup %1780  ;;  %1800 = vpow2.f32 %v1411_v41  ;;  %v823_v58 = vadd.f32 %v1502_v42, %v2023_v56  ;;  %v1410_v8 = vmul.f32 -1.442695, %v1008_v52 }
 0x15a   : > { %v1783_v43 = vpop.eup %1782  ;;  %1226 = vst [vmem:[%s2042_s22 + $0x78] sm:$0xff] %v1781_v53  ;;  %1802 = vrcp.f32 %v1133_v49  ;;  %v1403_v60 = vmul.f32 -1.442695, %v981_v57 }
 0x15b   : > { %v1785_v59 = vpop.eup %1784  ;;  %v1134_v54 = vadd.f32 1.0, %v1783_v43  ;;  %1804 = vpow2.f32 %v1409_v48  ;;  %v984_v61 = vadd.f32 %v2061_v30, %v823_v58 }
 0x15c   : > { %v1787_v26 = vpop.eup %1786  ;;  %v1141_v62 = vadd.f32 1.0, %v1785_v59  ;;  %1806 = vpow2.f32 %v1412_v51 }
 0x15d   : > { %v1789_v63 = vpop.eup %1788  ;;  %1227 = vst [vmem:[%s2042_s22 + $0x80] sm:$0xff] %v1787_v26  ;;  %1808 = vrcp.f32 %v1134_v54  ;;  %v1404_v0 = vmul.f32 -1.442695, %v984_v61 }
 0x15e   : > { %v1791_v22 = vpop.eup %1790  ;;  %1810 = vrcp.f32 %v1141_v62  ;;  %v1139_v56 = vadd.f32 1.0, %v1789_v63 }
 0x15f   : > { %v1793_v2 = vpop.eup %1792  ;;  %1228 = vst [vmem:[%s2042_s22 + $0x88] sm:$0xff] %v1791_v22  ;;  %1812 = vpow2.f32 %v1403_v60 }
 0x160   : > { %v1795_v3 = vpop.eup %1794  ;;  %v1135_v1 = vadd.f32 1.0, %v1793_v2  ;;  %1814 = vrcp.f32 %v1139_v56 }
 0x161   : > { %v1797_v4 = vpop.eup %1796  ;;  %v1142_v5 = vadd.f32 1.0, %v1795_v3  ;;  %1816 = vpow2.f32 %v1404_v0 }
 0x162   : > { %v1799_v30 = vpop.eup %1798  ;;  %1818 = vrcp.f32 %v1135_v1  ;;  %v1136_v6 = vadd.f32 1.0, %v1797_v4 }
 0x163   : > { %v1801_v7 = vpop.eup %1800  ;;  %1820 = vrcp.f32 %v1142_v5  ;;  %v1140_v14 = vadd.f32 1.0, %v1799_v30 }
 0x164   : > { %v1803_v31 = vpop.eup %1802  ;;  %1822 = vrcp.f32 %v1136_v6  ;;  %v1145_v9 = vadd.f32 1.0, %v1801_v7 }
 0x165   : > { %v1805_v10 = vpop.eup %1804  ;;  %1229 = vst [vmem:[%s2042_s22 + $0x90] sm:$0xff] %v1803_v31  ;;  %1824 = vrcp.f32 %v1140_v14 }
 0x166   : > { %v1807_v19 = vpop.eup %1806  ;;  %1826 = vrcp.f32 %v1145_v9  ;;  %v1143_v11 = vadd.f32 1.0, %v1805_v10 }
 0x167   : > { %v1809_v13 = vpop.eup %1808  ;;  %v1146_v12 = vadd.f32 1.0, %v1807_v19  ;;  %1828 = vpow2.f32 %v1410_v8 }
 0x168   : > { %v1811_v15 = vpop.eup %1810  ;;  %1230 = vst [vmem:[%s2042_s22 + $0x98] sm:$0xff] %v1809_v13  ;;  %1830 = vrcp.f32 %v1143_v11 }
 0x169   : > { %v1813_v16 = vpop.eup %1812  ;;  %1237 = vst [vmem:[%s2042_s22 + $0xd0] sm:$0xff] %v1811_v15  ;;  %1832 = vrcp.f32 %v1146_v12 }
 0x16a   : > { %v1815_v17 = vpop.eup %1814  ;;  %v1137_v20 = vadd.f32 1.0, %v1813_v16 }
 0x16b   : > { %v1817_v21 = vpop.eup %1816  ;;  %1235 = vst [vmem:[%s2042_s22 + $0xc0] sm:$0xff] %v1815_v17 }
 0x16c   : > { %v1819_v18 = vpop.eup %1818  ;;  %1834 = vrcp.f32 %v1137_v20  ;;  %v1138_v23 = vadd.f32 1.0, %v1817_v21 }
 0x16d   : > { %v1821_v24 = vpop.eup %1820  ;;  %1231 = vst [vmem:[%s2042_s22 + $0xa0] sm:$0xff] %v1819_v18 }
 0x16e   : > { %v1823_v27 = vpop.eup %1822  ;;  %1238 = vst [vmem:[%s2042_s22 + $0xd8] sm:$0xff] %v1821_v24  ;;  %1836 = vrcp.f32 %v1138_v23 }
 0x16f   : > { %v1825_v28 = vpop.eup %1824  ;;  %1232 = vst [vmem:[%s2042_s22 + $0xa8] sm:$0xff] %v1823_v27 }
 0x170   : > { %v1827_v25 = vpop.eup %1826  ;;  %1236 = vst [vmem:[%s2042_s22 + $0xc8] sm:$0xff] %v1825_v28 }
 0x171   : > { %v1829_v29 = vpop.eup %1828  ;;  %1241 = vst [vmem:[%s2042_s22 + $0xf0] sm:$0xff] %v1827_v25 }
 0x172   : > { %v1831_v32 = vpop.eup %1830  ;;  %v1144_v33 = vadd.f32 1.0, %v1829_v29 }
 0x173   : > { %v1833_v35 = vpop.eup %1832  ;;  %1239 = vst [vmem:[%s2042_s22 + $0xe0] sm:$0xff] %v1831_v32 }
 0x174   : > { %1242 = vst [vmem:[%s2042_s22 + $0xf8] sm:$0xff] %v1833_v35  ;;  %1838 = vrcp.f32 %v1144_v33 }
 0x176   : > { %v1835_v50 = vpop.eup %1834 }
 0x177   : > { %1233 = vst [vmem:[%s2042_s22 + $0xb0] sm:$0xff] %v1835_v50 }
 0x178   : > { %v1837_v37 = vpop.eup %1836 }
 0x179   : > { %1234 = vst [vmem:[%s2042_s22 + $0xb8] sm:$0xff] %v1837_v37 }
 0x17e   : > { %v1839_v39 = vpop.eup %1838 }
 0x17f   : > { %1240 = vst [vmem:[%s2042_s22 + $0xe8] sm:$0xff] %v1839_v39 }
 0x180 PF: > { %s13_s12 = sadd.s32 1, %s1846_s12  }
 0x181   : > { %p10_p4 = scmp.ge.s32.totalorder %s13_s12, 6  }
 0x183   :  { %12 = sbr.rel (!%p10_p4) target bundleno = 1 (0x1), region = 62 }

// kernel: a_call__.11
= control target key start
LH: loop header
LB: loop body
LE: loop exit
PB: predicated region body
PF: predicated region fallthrough
CT: control target
= control target key end

     0   :  { %v210_v0 = vmov 0.0   ;;  %vm211_vm0 = vmmov 0   ;;  %s276_s1 = inlined_call_operand.vmem [shape: bf16[128,128], index: 1, kind: input, shape index: {}]   ;;  %s277_s0 = inlined_call_operand.vmem [shape: bf16[16,128], index: 0, kind: input, shape index: {}]   ;;  %s278_s2 = inlined_call_operand.vmem [shape: f32[1,128], index: 2, kind: input, shape index: {}]   ;;  %s279_s3 = inlined_call_operand.vmem [shape: f32[1,128], index: 3, kind: input, shape index: {}]   ;;  %s280_s4 = inlined_call_operand.vmem [shape: f32[16,128], index: 4, kind: output, shape index: {}]  }
   0x1   :  { %175 = vmatprep.subr.bf16.mxu0 %v210_v0  ;;  %v197_v1 = vld [vmem:[%s276_s1] sm:$0xff]   ;;  %191 = vmatprep.mubr.msk.bf16.mxu0 %vm211_vm0, %v210_v0  ;;  %v198_v2 = vld [vmem:[%s276_s1 + $0x8] sm:$0xff]   ;;  %v199_v3 = vld [vmem:[%s276_s1 + $0x10] sm:$0xff]  }
   0x2   :  { %176 = vmatpush3.bf16.msra.mxu0 %v197_v1  ;;  %v200_v4 = vld [vmem:[%s276_s1 + $0x18] sm:$0xff]   ;;  %v201_v5 = vld [vmem:[%s276_s1 + $0x20] sm:$0xff]   ;;  %v202_v6 = vld [vmem:[%s276_s1 + $0x28] sm:$0xff]  }
   0x3   :  { %177 = vmatprep.subr.bf16.mxu0 %v210_v0  ;;  %v203_v7 = vld [vmem:[%s276_s1 + $0x30] sm:$0xff]   ;;  %v204_v8 = vld [vmem:[%s276_s1 + $0x38] sm:$0xff]   ;;  %v205_v9 = vld [vmem:[%s277_s0] sm:$0xff]  }
   0x4   :  { %v155_v10 = vld [vmem:[%s278_s2] ss:$0 sm:$0xff] }
   0x5   :  { %v165_v17 = vld [vmem:[%s279_s3] ss:$0 sm:$0xff] }
   0x6   :  { %178 = vmatpush3.bf16.msra.mxu0 %v198_v2 }
   0x7   :  { %179 = vmatprep.subr.bf16.mxu0 %v210_v0 }
   0xa   :  { %180 = vmatpush3.bf16.msra.mxu0 %v199_v3 }
   0xb   :  { %181 = vmatprep.subr.bf16.mxu0 %v210_v0 }
   0xe   :  { %182 = vmatpush3.bf16.msra.mxu0 %v200_v4 }
   0xf   :  { %183 = vmatprep.subr.bf16.mxu0 %v210_v0 }
  0x12   :  { %184 = vmatpush3.bf16.msra.mxu0 %v201_v5 }
  0x13   :  { %185 = vmatprep.subr.bf16.mxu0 %v210_v0 }
  0x16   :  { %186 = vmatpush3.bf16.msra.mxu0 %v202_v6 }
  0x17   :  { %187 = vmatprep.subr.bf16.mxu0 %v210_v0 }
  0x1a   :  { %188 = vmatpush3.bf16.msra.mxu0 %v203_v7 }
  0x1b   :  { %189 = vmatprep.subr.bf16.mxu0 %v210_v0 }
  0x1e   :  { %190 = vmatpush3.bf16.msra.mxu0 %v204_v8 }
  0x21   :  { %192 = vmatmul.mubr.bf16.vlgmr.msra.gmra.mrb[0].mxu0 %v205_v9 }
  0xf4   :  { %v131_v11 = vpop.f32.mrb[0].mxu0 }
  0xf5   :  { %v132_v12 = vadd.f32 %v155_v10, %v131_v11  ;;  %v193_v13 = vpop.f32.mrb[1].mxu0 }
  0xf6   :  { %v134_v14 = vpop.f32.mrb[2].mxu0 }
  0xf7   :  { %206 = vtanh.f32 %v132_v12  ;;  %v135_v15 = vadd.f32 %v155_v10, %v134_v14  ;;  %v194_v16 = vpop.f32.mrb[3].mxu0 }
  0xf9   :  { %208 = vtanh.f32 %v135_v15 }
 0x101   :  { %v207_v18 = vpop.eup %206 }
 0x102   :  { %v147_v19 = vmul.f32 %v207_v18, %v165_v17 }
 0x103   :  { %v209_v20 = vpop.eup %208 }
 0x104   :  { %149 = vst [vmem:[%s280_s4] sm:$0xff] %v147_v19  ;;  %v148_v21 = vmul.f32 %v209_v20, %v165_v17 }
 0x106   :  { %150 = vst [vmem:[%s280_s4 + $0x8] sm:$0xff] %v148_v21 }

// kernel: a_call__.12
= control target key start
LH: loop header
LB: loop body
LE: loop exit
PB: predicated region body
PF: predicated region fallthrough
CT: control target
= control target key end

     0   :  { %v191_v0 = vmov 0.0   ;;  %vm192_vm0 = vmmov 0   ;;  %s249_s1 = inlined_call_operand.vmem [shape: bf16[128,128], index: 1, kind: input, shape index: {}]   ;;  %s250_s0 = inlined_call_operand.vmem [shape: bf16[16,128], index: 0, kind: input, shape index: {}]   ;;  %s251_s2 = inlined_call_operand.vmem [shape: f32[1,128], index: 2, kind: input, shape index: {}]   ;;  %s252_s3 = inlined_call_operand.vmem [shape: f32[16,128], index: 3, kind: output, shape index: {}]  }
   0x1   :  { %160 = vmatprep.subr.bf16.mxu0 %v191_v0  ;;  %v182_v1 = vld [vmem:[%s249_s1] sm:$0xff]   ;;  %176 = vmatprep.mubr.msk.bf16.mxu0 %vm192_vm0, %v191_v0  ;;  %v183_v2 = vld [vmem:[%s249_s1 + $0x8] sm:$0xff]   ;;  %v184_v3 = vld [vmem:[%s249_s1 + $0x10] sm:$0xff]  }
   0x2   :  { %161 = vmatpush3.bf16.msra.mxu0 %v182_v1  ;;  %v185_v4 = vld [vmem:[%s249_s1 + $0x18] sm:$0xff]   ;;  %v186_v5 = vld [vmem:[%s249_s1 + $0x20] sm:$0xff]   ;;  %v187_v6 = vld [vmem:[%s249_s1 + $0x28] sm:$0xff]  }
   0x3   :  { %162 = vmatprep.subr.bf16.mxu0 %v191_v0  ;;  %v188_v7 = vld [vmem:[%s249_s1 + $0x30] sm:$0xff]   ;;  %v189_v8 = vld [vmem:[%s249_s1 + $0x38] sm:$0xff]   ;;  %v190_v9 = vld [vmem:[%s250_s0] sm:$0xff]  }
   0x4   :  { %v141_v10 = vld [vmem:[%s251_s2] ss:$0 sm:$0xff] }
   0x6   :  { %163 = vmatpush3.bf16.msra.mxu0 %v183_v2 }
   0x7   :  { %164 = vmatprep.subr.bf16.mxu0 %v191_v0 }
   0xa   :  { %165 = vmatpush3.bf16.msra.mxu0 %v184_v3 }
   0xb   :  { %166 = vmatprep.subr.bf16.mxu0 %v191_v0 }
   0xe   :  { %167 = vmatpush3.bf16.msra.mxu0 %v185_v4 }
   0xf   :  { %168 = vmatprep.subr.bf16.mxu0 %v191_v0 }
  0x12   :  { %169 = vmatpush3.bf16.msra.mxu0 %v186_v5 }
  0x13   :  { %170 = vmatprep.subr.bf16.mxu0 %v191_v0 }
  0x16   :  { %171 = vmatpush3.bf16.msra.mxu0 %v187_v6 }
  0x17   :  { %172 = vmatprep.subr.bf16.mxu0 %v191_v0 }
  0x1a   :  { %173 = vmatpush3.bf16.msra.mxu0 %v188_v7 }
  0x1b   :  { %174 = vmatprep.subr.bf16.mxu0 %v191_v0 }
  0x1e   :  { %175 = vmatpush3.bf16.msra.mxu0 %v189_v8 }
  0x21   :  { %177 = vmatmul.mubr.bf16.vlgmr.msra.gmra.mrb[0].mxu0 %v190_v9 }
  0xf4   :  { %v128_v11 = vpop.f32.mrb[0].mxu0 }
  0xf5   :  { %v129_v12 = vadd.f32 %v141_v10, %v128_v11  ;;  %v178_v13 = vpop.f32.mrb[1].mxu0 }
  0xf6   :  { %v131_v14 = vpop.f32.mrb[2].mxu0 }
  0xf7   :  { %135 = vst [vmem:[%s252_s3] sm:$0xff] %v129_v12  ;;  %v132_v15 = vadd.f32 %v141_v10, %v131_v14  ;;  %v179_v16 = vpop.f32.mrb[3].mxu0 }
  0xf9   :  { %136 = vst [vmem:[%s252_s3 + $0x8] sm:$0xff] %v132_v15 }

</bundles_post_ra>
